<compile_context>
chip_gen: v5e
topology: v5e:2x2
jax: 0.10.0
libtpu: 0.0.40
codegen_flags: <defaults>
</compile_context>

<pallas_src>
import functools

import jax
import jax.numpy as jnp
from jax.experimental import pallas as pl
from jax.experimental.pallas import tpu as pltpu

EPS = 1e-4      # self.epsilon
BN_EPS = 1e-5   # PyTorch BatchNorm2d default eps


# ----------------------------------------------------------------------------
# Pallas kernel
# ----------------------------------------------------------------------------
def dpnet_kernel(x_ref, mpool_ref, w1_ref, b1_ref, w2_ref, b2_ref,
                 proto_ref, p2_ref, lw_ref,
                 logits_ref, mind_ref,
                 pooled_acc, min_acc, *, sub_steps):
    # x_ref block: (1, C, chunk_px) = one batch element, all channels, a strip
    # of `rows_per_step` image rows flattened along the lane axis.
    r = pl.program_id(1)
    sub = r % sub_steps          # position of this strip inside its window-row

    # AvgPool2d: both spatial reductions + the 1/pool^2 scale as one MXU matmul
    # against the constant pooling matrix.  bf16 x stays bf16 into the MXU
    # (exact products, f32 accumulation) -> no bf16 VPU work (v5e-safe).
    part = jnp.dot(x_ref[0], mpool_ref[...],
                   preferred_element_type=jnp.float32)           # (C, acc_w)

    @pl.when(sub == 0)
    def _():
        pooled_acc[...] = part

    @pl.when(sub != 0)
    def _():
        pooled_acc[...] = pooled_acc[...] + part

    @pl.when(r == 0)
    def _():
        min_acc[...] = jnp.full(min_acc.shape, jnp.inf, min_acc.dtype)

    # Window-row complete: run the add_on_layers + prototype tail for it.
    @pl.when(sub == sub_steps - 1)
    def _():
        pooled = pooled_acc[...]                                 # (C, acc_w) f32
        # Conv2d(720->D,1x1) + BatchNorm (folded) + ReLU   (channels-first cols)
        h = jnp.dot(w1_ref[...], pooled,
                    preferred_element_type=jnp.float32) + b1_ref[...]   # (D, acc_w)
        h = jnp.maximum(h, 0.0)
        # Conv2d(D->D,1x1)
        f = jnp.dot(w2_ref[...], h,
                    preferred_element_type=jnp.float32) + b2_ref[...]   # (D, acc_w)
        # _l2_convolution with 1x1 prototypes:
        #   dist[p, s] = relu(||f_s||^2 - 2<proto_p, f_s> + ||proto_p||^2)
        x2 = jnp.sum(f * f, axis=0, keepdims=True)               # (1, acc_w)
        xp = jnp.dot(proto_ref[...], f,
                     preferred_element_type=jnp.float32)         # (P, acc_w)
        dist = jnp.maximum(x2 - 2.0 * xp + p2_ref[...], 0.0)     # (P, acc_w)
        # global spatial min-pool, accumulated across window-rows
        min_acc[...] = jnp.minimum(min_acc[...], dist)

    # Last strip of this batch element: similarity + last linear layer.
    @pl.when(r == pl.num_programs(1) - 1)
    def _():
        min_d = jnp.min(min_acc[...], axis=1, keepdims=True)     # (P, 1)
        act = jnp.log((min_d + 1.0) / (min_d + EPS))             # 'log' activation
        logits_ref[0] = jnp.dot(lw_ref[...], act,
                                preferred_element_type=jnp.float32)  # (NC, 1)
        mind_ref[0] = min_d


# ----------------------------------------------------------------------------
# Wrapper
# ----------------------------------------------------------------------------
def _pick_rows_per_step(pool, W, requested):
    """Largest-sense choice of rows per grid step: divides `pool` and keeps the
    flattened strip a multiple of 128 lanes."""
    cands = [r for r in range(1, pool + 1)
             if pool % r == 0 and (r * W) % 128 == 0]
    if not cands:
        return None                      # fall back to whole image per step
    return min(cands, key=lambda r: abs(r - requested))


def _dpnet_forward(x_nchw, folded_params, pool=16, rows_per_step=8):
    """x_nchw: (N, 720, H, W) feature map (f32 or bf16). Returns (logits, min_d)."""
    w1_eff, b1_eff, w2m, b2_col, protos, p2_col, lw = folded_params
    N, C, H, W = x_nchw.shape
    assert H % pool == 0 and W % pool == 0, "H, W must be multiples of pool"
    oh, ow = H // pool, W // pool
    S = oh * ow
    D = w1_eff.shape[0]
    P = protos.shape[0]
    NC = lw.shape[0]
    assert w1_eff.shape[1] == C

    R = _pick_rows_per_step(pool, W, rows_per_step)
    if R is not None:
        chunk_px = R * W
        n_chunks = H // R
        sub_steps = pool // R
        acc_w = ow
        win_col = (jnp.arange(chunk_px) % W) // pool             # window column
    else:
        chunk_px = H * W                                          # whole image
        n_chunks = 1
        sub_steps = 1
        acc_w = S
        p = jnp.arange(chunk_px)
        win_col = (p // (W * pool)) * ow + (p % W) // pool        # window index

    # Constant pooling matrix (chunk_px, acc_w); avg scale folded in.
    mpool = jnp.where(win_col[:, None] == jnp.arange(acc_w)[None, :],
                      1.0 / (pool * pool), 0.0).astype(x_nchw.dtype)

    # Copy-free: NCHW is row-major contiguous.
    x_flat = x_nchw.reshape(N, C, H * W)

    kernel = functools.partial(dpnet_kernel, sub_steps=sub_steps)
    const = lambda n, r: (0, 0)

    logits, min_d = pl.pallas_call(
        kernel,
        out_shape=(
            jax.ShapeDtypeStruct((N, NC, 1), jnp.float32),
            jax.ShapeDtypeStruct((N, P, 1), jnp.float32),
        ),
        grid_spec=pltpu.PrefetchScalarGridSpec(
            num_scalar_prefetch=0,
            grid=(N, n_chunks),
            in_specs=[
                pl.BlockSpec((1, C, chunk_px), lambda n, r: (n, 0, r)),  # x strip
                pl.BlockSpec((chunk_px, acc_w), const),                  # pool matrix
                pl.BlockSpec((D, C), const),                             # w1 * bn_scale
                pl.BlockSpec((D, 1), const),                             # folded bias1
                pl.BlockSpec((D, D), const),                             # w2
                pl.BlockSpec((D, 1), const),                             # b2
                pl.BlockSpec((P, D), const),                             # prototypes
                pl.BlockSpec((P, 1), const),                             # ||proto||^2
                pl.BlockSpec((NC, P), const),                            # last-layer W
            ],
            out_specs=[
                pl.BlockSpec((1, NC, 1), lambda n, r: (n, 0, 0)),
                pl.BlockSpec((1, P, 1), lambda n, r: (n, 0, 0)),
            ],
            scratch_shapes=[
                pltpu.VMEM((C, acc_w), jnp.float32),   # pooled partial sums
                pltpu.VMEM((P, acc_w), jnp.float32),   # running min distances
            ],
        ),
        compiler_params=pltpu.CompilerParams(
            dimension_semantics=("parallel", "arbitrary"),  # batch across v7x cores
            vmem_limit_bytes=32 * 1024 * 1024,              # safe on v5e/v6e/v7x
        ),
    )(x_flat, mpool, w1_eff, b1_eff, w2m, b2_col, protos, p2_col, lw)

    return logits[:, :, 0], min_d[:, :, 0]


dpnet_forward = jax.jit(_dpnet_forward, static_argnames=("pool", "rows_per_step"))


# ----------------------------------------------------------------------------
# Parameters (PyTorch-layout) and trace-time folding
# ----------------------------------------------------------------------------
def make_params(key, C=720, D=64, P=8, NC=4):
    assert P % NC == 0
    ks = jax.random.split(key, 9)
    w1 = jax.random.normal(ks[0], (D, C), jnp.float32) / jnp.sqrt(C)   # Conv2d(720->D)
    b1 = jax.random.normal(ks[1], (D,), jnp.float32) * 0.05
    gamma = jax.random.uniform(ks[2], (D,), jnp.float32, minval=0.5, maxval=1.5)
    beta = jax.random.normal(ks[3], (D,), jnp.float32) * 0.05
    rmean = jax.random.normal(ks[4], (D,), jnp.float32) * 0.05
    rvar = jax.random.uniform(ks[5], (D,), jnp.float32, minval=0.5, maxval=1.5)
    w2 = jax.random.normal(ks[6], (D, D), jnp.float32) / jnp.sqrt(D)   # Conv2d(D->D)
    b2 = jax.random.normal(ks[7], (D,), jnp.float32) * 0.05
    protos = jax.random.uniform(ks[8], (P, D), jnp.float32)            # torch.rand
    # last_layer init: +1 on correct class, -0.5 elsewhere; weight shape (NC, P)
    per_class = P // NC
    ident = (jnp.arange(P)[:, None] // per_class
             == jnp.arange(NC)[None, :]).astype(jnp.float32)           # (P, NC)
    lw = (ident * 1.0 + (1.0 - ident) * (-0.5)).T                      # (NC, P)
    return (w1, b1, gamma, beta, rmean, rvar, w2, b2, protos, lw)


def fold_params(raw):
    """Fold BN (inference) + conv1 bias into conv1 weights; hoist ||proto||^2."""
    w1, b1, gamma, beta, rmean, rvar, w2, b2, protos, lw = raw
    s = gamma / jnp.sqrt(rvar + BN_EPS)                                # (D,)
    w1_eff = (w1 * s[:, None]).astype(jnp.float32)                     # (D, C)
    b1_eff = (s * b1 + beta - s * rmean)[:, None].astype(jnp.float32)  # (D, 1)
    b2_col = b2[:, None].astype(jnp.float32)                           # (D, 1)
    p2_col = jnp.sum(protos * protos, axis=1, keepdims=True)           # (P, 1)
    return (w1_eff, b1_eff, w2.astype(jnp.float32), b2_col,
            protos.astype(jnp.float32), p2_col.astype(jnp.float32),
            lw.astype(jnp.float32))


# ----------------------------------------------------------------------------
# Pure-JAX reference (mirrors the PyTorch module, inference-mode BN)
# ----------------------------------------------------------------------------
def dpnet_reference(x_nchw, raw, pool=16):
    w1, b1, gamma, beta, rmean, rvar, w2, b2, protos, lw = raw
    N, C, H, W = x_nchw.shape
    x = x_nchw.reshape(N, C, H // pool, pool, W // pool, pool).mean(axis=(3, 5))
    x = x.reshape(N, C, -1)                                           # (N, C, S)
    y = jnp.einsum('dc,ncs->nds', w1, x) + b1[None, :, None]
    s = gamma / jnp.sqrt(rvar + BN_EPS)
    y = s[None, :, None] * (y - rmean[None, :, None]) + beta[None, :, None]
    y = jnp.maximum(y, 0.0)
    f = jnp.einsum('ed,nds->nes', w2, y) + b2[None, :, None]          # (N, D, S)
    x2 = jnp.sum(f * f, axis=1)                                       # (N, S)
    p2 = jnp.sum(protos * protos, axis=1)                             # (P,)
    xp = jnp.einsum('pd,nds->nps', protos, f)                         # (N, P, S)
    dist = jnp.maximum(x2[:, None, :] - 2.0 * xp + p2[None, :, None], 0.0)
    min_d = dist.min(axis=2)                                          # (N, P)
    act = jnp.log((min_d + 1.0) / (min_d + EPS))
    logits = act @ lw.T                                               # (N, NC)
    return logits, min_d


if __name__ == "__main__":
    key = jax.random.PRNGKey(0)
    kx, kp = jax.random.split(key)

    # 720 input channels are fixed by add_on_layers; pool=16 needs H,W >= 16.
    N, C, H, W = 2, 720, 32, 32
    D, P, NC = 64, 8, 4
    x = jax.random.normal(kx, (N, C, H, W), jnp.float32)
    raw = make_params(kp, C=C, D=D, P=P, NC=NC)
    folded = fold_params(raw)

    # f32 feature-map path (exact module semantics).
    logits, min_d = dpnet_forward(x, folded)
    logits = jax.block_until_ready(logits)
    min_d = jax.block_until_ready(min_d)
    ref_logits, ref_min_d = dpnet_reference(x, raw)
    assert jnp.allclose(logits, ref_logits, rtol=1e-2, atol=1e-2), "f32 logits mismatch"
    assert jnp.allclose(min_d, ref_min_d, rtol=1e-2, atol=1e-2), "f32 min_d mismatch"

    # bf16 feature-map path (halves the dominant HBM x DMA; represents a
    # backbone that emits bf16 features).  Compared against the reference on
    # the same quantized input so only the kernel math is being checked.
    xb = x.astype(jnp.bfloat16)
    logits_b, min_d_b = dpnet_forward(xb, folded)
    logits_b = jax.block_until_ready(logits_b)
    min_d_b = jax.block_until_ready(min_d_b)
    ref_logits_b, ref_min_d_b = dpnet_reference(xb.astype(jnp.float32), raw)
    assert jnp.allclose(logits_b, ref_logits_b, rtol=1e-2, atol=1e-2), "bf16 logits mismatch"
    assert jnp.allclose(min_d_b, ref_min_d_b, rtol=1e-2, atol=1e-2), "bf16 min_d mismatch"

    print("KERNEL_OK")
</pallas_src>

<mosaic_0001>
module attributes {stable_mosaic.version = 11 : i64} {
  func.func @dpnet_kernel(%arg0: i32, %arg1: i32, %arg2: memref<1x720x256xf32, #tpu.memory_space<vmem>>, %arg3: memref<256x2xf32, #tpu.memory_space<vmem>>, %arg4: memref<64x720xf32, #tpu.memory_space<vmem>>, %arg5: memref<64x1xf32, #tpu.memory_space<vmem>>, %arg6: memref<64x64xf32, #tpu.memory_space<vmem>>, %arg7: memref<64x1xf32, #tpu.memory_space<vmem>>, %arg8: memref<8x64xf32, #tpu.memory_space<vmem>>, %arg9: memref<8x1xf32, #tpu.memory_space<vmem>>, %arg10: memref<4x8xf32, #tpu.memory_space<vmem>>, %arg11: memref<1x4x1xf32, #tpu.memory_space<vmem>>, %arg12: memref<1x8x1xf32, #tpu.memory_space<vmem>>, %arg13: memref<720x2xf32, #tpu.memory_space<vmem>>, %arg14: memref<8x2xf32, #tpu.memory_space<vmem>>) attributes {dimension_semantics = [#tpu.dimension_semantics<parallel>, #tpu.dimension_semantics<arbitrary>], iteration_bounds = array<i64: 2, 4>, scalar_prefetch = 0 : i64, scratch_operands = 2 : i64, tpu.core_type = #tpu.core_type<tc>, window_params = [{transform_indices = @transform_0, window_bounds = array<i64: 1, 720, 256>}, {pipeline_mode = #tpu.pipeline_mode<synchronous>, transform_indices = @transform_1, window_bounds = array<i64: 256, 2>}, {pipeline_mode = #tpu.pipeline_mode<synchronous>, transform_indices = @transform_2, window_bounds = array<i64: 64, 720>}, {pipeline_mode = #tpu.pipeline_mode<synchronous>, transform_indices = @transform_3, window_bounds = array<i64: 64, 1>}, {pipeline_mode = #tpu.pipeline_mode<synchronous>, transform_indices = @transform_4, window_bounds = array<i64: 64, 64>}, {pipeline_mode = #tpu.pipeline_mode<synchronous>, transform_indices = @transform_5, window_bounds = array<i64: 64, 1>}, {pipeline_mode = #tpu.pipeline_mode<synchronous>, transform_indices = @transform_6, window_bounds = array<i64: 8, 64>}, {pipeline_mode = #tpu.pipeline_mode<synchronous>, transform_indices = @transform_7, window_bounds = array<i64: 8, 1>}, {pipeline_mode = #tpu.pipeline_mode<synchronous>, transform_indices = @transform_8, window_bounds = array<i64: 4, 8>}, {transform_indices = @transform_9, window_bounds = array<i64: 1, 4, 1>}, {transform_indices = @transform_10, window_bounds = array<i64: 1, 8, 1>}]} {
    %c2_i32 = arith.constant 2 : i32
    %c0_i32 = arith.constant 0 : i32
    %0 = arith.cmpi eq, %c2_i32, %c0_i32 : i32
    %c1_i32 = arith.constant 1 : i32
    %1 = arith.select %0, %c1_i32, %c2_i32 : i32
    %2 = arith.remsi %arg1, %1 : i32
    %c0_i32_0 = arith.constant 0 : i32
    %3 = arith.cmpi ne, %2, %c0_i32_0 : i32
    %c0_i32_1 = arith.constant 0 : i32
    %4 = arith.cmpi slt, %2, %c0_i32_1 : i32
    %c0_i32_2 = arith.constant 0 : i32
    %5 = arith.cmpi slt, %1, %c0_i32_2 : i32
    %6 = arith.xori %4, %5 : i1
    %7 = arith.andi %6, %3 : i1
    %8 = arith.addi %2, %1 : i32
    %9 = arith.select %7, %8, %2 : i32
    %c0 = arith.constant 0 : index
    %c0_3 = arith.constant 0 : index
    %c0_4 = arith.constant 0 : index
    %10 = vector.load %arg2[%c0, %c0_3, %c0_4] : memref<1x720x256xf32, #tpu.memory_space<vmem>>, vector<1x720x256xf32>
    %11 = vector.shape_cast %10 : vector<1x720x256xf32> to vector<720x256xf32>
    %c0_5 = arith.constant 0 : index
    %c0_6 = arith.constant 0 : index
    %12 = vector.load %arg3[%c0_5, %c0_6] : memref<256x2xf32, #tpu.memory_space<vmem>>, vector<256x2xf32>
    %cst = arith.constant dense<0.000000e+00> : vector<720x2xf32>
    %13 = tpu.matmul %11, %12, %cst {dimension_numbers = #tpu.dot_dimension_numbers<[1], [0], [0], [1], [0, 0, 1, 1], [], []>} : vector<720x256xf32>, vector<256x2xf32>, vector<720x2xf32> -> vector<720x2xf32>
    %c0_i32_7 = arith.constant 0 : i32
    %14 = arith.cmpi eq, %9, %c0_i32_7 : i32
    %15 = arith.extui %14 : i1 to i32
    %c0_i32_8 = arith.constant 0 : i32
    %16 = arith.cmpi ne, %15, %c0_i32_8 : i32
    scf.if %16 {
      %c0_16 = arith.constant 0 : index
      %c0_17 = arith.constant 0 : index
      %29 = vector.load %arg13[%c0_16, %c0_17] : memref<720x2xf32, #tpu.memory_space<vmem>>, vector<720x2xf32>
      tpu.vector_store %arg13[%c0_16, %c0_17], %13 {strides = array<i32>} : memref<720x2xf32, #tpu.memory_space<vmem>>, vector<720x2xf32>,
    } else {
    }
    %c0_i32_9 = arith.constant 0 : i32
    %17 = arith.cmpi ne, %9, %c0_i32_9 : i32
    %18 = arith.extui %17 : i1 to i32
    %c0_i32_10 = arith.constant 0 : i32
    %19 = arith.cmpi ne, %18, %c0_i32_10 : i32
    scf.if %19 {
      %c0_16 = arith.constant 0 : index
      %c0_17 = arith.constant 0 : index
      %29 = vector.load %arg13[%c0_16, %c0_17] : memref<720x2xf32, #tpu.memory_space<vmem>>, vector<720x2xf32>
      %30 = arith.addf %29, %13 : vector<720x2xf32>
      %c0_18 = arith.constant 0 : index
      %c0_19 = arith.constant 0 : index
      %31 = vector.load %arg13[%c0_18, %c0_19] : memref<720x2xf32, #tpu.memory_space<vmem>>, vector<720x2xf32>
      tpu.vector_store %arg13[%c0_18, %c0_19], %30 {strides = array<i32>} : memref<720x2xf32, #tpu.memory_space<vmem>>, vector<720x2xf32>,
    } else {
    }
    %c0_i32_11 = arith.constant 0 : i32
    %20 = arith.cmpi eq, %arg1, %c0_i32_11 : i32
    %21 = arith.extui %20 : i1 to i32
    %c0_i32_12 = arith.constant 0 : i32
    %22 = arith.cmpi ne, %21, %c0_i32_12 : i32
    scf.if %22 {
      %cst_16 = arith.constant 0x7F800000 : f32
      %29 = vector.broadcast %cst_16 : f32 to vector<8x2xf32>
      %c0_17 = arith.constant 0 : index
      %c0_18 = arith.constant 0 : index
      %30 = vector.load %arg14[%c0_17, %c0_18] : memref<8x2xf32, #tpu.memory_space<vmem>>, vector<8x2xf32>
      tpu.vector_store %arg14[%c0_17, %c0_18], %29 {strides = array<i32>} : memref<8x2xf32, #tpu.memory_space<vmem>>, vector<8x2xf32>,
    } else {
    }
    %c1_i32_13 = arith.constant 1 : i32
    %23 = arith.cmpi eq, %9, %c1_i32_13 : i32
    %24 = arith.extui %23 : i1 to i32
    %c0_i32_14 = arith.constant 0 : i32
    %25 = arith.cmpi ne, %24, %c0_i32_14 : i32
    scf.if %25 {
      %c0_16 = arith.constant 0 : index
      %c0_17 = arith.constant 0 : index
      %29 = vector.load %arg13[%c0_16, %c0_17] : memref<720x2xf32, #tpu.memory_space<vmem>>, vector<720x2xf32>
      %c0_18 = arith.constant 0 : index
      %c0_19 = arith.constant 0 : index
      %30 = vector.load %arg4[%c0_18, %c0_19] : memref<64x720xf32, #tpu.memory_space<vmem>>, vector<64x720xf32>
      %cst_20 = arith.constant dense<0.000000e+00> : vector<64x2xf32>
      %31 = tpu.matmul %30, %29, %cst_20 {dimension_numbers = #tpu.dot_dimension_numbers<[1], [0], [0], [1], [0, 0, 1, 1], [], []>} : vector<64x720xf32>, vector<720x2xf32>, vector<64x2xf32> -> vector<64x2xf32>
      %c0_21 = arith.constant 0 : index
      %c0_22 = arith.constant 0 : index
      %32 = vector.load %arg5[%c0_21, %c0_22] : memref<64x1xf32, #tpu.memory_space<vmem>>, vector<64x1xf32>
      %33 = vector.broadcast %32 : vector<64x1xf32> to vector<64x2xf32>
      %34 = arith.addf %31, %33 : vector<64x2xf32>
      %cst_23 = arith.constant 0.000000e+00 : f32
      %35 = vector.broadcast %cst_23 : f32 to vector<64x2xf32>
      %36 = arith.maximumf %34, %35 : vector<64x2xf32>
      %c0_24 = arith.constant 0 : index
      %c0_25 = arith.constant 0 : index
      %37 = vector.load %arg6[%c0_24, %c0_25] : memref<64x64xf32, #tpu.memory_space<vmem>>, vector<64x64xf32>
      %cst_26 = arith.constant dense<0.000000e+00> : vector<64x2xf32>
      %38 = tpu.matmul %37, %36, %cst_26 {dimension_numbers = #tpu.dot_dimension_numbers<[1], [0], [0], [1], [0, 0, 1, 1], [], []>} : vector<64x64xf32>, vector<64x2xf32>, vector<64x2xf32> -> vector<64x2xf32>
      %c0_27 = arith.constant 0 : index
      %c0_28 = arith.constant 0 : index
      %39 = vector.load %arg7[%c0_27, %c0_28] : memref<64x1xf32, #tpu.memory_space<vmem>>, vector<64x1xf32>
      %40 = vector.broadcast %39 : vector<64x1xf32> to vector<64x2xf32>
      %41 = arith.addf %38, %40 : vector<64x2xf32>
      %42 = arith.mulf %41, %41 : vector<64x2xf32>
      %cst_29 = arith.constant dense<0.000000e+00> : vector<2xf32>
      %43 = vector.multi_reduction <add>, %42, %cst_29 [0] : vector<64x2xf32> to vector<2xf32>
      %44 = vector.shape_cast %43 : vector<2xf32> to vector<1x2xf32>
      %c0_30 = arith.constant 0 : index
      %c0_31 = arith.constant 0 : index
      %45 = vector.load %arg8[%c0_30, %c0_31] : memref<8x64xf32, #tpu.memory_space<vmem>>, vector<8x64xf32>
      %cst_32 = arith.constant dense<0.000000e+00> : vector<8x2xf32>
      %46 = tpu.matmul %45, %41, %cst_32 {dimension_numbers = #tpu.dot_dimension_numbers<[1], [0], [0], [1], [0, 0, 1, 1], [], []>} : vector<8x64xf32>, vector<64x2xf32>, vector<8x2xf32> -> vector<8x2xf32>
      %cst_33 = arith.constant 2.000000e+00 : f32
      %47 = vector.broadcast %cst_33 : f32 to vector<8x2xf32>
      %48 = arith.mulf %47, %46 : vector<8x2xf32>
      %49 = vector.broadcast %44 : vector<1x2xf32> to vector<8x2xf32>
      %50 = arith.subf %49, %48 : vector<8x2xf32>
      %c0_34 = arith.constant 0 : index
      %c0_35 = arith.constant 0 : index
      %51 = vector.load %arg9[%c0_34, %c0_35] : memref<8x1xf32, #tpu.memory_space<vmem>>, vector<8x1xf32>
      %52 = vector.broadcast %51 : vector<8x1xf32> to vector<8x2xf32>
      %53 = arith.addf %50, %52 : vector<8x2xf32>
      %cst_36 = arith.constant 0.000000e+00 : f32
      %54 = vector.broadcast %cst_36 : f32 to vector<8x2xf32>
      %55 = arith.maximumf %53, %54 : vector<8x2xf32>
      %c0_37 = arith.constant 0 : index
      %c0_38 = arith.constant 0 : index
      %56 = vector.load %arg14[%c0_37, %c0_38] : memref<8x2xf32, #tpu.memory_space<vmem>>, vector<8x2xf32>
      %57 = arith.minimumf %56, %55 : vector<8x2xf32>
      %c0_39 = arith.constant 0 : index
      %c0_40 = arith.constant 0 : index
      %58 = vector.load %arg14[%c0_39, %c0_40] : memref<8x2xf32, #tpu.memory_space<vmem>>, vector<8x2xf32>
      tpu.vector_store %arg14[%c0_39, %c0_40], %57 {strides = array<i32>} : memref<8x2xf32, #tpu.memory_space<vmem>>, vector<8x2xf32>,
    } else {
    }
    %c3_i32 = arith.constant 3 : i32
    %26 = arith.cmpi eq, %arg1, %c3_i32 : i32
    %27 = arith.extui %26 : i1 to i32
    %c0_i32_15 = arith.constant 0 : i32
    %28 = arith.cmpi ne, %27, %c0_i32_15 : i32
    scf.if %28 {
      %c0_16 = arith.constant 0 : index
      %c0_17 = arith.constant 0 : index
      %29 = vector.load %arg14[%c0_16, %c0_17] : memref<8x2xf32, #tpu.memory_space<vmem>>, vector<8x2xf32>
      %cst_18 = arith.constant dense<0x7F800000> : vector<8xf32>
      %30 = vector.multi_reduction <minimumf>, %29, %cst_18 [1] : vector<8x2xf32> to vector<8xf32>
      %31 = vector.shape_cast %30 : vector<8xf32> to vector<8x1xf32>
      %cst_19 = arith.constant 1.000000e+00 : f32
      %32 = vector.broadcast %cst_19 : f32 to vector<8x1xf32>
      %33 = arith.addf %31, %32 : vector<8x1xf32>
      %cst_20 = arith.constant 9.99999974E-5 : f32
      %34 = vector.broadcast %cst_20 : f32 to vector<8x1xf32>
      %35 = arith.addf %31, %34 : vector<8x1xf32>
      %36 = arith.divf %33, %35 : vector<8x1xf32>
      %37 = math.log %36 : vector<8x1xf32>
      %c0_21 = arith.constant 0 : index
      %c0_22 = arith.constant 0 : index
      %38 = vector.load %arg10[%c0_21, %c0_22] : memref<4x8xf32, #tpu.memory_space<vmem>>, vector<4x8xf32>
      %cst_23 = arith.constant dense<0.000000e+00> : vector<4x1xf32>
      %39 = tpu.matmul %38, %37, %cst_23 {dimension_numbers = #tpu.dot_dimension_numbers<[1], [0], [0], [1], [0, 0, 1, 1], [], []>} : vector<4x8xf32>, vector<8x1xf32>, vector<4x1xf32> -> vector<4x1xf32>
      %c0_24 = arith.constant 0 : index
      %c0_25 = arith.constant 0 : index
      %c0_26 = arith.constant 0 : index
      %40 = vector.load %arg11[%c0_24, %c0_25, %c0_26] : memref<1x4x1xf32, #tpu.memory_space<vmem>>, vector<1x4x1xf32>
      %41 = vector.shape_cast %40 : vector<1x4x1xf32> to vector<4x1xf32>
      %42 = vector.shape_cast %39 : vector<4x1xf32> to vector<1x4x1xf32>
      tpu.vector_store %arg11[%c0_24, %c0_25, %c0_26], %42 {strides = array<i32>} : memref<1x4x1xf32, #tpu.memory_space<vmem>>, vector<1x4x1xf32>,
      %c0_27 = arith.constant 0 : index
      %c0_28 = arith.constant 0 : index
      %c0_29 = arith.constant 0 : index
      %43 = vector.load %arg12[%c0_27, %c0_28, %c0_29] : memref<1x8x1xf32, #tpu.memory_space<vmem>>, vector<1x8x1xf32>
      %44 = vector.shape_cast %43 : vector<1x8x1xf32> to vector<8x1xf32>
      %45 = vector.shape_cast %31 : vector<8x1xf32> to vector<1x8x1xf32>
      tpu.vector_store %arg12[%c0_27, %c0_28, %c0_29], %45 {strides = array<i32>} : memref<1x8x1xf32, #tpu.memory_space<vmem>>, vector<1x8x1xf32>,
    } else {
    }
    return
  }
  func.func @transform_0(%arg0: i32, %arg1: i32) -> (i32, i32, i32) {
    %c0_i32 = arith.constant 0 : i32
    %c0_i32_0 = arith.constant 0 : i32
    return %arg0, %c0_i32, %arg1 : i32, i32, i32
  }
  func.func @transform_1(%arg0: i32, %arg1: i32) -> (i32, i32) {
    %c0_i32 = arith.constant 0 : i32
    %c0_i32_0 = arith.constant 0 : i32
    %c0_i32_1 = arith.constant 0 : i32
    return %c0_i32, %c0_i32_0 : i32, i32
  }
  func.func @transform_2(%arg0: i32, %arg1: i32) -> (i32, i32) {
    %c0_i32 = arith.constant 0 : i32
    %c0_i32_0 = arith.constant 0 : i32
    %c0_i32_1 = arith.constant 0 : i32
    return %c0_i32, %c0_i32_0 : i32, i32
  }
  func.func @transform_3(%arg0: i32, %arg1: i32) -> (i32, i32) {
    %c0_i32 = arith.constant 0 : i32
    %c0_i32_0 = arith.constant 0 : i32
    %c0_i32_1 = arith.constant 0 : i32
    return %c0_i32, %c0_i32_0 : i32, i32
  }
  func.func @transform_4(%arg0: i32, %arg1: i32) -> (i32, i32) {
    %c0_i32 = arith.constant 0 : i32
    %c0_i32_0 = arith.constant 0 : i32
    %c0_i32_1 = arith.constant 0 : i32
    return %c0_i32, %c0_i32_0 : i32, i32
  }
  func.func @transform_5(%arg0: i32, %arg1: i32) -> (i32, i32) {
    %c0_i32 = arith.constant 0 : i32
    %c0_i32_0 = arith.constant 0 : i32
    %c0_i32_1 = arith.constant 0 : i32
    return %c0_i32, %c0_i32_0 : i32, i32
  }
  func.func @transform_6(%arg0: i32, %arg1: i32) -> (i32, i32) {
    %c0_i32 = arith.constant 0 : i32
    %c0_i32_0 = arith.constant 0 : i32
    %c0_i32_1 = arith.constant 0 : i32
    return %c0_i32, %c0_i32_0 : i32, i32
  }
  func.func @transform_7(%arg0: i32, %arg1: i32) -> (i32, i32) {
    %c0_i32 = arith.constant 0 : i32
    %c0_i32_0 = arith.constant 0 : i32
    %c0_i32_1 = arith.constant 0 : i32
    return %c0_i32, %c0_i32_0 : i32, i32
  }
  func.func @transform_8(%arg0: i32, %arg1: i32) -> (i32, i32) {
    %c0_i32 = arith.constant 0 : i32
    %c0_i32_0 = arith.constant 0 : i32
    %c0_i32_1 = arith.constant 0 : i32
    return %c0_i32, %c0_i32_0 : i32, i32
  }
  func.func @transform_9(%arg0: i32, %arg1: i32) -> (i32, i32, i32) {
    %c0_i32 = arith.constant 0 : i32
    %c0_i32_0 = arith.constant 0 : i32
    %c0_i32_1 = arith.constant 0 : i32
    return %arg0, %c0_i32, %c0_i32_0 : i32, i32, i32
  }
  func.func @transform_10(%arg0: i32, %arg1: i32) -> (i32, i32, i32) {
    %c0_i32 = arith.constant 0 : i32
    %c0_i32_0 = arith.constant 0 : i32
    %c0_i32_1 = arith.constant 0 : i32
    return %arg0, %c0_i32, %c0_i32_0 : i32, i32, i32
  }
}

</mosaic_0001>

<bundles_post_ra>
// kernel: _dpnet_forward.1
= control target key start
LH: loop header
LB: loop body
LE: loop exit
PB: predicated region body
PF: predicated region fallthrough
CT: control target
= control target key end

     0   :  { %s4612_s0 = inlined_call_operand.vmem [shape: f32[2,720,1024], index: 0, kind: input, shape index: {}]   ;;  %s4613_s1 = inlined_call_operand.vmem [shape: f32[256,2], index: 1, kind: input, shape index: {}]   ;;  %s4614_s2 = inlined_call_operand.vmem [shape: f32[64,720], index: 2, kind: input, shape index: {}]   ;;  %s4615_s3 = inlined_call_operand.vmem [shape: f32[64,1], index: 3, kind: input, shape index: {}]   ;;  %s4616_s4 = inlined_call_operand.vmem [shape: f32[64,64], index: 4, kind: input, shape index: {}]   ;;  %s4617_s5 = inlined_call_operand.vmem [shape: f32[64,1], index: 5, kind: input, shape index: {}]   ;;  %s4618_s6 = inlined_call_operand.vmem [shape: f32[8,64], index: 6, kind: input, shape index: {}]   ;;  %s4619_s7 = inlined_call_operand.vmem [shape: f32[8,1], index: 7, kind: input, shape index: {}]   ;;  %s4620_s8 = inlined_call_operand.vmem [shape: f32[4,8], index: 8, kind: input, shape index: {}]   ;;  %s4621_s9 = inlined_call_operand.vmem [shape: f32[2,4,1], index: 9, kind: output, shape index: {0}]   ;;  %s4622_s10 = inlined_call_operand.vmem [shape: f32[2,8,1], index: 10, kind: output, shape index: {1}]  }
   0x1   :  { %4629 = sst [smem:[#allocation48_spill]] %s4612_s0 }
   0x2   :  { %s3041_s13 = smov 0   ;;  %s3043_s14 = smov 0  }
   0x3   :  { %s3045_s15 = smov 0   ;;  %s3047_s16 = smov 0  }
   0x4   :  { %s3049_s17 = smov 0   ;;  %s3051_s18 = smov 0  }
   0x5   :  { %s3053_s19 = smov 0  }
   0x6 LB: > { %4630 = sst [smem:[#allocation5_spill]] %s2978_s18  ;;  %s30_s20 = sadd.s32 1, %s2974_s17  ;;  %s2982_s19 = sphi %s3053_s19, %s21_s19   ;;  %s2978_s18 = sphi %s3051_s18, %s4753_s18   ;;  %s2974_s17 = sphi %s3049_s17, %s4757_s17   ;;  %s2970_s16 = sphi %s3047_s16, %s4751_s16   ;;  %s2966_s15 = sphi %s3045_s15, %s4756_s15   ;;  %s2962_s14 = sphi %s3043_s14, %s4755_s14   ;;  %s2958_s13 = sphi %s3041_s13, %s4754_s13  }
   0x7   : > { %p31_p0 = scmp.ge.s32.totalorder %s30_s20, 4  ;;  %s33_s21 = sadd.s32 1, %s2978_s18 }
   0x8   : > { %p49_p1 = scmp.ne.s32.totalorder %s2962_s14, %s2958_s13  ;;  %p50_p2 = scmp.eq.s32.totalorder %s2982_s19, 0 }
   0x9   : > { %s4759_s20 = smov (%p31_p0, %s30_s20), 0  ;;  %s4761_s21 = smov (!%p31_p0, %s33_s21), %s2978_s18 }
   0xa   : > { %4631 = sst [smem:[#allocation6_spill]] %s4759_s20  ;;  %p51_p3 = por %p50_p2, %p49_p1 }
   0xb   : > { %p35_p4 = scmp.ge.s32.totalorder %s4761_s21, 2  ;;  %s38_s22 = ssub.s32 %s2974_s17, %s4759_s20 }
   0xc   : > { %s42_s25 = sadd.s32 1, %s2962_s14  ;;  %p2760_p6 = scmp.ge.s32.totalorder %s2982_s19, 8 }
   0xd   : > { %s4763_s21 = smov (%p35_p4, %s4761_s21), 0 }
   0xe   : > { %4632 = sst [smem:[#allocation7_spill]] %s4763_s21  ;;  %s37_s23 = ssub.s32 %s2978_s18, %s4763_s21 }
   0xf   : > { %s39_s24 = sor.u32 %s38_s22, %s37_s23  ;;  %319 = sbr.rel (%p2760_p6) target bundleno = 210 (0xd2), region = 48 }
  0x10   : > { %p40_p5 = scmp.eq.s32.totalorder %s39_s24, 0 }
  0x12   : > { %s3092_s26 = scalar_select %p40_p5, %s2962_s14, %s42_s25  }
  0x14   : > { %322 = sbr.rel (!%p51_p3) target bundleno = 210 (0xd2), region = 52  ;;  %s324_s27 = sand.u32 (%p51_p3), 1, %s2962_s14  }
  0x15   : > { %s2860_s28 = smul.u32 (%p51_p3), 1440, %s324_s27  ;;  %s2761_s29 = sshll.u32 (%p51_p3), %s2974_s17, 1 }
  0x16   : > { %s2861_s30 = smul.u32 (%p51_p3), 720, %s2978_s18  ;;  %s4633_s0 = sld [smem:[#allocation48_spill]] (%p51_p3) }
  0x17   : > { %s3106_s23 = scalar_lea.vmem (%p51_p3), [#allocation4], %s2860_s28 }
  0x18   : > { %s329_s11 = sadd.s32 (%p51_p3), %s2861_s30, %s2761_s29 }
  0x19   : > { %s2762_s12 = sshll.u32 %s329_s11, 3 }
  0x1c   : > { %s3101_s22 = scalar_lea.vmem %s4633_s0, %s2762_s12 }
  0x1d   : > { %v344_v0 = vld [vmem:[%s3101_s22] sm:$0xff]  ;;  %v346_v1 = vld [vmem:[%s3101_s22 + $0x8] sm:$0xff] }
  0x1e   : > { %v348_v2 = vld [vmem:[%s3101_s22 + $0x40] sm:$0xff]  ;;  %345 = vst [vmem:[%s3106_s23] sm:$0xff] %v344_v0  ;;  %v350_v3 = vld [vmem:[%s3101_s22 + $0x48] sm:$0xff] }
  0x1f   : > { %347 = vst [vmem:[%s3106_s23 + $0x8] sm:$0xff] %v346_v1  ;;  %v352_v4 = vld [vmem:[%s3101_s22 + $0x80] sm:$0xff]  ;;  %v354_v5 = vld [vmem:[%s3101_s22 + $0x88] sm:$0xff] }
  0x20   : > { %349 = vst [vmem:[%s3106_s23 + $0x10] sm:$0xff] %v348_v2  ;;  %v356_v6 = vld [vmem:[%s3101_s22 + $0xc0] sm:$0xff]  ;;  %v358_v7 = vld [vmem:[%s3101_s22 + $0xc8] sm:$0xff] }
  0x21   : > { %351 = vst [vmem:[%s3106_s23 + $0x18] sm:$0xff] %v350_v3  ;;  %v360_v8 = vld [vmem:[%s3101_s22 + $0x100] sm:$0xff]  ;;  %v362_v9 = vld [vmem:[%s3101_s22 + $0x108] sm:$0xff] }
  0x22   : > { %353 = vst [vmem:[%s3106_s23 + $0x20] sm:$0xff] %v352_v4  ;;  %v364_v10 = vld [vmem:[%s3101_s22 + $0x140] sm:$0xff]  ;;  %v366_v11 = vld [vmem:[%s3101_s22 + $0x148] sm:$0xff] }
  0x23   : > { %355 = vst [vmem:[%s3106_s23 + $0x28] sm:$0xff] %v354_v5  ;;  %v368_v12 = vld [vmem:[%s3101_s22 + $0x180] sm:$0xff]  ;;  %v370_v13 = vld [vmem:[%s3101_s22 + $0x188] sm:$0xff] }
  0x24   : > { %357 = vst [vmem:[%s3106_s23 + $0x30] sm:$0xff] %v356_v6  ;;  %v372_v14 = vld [vmem:[%s3101_s22 + $0x1c0] sm:$0xff]  ;;  %v374_v15 = vld [vmem:[%s3101_s22 + $0x1c8] sm:$0xff] }
  0x25   : > { %359 = vst [vmem:[%s3106_s23 + $0x38] sm:$0xff] %v358_v7  ;;  %v376_v16 = vld [vmem:[%s3101_s22 + $0x200] sm:$0xff]  ;;  %v378_v17 = vld [vmem:[%s3101_s22 + $0x208] sm:$0xff] }
  0x26   : > { %361 = vst [vmem:[%s3106_s23 + $0x40] sm:$0xff] %v360_v8  ;;  %v380_v18 = vld [vmem:[%s3101_s22 + $0x240] sm:$0xff]  ;;  %v382_v19 = vld [vmem:[%s3101_s22 + $0x248] sm:$0xff] }
  0x27   : > { %363 = vst [vmem:[%s3106_s23 + $0x48] sm:$0xff] %v362_v9  ;;  %v384_v20 = vld [vmem:[%s3101_s22 + $0x280] sm:$0xff]  ;;  %v386_v21 = vld [vmem:[%s3101_s22 + $0x288] sm:$0xff] }
  0x28   : > { %365 = vst [vmem:[%s3106_s23 + $0x50] sm:$0xff] %v364_v10  ;;  %v388_v22 = vld [vmem:[%s3101_s22 + $0x2c0] sm:$0xff]  ;;  %v390_v23 = vld [vmem:[%s3101_s22 + $0x2c8] sm:$0xff] }
  0x29   : > { %367 = vst [vmem:[%s3106_s23 + $0x58] sm:$0xff] %v366_v11  ;;  %v392_v24 = vld [vmem:[%s3101_s22 + $0x300] sm:$0xff]  ;;  %v394_v25 = vld [vmem:[%s3101_s22 + $0x308] sm:$0xff] }
  0x2a   : > { %369 = vst [vmem:[%s3106_s23 + $0x60] sm:$0xff] %v368_v12  ;;  %v396_v26 = vld [vmem:[%s3101_s22 + $0x340] sm:$0xff]  ;;  %v398_v27 = vld [vmem:[%s3101_s22 + $0x348] sm:$0xff] }
  0x2b   : > { %371 = vst [vmem:[%s3106_s23 + $0x68] sm:$0xff] %v370_v13  ;;  %v400_v28 = vld [vmem:[%s3101_s22 + $0x380] sm:$0xff]  ;;  %v402_v29 = vld [vmem:[%s3101_s22 + $0x388] sm:$0xff] }
  0x2c   : > { %373 = vst [vmem:[%s3106_s23 + $0x70] sm:$0xff] %v372_v14  ;;  %v404_v30 = vld [vmem:[%s3101_s22 + $0x3c0] sm:$0xff]  ;;  %v406_v31 = vld [vmem:[%s3101_s22 + $0x3c8] sm:$0xff] }
  0x2d   : > { %375 = vst [vmem:[%s3106_s23 + $0x78] sm:$0xff] %v374_v15  ;;  %v408_v32 = vld [vmem:[%s3101_s22 + $0x400] sm:$0xff]  ;;  %v410_v33 = vld [vmem:[%s3101_s22 + $0x408] sm:$0xff] }
  0x2e   : > { %377 = vst [vmem:[%s3106_s23 + $0x80] sm:$0xff] %v376_v16  ;;  %v412_v34 = vld [vmem:[%s3101_s22 + $0x440] sm:$0xff]  ;;  %v414_v35 = vld [vmem:[%s3101_s22 + $0x448] sm:$0xff] }
  0x2f   : > { %379 = vst [vmem:[%s3106_s23 + $0x88] sm:$0xff] %v378_v17  ;;  %v416_v36 = vld [vmem:[%s3101_s22 + $0x480] sm:$0xff]  ;;  %v418_v37 = vld [vmem:[%s3101_s22 + $0x488] sm:$0xff] }
  0x30   : > { %381 = vst [vmem:[%s3106_s23 + $0x90] sm:$0xff] %v380_v18  ;;  %v420_v38 = vld [vmem:[%s3101_s22 + $0x4c0] sm:$0xff]  ;;  %v422_v39 = vld [vmem:[%s3101_s22 + $0x4c8] sm:$0xff] }
  0x31   : > { %383 = vst [vmem:[%s3106_s23 + $0x98] sm:$0xff] %v382_v19  ;;  %v424_v40 = vld [vmem:[%s3101_s22 + $0x500] sm:$0xff]  ;;  %v426_v41 = vld [vmem:[%s3101_s22 + $0x508] sm:$0xff] }
  0x32   : > { %385 = vst [vmem:[%s3106_s23 + $0xa0] sm:$0xff] %v384_v20  ;;  %v428_v42 = vld [vmem:[%s3101_s22 + $0x540] sm:$0xff]  ;;  %v430_v43 = vld [vmem:[%s3101_s22 + $0x548] sm:$0xff] }
  0x33   : > { %387 = vst [vmem:[%s3106_s23 + $0xa8] sm:$0xff] %v386_v21  ;;  %v432_v44 = vld [vmem:[%s3101_s22 + $0x580] sm:$0xff]  ;;  %v434_v45 = vld [vmem:[%s3101_s22 + $0x588] sm:$0xff] }
  0x34   : > { %389 = vst [vmem:[%s3106_s23 + $0xb0] sm:$0xff] %v388_v22  ;;  %v436_v46 = vld [vmem:[%s3101_s22 + $0x5c0] sm:$0xff]  ;;  %v438_v47 = vld [vmem:[%s3101_s22 + $0x5c8] sm:$0xff] }
  0x35   : > { %391 = vst [vmem:[%s3106_s23 + $0xb8] sm:$0xff] %v390_v23  ;;  %v440_v48 = vld [vmem:[%s3101_s22 + $0x600] sm:$0xff]  ;;  %v442_v49 = vld [vmem:[%s3101_s22 + $0x608] sm:$0xff] }
  0x36   : > { %393 = vst [vmem:[%s3106_s23 + $0xc0] sm:$0xff] %v392_v24  ;;  %v444_v50 = vld [vmem:[%s3101_s22 + $0x640] sm:$0xff]  ;;  %v446_v51 = vld [vmem:[%s3101_s22 + $0x648] sm:$0xff] }
  0x37   : > { %395 = vst [vmem:[%s3106_s23 + $0xc8] sm:$0xff] %v394_v25  ;;  %v448_v52 = vld [vmem:[%s3101_s22 + $0x680] sm:$0xff]  ;;  %v450_v53 = vld [vmem:[%s3101_s22 + $0x688] sm:$0xff] }
  0x38   : > { %397 = vst [vmem:[%s3106_s23 + $0xd0] sm:$0xff] %v396_v26  ;;  %v452_v54 = vld [vmem:[%s3101_s22 + $0x6c0] sm:$0xff]  ;;  %v454_v55 = vld [vmem:[%s3101_s22 + $0x6c8] sm:$0xff] }
  0x39   : > { %399 = vst [vmem:[%s3106_s23 + $0xd8] sm:$0xff] %v398_v27  ;;  %v456_v56 = vld [vmem:[%s3101_s22 + $0x700] sm:$0xff]  ;;  %v458_v57 = vld [vmem:[%s3101_s22 + $0x708] sm:$0xff] }
  0x3a   : > { %401 = vst [vmem:[%s3106_s23 + $0xe0] sm:$0xff] %v400_v28  ;;  %v460_v58 = vld [vmem:[%s3101_s22 + $0x740] sm:$0xff]  ;;  %v462_v59 = vld [vmem:[%s3101_s22 + $0x748] sm:$0xff] }
  0x3b   : > { %403 = vst [vmem:[%s3106_s23 + $0xe8] sm:$0xff] %v402_v29  ;;  %v464_v60 = vld [vmem:[%s3101_s22 + $0x780] sm:$0xff]  ;;  %v466_v61 = vld [vmem:[%s3101_s22 + $0x788] sm:$0xff] }
  0x3c   : > { %405 = vst [vmem:[%s3106_s23 + $0xf0] sm:$0xff] %v404_v30  ;;  %v468_v62 = vld [vmem:[%s3101_s22 + $0x7c0] sm:$0xff]  ;;  %v470_v63 = vld [vmem:[%s3101_s22 + $0x7c8] sm:$0xff] }
  0x3d   : > { %407 = vst [vmem:[%s3106_s23 + $0xf8] sm:$0xff] %v406_v31  ;;  %v472_v0 = vld [vmem:[%s3101_s22 + $0x800] sm:$0xff]  ;;  %v474_v1 = vld [vmem:[%s3101_s22 + $0x808] sm:$0xff] }
  0x3e   : > { %409 = vst [vmem:[%s3106_s23 + $0x100] sm:$0xff] %v408_v32  ;;  %v476_v2 = vld [vmem:[%s3101_s22 + $0x840] sm:$0xff]  ;;  %v478_v3 = vld [vmem:[%s3101_s22 + $0x848] sm:$0xff] }
  0x3f   : > { %411 = vst [vmem:[%s3106_s23 + $0x108] sm:$0xff] %v410_v33  ;;  %v480_v4 = vld [vmem:[%s3101_s22 + $0x880] sm:$0xff]  ;;  %v482_v5 = vld [vmem:[%s3101_s22 + $0x888] sm:$0xff] }
  0x40   : > { %413 = vst [vmem:[%s3106_s23 + $0x110] sm:$0xff] %v412_v34  ;;  %v484_v6 = vld [vmem:[%s3101_s22 + $0x8c0] sm:$0xff]  ;;  %v486_v7 = vld [vmem:[%s3101_s22 + $0x8c8] sm:$0xff] }
  0x41   : > { %415 = vst [vmem:[%s3106_s23 + $0x118] sm:$0xff] %v414_v35  ;;  %v488_v8 = vld [vmem:[%s3101_s22 + $0x900] sm:$0xff]  ;;  %v490_v9 = vld [vmem:[%s3101_s22 + $0x908] sm:$0xff] }
  0x42   : > { %417 = vst [vmem:[%s3106_s23 + $0x120] sm:$0xff] %v416_v36  ;;  %v492_v10 = vld [vmem:[%s3101_s22 + $0x940] sm:$0xff]  ;;  %v494_v11 = vld [vmem:[%s3101_s22 + $0x948] sm:$0xff] }
  0x43   : > { %419 = vst [vmem:[%s3106_s23 + $0x128] sm:$0xff] %v418_v37  ;;  %v496_v12 = vld [vmem:[%s3101_s22 + $0x980] sm:$0xff]  ;;  %v498_v13 = vld [vmem:[%s3101_s22 + $0x988] sm:$0xff] }
  0x44   : > { %421 = vst [vmem:[%s3106_s23 + $0x130] sm:$0xff] %v420_v38  ;;  %v500_v14 = vld [vmem:[%s3101_s22 + $0x9c0] sm:$0xff]  ;;  %v502_v15 = vld [vmem:[%s3101_s22 + $0x9c8] sm:$0xff] }
  0x45   : > { %423 = vst [vmem:[%s3106_s23 + $0x138] sm:$0xff] %v422_v39  ;;  %v504_v16 = vld [vmem:[%s3101_s22 + $0xa00] sm:$0xff]  ;;  %v506_v17 = vld [vmem:[%s3101_s22 + $0xa08] sm:$0xff] }
  0x46   : > { %425 = vst [vmem:[%s3106_s23 + $0x140] sm:$0xff] %v424_v40  ;;  %v508_v18 = vld [vmem:[%s3101_s22 + $0xa40] sm:$0xff]  ;;  %v510_v19 = vld [vmem:[%s3101_s22 + $0xa48] sm:$0xff] }
  0x47   : > { %427 = vst [vmem:[%s3106_s23 + $0x148] sm:$0xff] %v426_v41  ;;  %v512_v20 = vld [vmem:[%s3101_s22 + $0xa80] sm:$0xff]  ;;  %v514_v21 = vld [vmem:[%s3101_s22 + $0xa88] sm:$0xff] }
  0x48   : > { %429 = vst [vmem:[%s3106_s23 + $0x150] sm:$0xff] %v428_v42  ;;  %v516_v22 = vld [vmem:[%s3101_s22 + $0xac0] sm:$0xff]  ;;  %v518_v23 = vld [vmem:[%s3101_s22 + $0xac8] sm:$0xff] }
  0x49   : > { %431 = vst [vmem:[%s3106_s23 + $0x158] sm:$0xff] %v430_v43  ;;  %v520_v24 = vld [vmem:[%s3101_s22 + $0xb00] sm:$0xff]  ;;  %v522_v25 = vld [vmem:[%s3101_s22 + $0xb08] sm:$0xff] }
  0x4a   : > { %433 = vst [vmem:[%s3106_s23 + $0x160] sm:$0xff] %v432_v44  ;;  %v524_v26 = vld [vmem:[%s3101_s22 + $0xb40] sm:$0xff]  ;;  %v526_v27 = vld [vmem:[%s3101_s22 + $0xb48] sm:$0xff] }
  0x4b   : > { %435 = vst [vmem:[%s3106_s23 + $0x168] sm:$0xff] %v434_v45  ;;  %v528_v28 = vld [vmem:[%s3101_s22 + $0xb80] sm:$0xff]  ;;  %v530_v29 = vld [vmem:[%s3101_s22 + $0xb88] sm:$0xff] }
  0x4c   : > { %437 = vst [vmem:[%s3106_s23 + $0x170] sm:$0xff] %v436_v46  ;;  %v532_v30 = vld [vmem:[%s3101_s22 + $0xbc0] sm:$0xff]  ;;  %v534_v31 = vld [vmem:[%s3101_s22 + $0xbc8] sm:$0xff] }
  0x4d   : > { %439 = vst [vmem:[%s3106_s23 + $0x178] sm:$0xff] %v438_v47  ;;  %v536_v32 = vld [vmem:[%s3101_s22 + $0xc00] sm:$0xff]  ;;  %v538_v33 = vld [vmem:[%s3101_s22 + $0xc08] sm:$0xff] }
  0x4e   : > { %441 = vst [vmem:[%s3106_s23 + $0x180] sm:$0xff] %v440_v48  ;;  %v540_v34 = vld [vmem:[%s3101_s22 + $0xc40] sm:$0xff]  ;;  %v542_v35 = vld [vmem:[%s3101_s22 + $0xc48] sm:$0xff] }
  0x4f   : > { %443 = vst [vmem:[%s3106_s23 + $0x188] sm:$0xff] %v442_v49  ;;  %v544_v36 = vld [vmem:[%s3101_s22 + $0xc80] sm:$0xff]  ;;  %v546_v37 = vld [vmem:[%s3101_s22 + $0xc88] sm:$0xff] }
  0x50   : > { %445 = vst [vmem:[%s3106_s23 + $0x190] sm:$0xff] %v444_v50  ;;  %v548_v38 = vld [vmem:[%s3101_s22 + $0xcc0] sm:$0xff]  ;;  %v550_v39 = vld [vmem:[%s3101_s22 + $0xcc8] sm:$0xff] }
  0x51   : > { %447 = vst [vmem:[%s3106_s23 + $0x198] sm:$0xff] %v446_v51  ;;  %v552_v40 = vld [vmem:[%s3101_s22 + $0xd00] sm:$0xff]  ;;  %v554_v41 = vld [vmem:[%s3101_s22 + $0xd08] sm:$0xff] }
  0x52   : > { %449 = vst [vmem:[%s3106_s23 + $0x1a0] sm:$0xff] %v448_v52  ;;  %v556_v42 = vld [vmem:[%s3101_s22 + $0xd40] sm:$0xff]  ;;  %v558_v43 = vld [vmem:[%s3101_s22 + $0xd48] sm:$0xff] }
  0x53   : > { %451 = vst [vmem:[%s3106_s23 + $0x1a8] sm:$0xff] %v450_v53  ;;  %v560_v44 = vld [vmem:[%s3101_s22 + $0xd80] sm:$0xff]  ;;  %v562_v45 = vld [vmem:[%s3101_s22 + $0xd88] sm:$0xff] }
  0x54   : > { %453 = vst [vmem:[%s3106_s23 + $0x1b0] sm:$0xff] %v452_v54  ;;  %v564_v46 = vld [vmem:[%s3101_s22 + $0xdc0] sm:$0xff]  ;;  %v566_v47 = vld [vmem:[%s3101_s22 + $0xdc8] sm:$0xff] }
  0x55   : > { %455 = vst [vmem:[%s3106_s23 + $0x1b8] sm:$0xff] %v454_v55  ;;  %v568_v48 = vld [vmem:[%s3101_s22 + $0xe00] sm:$0xff]  ;;  %v570_v49 = vld [vmem:[%s3101_s22 + $0xe08] sm:$0xff] }
  0x56   : > { %457 = vst [vmem:[%s3106_s23 + $0x1c0] sm:$0xff] %v456_v56  ;;  %v572_v50 = vld [vmem:[%s3101_s22 + $0xe40] sm:$0xff]  ;;  %v574_v51 = vld [vmem:[%s3101_s22 + $0xe48] sm:$0xff] }
  0x57   : > { %459 = vst [vmem:[%s3106_s23 + $0x1c8] sm:$0xff] %v458_v57  ;;  %v576_v52 = vld [vmem:[%s3101_s22 + $0xe80] sm:$0xff]  ;;  %v578_v53 = vld [vmem:[%s3101_s22 + $0xe88] sm:$0xff] }
  0x58   : > { %461 = vst [vmem:[%s3106_s23 + $0x1d0] sm:$0xff] %v460_v58  ;;  %v580_v54 = vld [vmem:[%s3101_s22 + $0xec0] sm:$0xff]  ;;  %v582_v55 = vld [vmem:[%s3101_s22 + $0xec8] sm:$0xff] }
  0x59   : > { %463 = vst [vmem:[%s3106_s23 + $0x1d8] sm:$0xff] %v462_v59  ;;  %v584_v56 = vld [vmem:[%s3101_s22 + $0xf00] sm:$0xff]  ;;  %v586_v57 = vld [vmem:[%s3101_s22 + $0xf08] sm:$0xff] }
  0x5a   : > { %465 = vst [vmem:[%s3106_s23 + $0x1e0] sm:$0xff] %v464_v60  ;;  %v588_v58 = vld [vmem:[%s3101_s22 + $0xf40] sm:$0xff]  ;;  %v590_v59 = vld [vmem:[%s3101_s22 + $0xf48] sm:$0xff] }
  0x5b   : > { %467 = vst [vmem:[%s3106_s23 + $0x1e8] sm:$0xff] %v466_v61  ;;  %v592_v60 = vld [vmem:[%s3101_s22 + $0xf80] sm:$0xff]  ;;  %v594_v61 = vld [vmem:[%s3101_s22 + $0xf88] sm:$0xff] }
  0x5c   : > { %469 = vst [vmem:[%s3106_s23 + $0x1f0] sm:$0xff] %v468_v62  ;;  %v596_v62 = vld [vmem:[%s3101_s22 + $0xfc0] sm:$0xff] }
  0x5d   : > { %471 = vst [vmem:[%s3106_s23 + $0x1f8] sm:$0xff] %v470_v63  ;;  %v598_v63 = vld [vmem:[%s3101_s22 + $0xfc8] sm:$0xff] }
  0x5e   : > { %473 = vst [vmem:[%s3106_s23 + $0x200] sm:$0xff] %v472_v0  ;;  %v600_v0 = vld [vmem:[%s3101_s22 + $0x1000] sm:$0xff] }
  0x5f   : > { %475 = vst [vmem:[%s3106_s23 + $0x208] sm:$0xff] %v474_v1  ;;  %v602_v1 = vld [vmem:[%s3101_s22 + $0x1008] sm:$0xff] }
  0x60   : > { %477 = vst [vmem:[%s3106_s23 + $0x210] sm:$0xff] %v476_v2  ;;  %v604_v2 = vld [vmem:[%s3101_s22 + $0x1040] sm:$0xff] }
  0x61   : > { %479 = vst [vmem:[%s3106_s23 + $0x218] sm:$0xff] %v478_v3  ;;  %v606_v3 = vld [vmem:[%s3101_s22 + $0x1048] sm:$0xff] }
  0x62   : > { %481 = vst [vmem:[%s3106_s23 + $0x220] sm:$0xff] %v480_v4  ;;  %v608_v4 = vld [vmem:[%s3101_s22 + $0x1080] sm:$0xff] }
  0x63   : > { %483 = vst [vmem:[%s3106_s23 + $0x228] sm:$0xff] %v482_v5  ;;  %v610_v5 = vld [vmem:[%s3101_s22 + $0x1088] sm:$0xff] }
  0x64   : > { %485 = vst [vmem:[%s3106_s23 + $0x230] sm:$0xff] %v484_v6  ;;  %v612_v6 = vld [vmem:[%s3101_s22 + $0x10c0] sm:$0xff] }
  0x65   : > { %487 = vst [vmem:[%s3106_s23 + $0x238] sm:$0xff] %v486_v7  ;;  %v614_v7 = vld [vmem:[%s3101_s22 + $0x10c8] sm:$0xff] }
  0x66   : > { %489 = vst [vmem:[%s3106_s23 + $0x240] sm:$0xff] %v488_v8  ;;  %v616_v8 = vld [vmem:[%s3101_s22 + $0x1100] sm:$0xff] }
  0x67   : > { %491 = vst [vmem:[%s3106_s23 + $0x248] sm:$0xff] %v490_v9  ;;  %v618_v9 = vld [vmem:[%s3101_s22 + $0x1108] sm:$0xff] }
  0x68   : > { %493 = vst [vmem:[%s3106_s23 + $0x250] sm:$0xff] %v492_v10  ;;  %v620_v10 = vld [vmem:[%s3101_s22 + $0x1140] sm:$0xff] }
  0x69   : > { %495 = vst [vmem:[%s3106_s23 + $0x258] sm:$0xff] %v494_v11  ;;  %v622_v11 = vld [vmem:[%s3101_s22 + $0x1148] sm:$0xff] }
  0x6a   : > { %497 = vst [vmem:[%s3106_s23 + $0x260] sm:$0xff] %v496_v12  ;;  %v624_v12 = vld [vmem:[%s3101_s22 + $0x1180] sm:$0xff] }
  0x6b   : > { %499 = vst [vmem:[%s3106_s23 + $0x268] sm:$0xff] %v498_v13  ;;  %v626_v13 = vld [vmem:[%s3101_s22 + $0x1188] sm:$0xff] }
  0x6c   : > { %501 = vst [vmem:[%s3106_s23 + $0x270] sm:$0xff] %v500_v14  ;;  %v628_v14 = vld [vmem:[%s3101_s22 + $0x11c0] sm:$0xff] }
  0x6d   : > { %503 = vst [vmem:[%s3106_s23 + $0x278] sm:$0xff] %v502_v15  ;;  %v630_v15 = vld [vmem:[%s3101_s22 + $0x11c8] sm:$0xff] }
  0x6e   : > { %505 = vst [vmem:[%s3106_s23 + $0x280] sm:$0xff] %v504_v16  ;;  %v632_v16 = vld [vmem:[%s3101_s22 + $0x1200] sm:$0xff] }
  0x6f   : > { %507 = vst [vmem:[%s3106_s23 + $0x288] sm:$0xff] %v506_v17  ;;  %v634_v17 = vld [vmem:[%s3101_s22 + $0x1208] sm:$0xff] }
  0x70   : > { %509 = vst [vmem:[%s3106_s23 + $0x290] sm:$0xff] %v508_v18  ;;  %v636_v18 = vld [vmem:[%s3101_s22 + $0x1240] sm:$0xff] }
  0x71   : > { %511 = vst [vmem:[%s3106_s23 + $0x298] sm:$0xff] %v510_v19  ;;  %v638_v19 = vld [vmem:[%s3101_s22 + $0x1248] sm:$0xff] }
  0x72   : > { %513 = vst [vmem:[%s3106_s23 + $0x2a0] sm:$0xff] %v512_v20  ;;  %v640_v20 = vld [vmem:[%s3101_s22 + $0x1280] sm:$0xff] }
  0x73   : > { %515 = vst [vmem:[%s3106_s23 + $0x2a8] sm:$0xff] %v514_v21  ;;  %v642_v21 = vld [vmem:[%s3101_s22 + $0x1288] sm:$0xff] }
  0x74   : > { %517 = vst [vmem:[%s3106_s23 + $0x2b0] sm:$0xff] %v516_v22  ;;  %v644_v22 = vld [vmem:[%s3101_s22 + $0x12c0] sm:$0xff] }
  0x75   : > { %519 = vst [vmem:[%s3106_s23 + $0x2b8] sm:$0xff] %v518_v23  ;;  %v646_v23 = vld [vmem:[%s3101_s22 + $0x12c8] sm:$0xff] }
  0x76   : > { %521 = vst [vmem:[%s3106_s23 + $0x2c0] sm:$0xff] %v520_v24  ;;  %v648_v24 = vld [vmem:[%s3101_s22 + $0x1300] sm:$0xff] }
  0x77   : > { %523 = vst [vmem:[%s3106_s23 + $0x2c8] sm:$0xff] %v522_v25  ;;  %v650_v25 = vld [vmem:[%s3101_s22 + $0x1308] sm:$0xff] }
  0x78   : > { %525 = vst [vmem:[%s3106_s23 + $0x2d0] sm:$0xff] %v524_v26  ;;  %v652_v26 = vld [vmem:[%s3101_s22 + $0x1340] sm:$0xff] }
  0x79   : > { %527 = vst [vmem:[%s3106_s23 + $0x2d8] sm:$0xff] %v526_v27  ;;  %v654_v27 = vld [vmem:[%s3101_s22 + $0x1348] sm:$0xff] }
  0x7a   : > { %529 = vst [vmem:[%s3106_s23 + $0x2e0] sm:$0xff] %v528_v28  ;;  %v656_v28 = vld [vmem:[%s3101_s22 + $0x1380] sm:$0xff] }
  0x7b   : > { %531 = vst [vmem:[%s3106_s23 + $0x2e8] sm:$0xff] %v530_v29  ;;  %v658_v29 = vld [vmem:[%s3101_s22 + $0x1388] sm:$0xff] }
  0x7c   : > { %533 = vst [vmem:[%s3106_s23 + $0x2f0] sm:$0xff] %v532_v30  ;;  %v660_v30 = vld [vmem:[%s3101_s22 + $0x13c0] sm:$0xff] }
  0x7d   : > { %535 = vst [vmem:[%s3106_s23 + $0x2f8] sm:$0xff] %v534_v31  ;;  %v662_v31 = vld [vmem:[%s3101_s22 + $0x13c8] sm:$0xff] }
  0x7e   : > { %537 = vst [vmem:[%s3106_s23 + $0x300] sm:$0xff] %v536_v32  ;;  %v664_v32 = vld [vmem:[%s3101_s22 + $0x1400] sm:$0xff] }
  0x7f   : > { %539 = vst [vmem:[%s3106_s23 + $0x308] sm:$0xff] %v538_v33  ;;  %v666_v33 = vld [vmem:[%s3101_s22 + $0x1408] sm:$0xff] }
  0x80   : > { %541 = vst [vmem:[%s3106_s23 + $0x310] sm:$0xff] %v540_v34  ;;  %v668_v34 = vld [vmem:[%s3101_s22 + $0x1440] sm:$0xff] }
  0x81   : > { %543 = vst [vmem:[%s3106_s23 + $0x318] sm:$0xff] %v542_v35  ;;  %v670_v35 = vld [vmem:[%s3101_s22 + $0x1448] sm:$0xff] }
  0x82   : > { %545 = vst [vmem:[%s3106_s23 + $0x320] sm:$0xff] %v544_v36  ;;  %v672_v36 = vld [vmem:[%s3101_s22 + $0x1480] sm:$0xff] }
  0x83   : > { %547 = vst [vmem:[%s3106_s23 + $0x328] sm:$0xff] %v546_v37  ;;  %v674_v37 = vld [vmem:[%s3101_s22 + $0x1488] sm:$0xff] }
  0x84   : > { %549 = vst [vmem:[%s3106_s23 + $0x330] sm:$0xff] %v548_v38  ;;  %v676_v38 = vld [vmem:[%s3101_s22 + $0x14c0] sm:$0xff] }
  0x85   : > { %551 = vst [vmem:[%s3106_s23 + $0x338] sm:$0xff] %v550_v39  ;;  %v678_v39 = vld [vmem:[%s3101_s22 + $0x14c8] sm:$0xff] }
  0x86   : > { %553 = vst [vmem:[%s3106_s23 + $0x340] sm:$0xff] %v552_v40  ;;  %v680_v40 = vld [vmem:[%s3101_s22 + $0x1500] sm:$0xff] }
  0x87   : > { %555 = vst [vmem:[%s3106_s23 + $0x348] sm:$0xff] %v554_v41  ;;  %v682_v41 = vld [vmem:[%s3101_s22 + $0x1508] sm:$0xff] }
  0x88   : > { %557 = vst [vmem:[%s3106_s23 + $0x350] sm:$0xff] %v556_v42  ;;  %v684_v42 = vld [vmem:[%s3101_s22 + $0x1540] sm:$0xff] }
  0x89   : > { %559 = vst [vmem:[%s3106_s23 + $0x358] sm:$0xff] %v558_v43  ;;  %v686_v43 = vld [vmem:[%s3101_s22 + $0x1548] sm:$0xff] }
  0x8a   : > { %561 = vst [vmem:[%s3106_s23 + $0x360] sm:$0xff] %v560_v44  ;;  %v688_v44 = vld [vmem:[%s3101_s22 + $0x1580] sm:$0xff] }
  0x8b   : > { %563 = vst [vmem:[%s3106_s23 + $0x368] sm:$0xff] %v562_v45  ;;  %v690_v45 = vld [vmem:[%s3101_s22 + $0x1588] sm:$0xff] }
  0x8c   : > { %565 = vst [vmem:[%s3106_s23 + $0x370] sm:$0xff] %v564_v46  ;;  %v692_v46 = vld [vmem:[%s3101_s22 + $0x15c0] sm:$0xff] }
  0x8d   : > { %567 = vst [vmem:[%s3106_s23 + $0x378] sm:$0xff] %v566_v47  ;;  %v694_v47 = vld [vmem:[%s3101_s22 + $0x15c8] sm:$0xff] }
  0x8e   : > { %569 = vst [vmem:[%s3106_s23 + $0x380] sm:$0xff] %v568_v48  ;;  %v696_v48 = vld [vmem:[%s3101_s22 + $0x1600] sm:$0xff] }
  0x8f   : > { %571 = vst [vmem:[%s3106_s23 + $0x388] sm:$0xff] %v570_v49  ;;  %v698_v49 = vld [vmem:[%s3101_s22 + $0x1608] sm:$0xff] }
  0x90   : > { %573 = vst [vmem:[%s3106_s23 + $0x390] sm:$0xff] %v572_v50  ;;  %v700_v50 = vld [vmem:[%s3101_s22 + $0x1640] sm:$0xff] }
  0x91   : > { %575 = vst [vmem:[%s3106_s23 + $0x398] sm:$0xff] %v574_v51  ;;  %v702_v51 = vld [vmem:[%s3101_s22 + $0x1648] sm:$0xff] }
  0x92   : > { %577 = vst [vmem:[%s3106_s23 + $0x3a0] sm:$0xff] %v576_v52 }
  0x93   : > { %579 = vst [vmem:[%s3106_s23 + $0x3a8] sm:$0xff] %v578_v53 }
  0x94   : > { %581 = vst [vmem:[%s3106_s23 + $0x3b0] sm:$0xff] %v580_v54 }
  0x95   : > { %583 = vst [vmem:[%s3106_s23 + $0x3b8] sm:$0xff] %v582_v55 }
  0x96   : > { %585 = vst [vmem:[%s3106_s23 + $0x3c0] sm:$0xff] %v584_v56 }
  0x97   : > { %587 = vst [vmem:[%s3106_s23 + $0x3c8] sm:$0xff] %v586_v57 }
  0x98   : > { %589 = vst [vmem:[%s3106_s23 + $0x3d0] sm:$0xff] %v588_v58 }
  0x99   : > { %591 = vst [vmem:[%s3106_s23 + $0x3d8] sm:$0xff] %v590_v59 }
  0x9a   : > { %593 = vst [vmem:[%s3106_s23 + $0x3e0] sm:$0xff] %v592_v60 }
  0x9b   : > { %595 = vst [vmem:[%s3106_s23 + $0x3e8] sm:$0xff] %v594_v61 }
  0x9c   : > { %597 = vst [vmem:[%s3106_s23 + $0x3f0] sm:$0xff] %v596_v62 }
  0x9d   : > { %599 = vst [vmem:[%s3106_s23 + $0x3f8] sm:$0xff] %v598_v63 }
  0x9e   : > { %601 = vst [vmem:[%s3106_s23 + $0x400] sm:$0xff] %v600_v0 }
  0x9f   : > { %603 = vst [vmem:[%s3106_s23 + $0x408] sm:$0xff] %v602_v1 }
  0xa0   : > { %605 = vst [vmem:[%s3106_s23 + $0x410] sm:$0xff] %v604_v2 }
  0xa1   : > { %607 = vst [vmem:[%s3106_s23 + $0x418] sm:$0xff] %v606_v3 }
  0xa2   : > { %609 = vst [vmem:[%s3106_s23 + $0x420] sm:$0xff] %v608_v4 }
  0xa3   : > { %611 = vst [vmem:[%s3106_s23 + $0x428] sm:$0xff] %v610_v5 }
  0xa4   : > { %613 = vst [vmem:[%s3106_s23 + $0x430] sm:$0xff] %v612_v6 }
  0xa5   : > { %615 = vst [vmem:[%s3106_s23 + $0x438] sm:$0xff] %v614_v7 }
  0xa6   : > { %617 = vst [vmem:[%s3106_s23 + $0x440] sm:$0xff] %v616_v8 }
  0xa7   : > { %619 = vst [vmem:[%s3106_s23 + $0x448] sm:$0xff] %v618_v9 }
  0xa8   : > { %621 = vst [vmem:[%s3106_s23 + $0x450] sm:$0xff] %v620_v10 }
  0xa9   : > { %623 = vst [vmem:[%s3106_s23 + $0x458] sm:$0xff] %v622_v11 }
  0xaa   : > { %625 = vst [vmem:[%s3106_s23 + $0x460] sm:$0xff] %v624_v12 }
  0xab   : > { %627 = vst [vmem:[%s3106_s23 + $0x468] sm:$0xff] %v626_v13 }
  0xac   : > { %629 = vst [vmem:[%s3106_s23 + $0x470] sm:$0xff] %v628_v14 }
  0xad   : > { %631 = vst [vmem:[%s3106_s23 + $0x478] sm:$0xff] %v630_v15 }
  0xae   : > { %633 = vst [vmem:[%s3106_s23 + $0x480] sm:$0xff] %v632_v16 }
  0xaf   : > { %635 = vst [vmem:[%s3106_s23 + $0x488] sm:$0xff] %v634_v17 }
  0xb0   : > { %637 = vst [vmem:[%s3106_s23 + $0x490] sm:$0xff] %v636_v18 }
  0xb1   : > { %639 = vst [vmem:[%s3106_s23 + $0x498] sm:$0xff] %v638_v19 }
  0xb2   : > { %641 = vst [vmem:[%s3106_s23 + $0x4a0] sm:$0xff] %v640_v20 }
  0xb3   : > { %643 = vst [vmem:[%s3106_s23 + $0x4a8] sm:$0xff] %v642_v21 }
  0xb4   : > { %645 = vst [vmem:[%s3106_s23 + $0x4b0] sm:$0xff] %v644_v22 }
  0xb5   : > { %647 = vst [vmem:[%s3106_s23 + $0x4b8] sm:$0xff] %v646_v23 }
  0xb6   : > { %649 = vst [vmem:[%s3106_s23 + $0x4c0] sm:$0xff] %v648_v24 }
  0xb7   : > { %651 = vst [vmem:[%s3106_s23 + $0x4c8] sm:$0xff] %v650_v25 }
  0xb8   : > { %653 = vst [vmem:[%s3106_s23 + $0x4d0] sm:$0xff] %v652_v26 }
  0xb9   : > { %655 = vst [vmem:[%s3106_s23 + $0x4d8] sm:$0xff] %v654_v27 }
  0xba   : > { %657 = vst [vmem:[%s3106_s23 + $0x4e0] sm:$0xff] %v656_v28 }
  0xbb   : > { %659 = vst [vmem:[%s3106_s23 + $0x4e8] sm:$0xff] %v658_v29 }
  0xbc   : > { %661 = vst [vmem:[%s3106_s23 + $0x4f0] sm:$0xff] %v660_v30 }
  0xbd   : > { %663 = vst [vmem:[%s3106_s23 + $0x4f8] sm:$0xff] %v662_v31 }
  0xbe   : > { %665 = vst [vmem:[%s3106_s23 + $0x500] sm:$0xff] %v664_v32 }
  0xbf   : > { %667 = vst [vmem:[%s3106_s23 + $0x508] sm:$0xff] %v666_v33 }
  0xc0   : > { %669 = vst [vmem:[%s3106_s23 + $0x510] sm:$0xff] %v668_v34 }
  0xc1   : > { %671 = vst [vmem:[%s3106_s23 + $0x518] sm:$0xff] %v670_v35 }
  0xc2   : > { %673 = vst [vmem:[%s3106_s23 + $0x520] sm:$0xff] %v672_v36 }
  0xc3   : > { %675 = vst [vmem:[%s3106_s23 + $0x528] sm:$0xff] %v674_v37 }
  0xc4   : > { %677 = vst [vmem:[%s3106_s23 + $0x530] sm:$0xff] %v676_v38 }
  0xc5   : > { %679 = vst [vmem:[%s3106_s23 + $0x538] sm:$0xff] %v678_v39 }
  0xc6   : > { %681 = vst [vmem:[%s3106_s23 + $0x540] sm:$0xff] %v680_v40 }
  0xc7   : > { %683 = vst [vmem:[%s3106_s23 + $0x548] sm:$0xff] %v682_v41 }
  0xc8   : > { %685 = vst [vmem:[%s3106_s23 + $0x550] sm:$0xff] %v684_v42 }
  0xc9   : > { %687 = vst [vmem:[%s3106_s23 + $0x558] sm:$0xff] %v686_v43 }
  0xca   : > { %689 = vst [vmem:[%s3106_s23 + $0x560] sm:$0xff] %v688_v44 }
  0xcb   : > { %691 = vst [vmem:[%s3106_s23 + $0x568] sm:$0xff] %v690_v45 }
  0xcc   : > { %693 = vst [vmem:[%s3106_s23 + $0x570] sm:$0xff] %v692_v46 }
  0xcd   : > { %695 = vst [vmem:[%s3106_s23 + $0x578] sm:$0xff] %v694_v47 }
  0xce   : > { %697 = vst [vmem:[%s3106_s23 + $0x580] sm:$0xff] %v696_v48 }
  0xcf   : > { %699 = vst [vmem:[%s3106_s23 + $0x588] sm:$0xff] %v698_v49 }
  0xd0   : > { %701 = vst [vmem:[%s3106_s23 + $0x590] sm:$0xff] %v700_v50 }
  0xd1   : > { %703 = vst [vmem:[%s3106_s23 + $0x598] sm:$0xff] %v702_v51 }
  0xd2 PF: > { %p2763_p7 = scmp.ge.s32.totalorder %s2982_s19, 1  ;;  %p708_p8 = scmp.lt.s32.totalorder %s2982_s19, 9 }
  0xd4   : > { %p709_p9 = pnand %p2763_p7, %p708_p8 }
  0xd6   : > { %712 = sbr.rel (%p709_p9) target bundleno = 1863 (0x747), region = 75 }
  0xdb   : > { %v971_v52 = vld [vmem:[%s4613_s1 + $0x78] sm:$0xff]  ;;  %v970_v54 = vld [vmem:[%s4613_s1 + $0x70] sm:$0xff]  ;;  %p756_p10 = scmp.lt.s32.totalorder %s2970_s16, 1  ;;  %s765_s11 = ssub.s32 0, %s2966_s15  ;;  %v969_v56 = vld [vmem:[%s4613_s1 + $0x68] sm:$0xff] }
  0xdc   : > { %v987_v53 = vld [vmem:[%s4613_s1 + $0xf8] sm:$0xff]  ;;  %2794 = vmatpush.msra.mxu2 %v971_v52  ;;  %v986_v55 = vld [vmem:[%s4613_s1 + $0xf0] sm:$0xff]  ;;  %v985_v57 = vld [vmem:[%s4613_s1 + $0xe8] sm:$0xff]  ;;  %988 = vmatpush.msra.mxu0 %v971_v52  ;;  %p764_p11 = scmp.lt.s32.totalorder %s2966_s15, 0  ;;  %s2766_s21 = smin.u32 %s2966_s15, %s765_s11 }
  0xdd   : > { %2810 = vmatpush.msra.mxu3 %v987_v53  ;;  %s4765_s16 = smov (!%p756_p10, %s2970_s16), 1  ;;  %1275 = vmatpush.msra.mxu1 %v987_v53  ;;  %v968_v58 = vld [vmem:[%s4613_s1 + $0x60] sm:$0xff]  ;;  %s767_s27 = sand.u32 1, %s2766_s21   ;;  %v967_v60 = vld [vmem:[%s4613_s1 + $0x58] sm:$0xff]  ;;  %v966_v62 = vld [vmem:[%s4613_s1 + $0x50] sm:$0xff] }
  0xde   : > { %2795 = vmatpush.msra.mxu2 %v970_v54  ;;  %s2764_s24 = sshll.u32 %s4765_s16, 2  ;;  %s2765_s25 = sshll.u32 %s4765_s16, 3  ;;  %v984_v59 = vld [vmem:[%s4613_s1 + $0xe0] sm:$0xff]  ;;  %989 = vmatpush.msra.mxu0 %v970_v54  ;;  %v983_v61 = vld [vmem:[%s4613_s1 + $0xd8] sm:$0xff]  ;;  %v982_v63 = vld [vmem:[%s4613_s1 + $0xd0] sm:$0xff] }
  0xdf   : > { %2811 = vmatpush.msra.mxu3 %v986_v55  ;;  %1276 = vmatpush.msra.mxu1 %v986_v55  ;;  %s3499_s23 = scalar_lea.vmem %s4621_s9, %s2764_s24  ;;  %s3504_s20 = scalar_lea.vmem %s4622_s10, %s2765_s25  ;;  %v965_v0 = vld [vmem:[%s4613_s1 + $0x48] sm:$0xff]  ;;  %v964_v2 = vld [vmem:[%s4613_s1 + $0x40] sm:$0xff]  ;;  %v963_v4 = vld [vmem:[%s4613_s1 + $0x38] sm:$0xff] }
  0xe0   : > { %2796 = vmatpush.msra.mxu2 %v969_v56  ;;  %990 = vmatpush.msra.mxu0 %v969_v56  ;;  %s768_s18 = ssub.s32 0, %s767_s27  ;;  %v981_v1 = vld [vmem:[%s4613_s1 + $0xc8] sm:$0xff]  ;;  %v980_v3 = vld [vmem:[%s4613_s1 + $0xc0] sm:$0xff]  ;;  %v979_v5 = vld [vmem:[%s4613_s1 + $0xb8] sm:$0xff]  ;;  %s715_s12 = sand.u32 1, %s2958_s13  }
  0xe1   : > { %2812 = vmatpush.msra.mxu3 %v985_v57  ;;  %1277 = vmatpush.msra.mxu1 %v985_v57  ;;  %s4767_s18 = smov (!%p764_p11, %s768_s18), %s767_s27  ;;  %v962_v6 = vld [vmem:[%s4613_s1 + $0x30] sm:$0xff]  ;;  %v961_v8 = vld [vmem:[%s4613_s1 + $0x28] sm:$0xff]  ;;  %v960_v10 = vld [vmem:[%s4613_s1 + $0x20] sm:$0xff]  ;;  %s2862_s13 = smul.u32 1440, %s715_s12 }
  0xe2   : > { %2797 = vmatpush.msra.mxu2 %v968_v58  ;;  %991 = vmatpush.msra.mxu0 %v968_v58  ;;  %p2768_p12 = scmp.lt.s32.totalorder %s4767_s18, 0  ;;  %s774_s0 = sadd.s32 2, %s4767_s18  ;;  %v978_v7 = vld [vmem:[%s4613_s1 + $0xb0] sm:$0xff]  ;;  %v977_v9 = vld [vmem:[%s4613_s1 + $0xa8] sm:$0xff]  ;;  %v976_v11 = vld [vmem:[%s4613_s1 + $0xa0] sm:$0xff] }
  0xe3   : > { %2813 = vmatpush.msra.mxu3 %v984_v59  ;;  %1278 = vmatpush.msra.mxu1 %v984_v59  ;;  %v959_v12 = vld [vmem:[%s4613_s1 + $0x18] sm:$0xff]  ;;  %v958_v14 = vld [vmem:[%s4613_s1 + $0x10] sm:$0xff]  ;;  %v957_v16 = vld [vmem:[%s4613_s1 + $0x8] sm:$0xff]  ;;  %s3583_s29 = scalar_lea.vmem [#allocation4], %s2862_s13 }
  0xe4   : > { %2798 = vmatpush.msra.mxu2 %v967_v60  ;;  %992 = vmatpush.msra.mxu0 %v967_v60  ;;  %s4769_s0 = smov (!%p2768_p12, %s774_s0), %s4767_s18  ;;  %v975_v13 = vld [vmem:[%s4613_s1 + $0x98] sm:$0xff]  ;;  %v974_v15 = vld [vmem:[%s4613_s1 + $0x90] sm:$0xff]  ;;  %v973_v17 = vld [vmem:[%s4613_s1 + $0x88] sm:$0xff] }
  0xe5   : > { %2814 = vmatpush.msra.mxu3 %v983_v61  ;;  %1279 = vmatpush.msra.mxu1 %v983_v61  ;;  %v956_v18 = vld [vmem:[%s4613_s1] sm:$0xff]  ;;  %v866_v20 = vld [vmem:[%s3583_s29 + $0x2d0] sm:$0xff]  ;;  %v867_v21 = vld [vmem:[%s3583_s29 + $0x2d8] sm:$0xff]  ;;  %p2769_p13 = scmp.ne.s32.totalorder %s4769_s0, 0 }
  0xe6   : > { %2799 = vmatpush.msra.mxu2 %v966_v62  ;;  %993 = vmatpush.msra.mxu0 %v966_v62  ;;  %v972_v19 = vld [vmem:[%s4613_s1 + $0x80] sm:$0xff]  ;;  %v776_v22 = vld [vmem:[%s3583_s29] sm:$0xff]  ;;  %v778_v26 = vld [vmem:[%s3583_s29 + $0x10] sm:$0xff] }
  0xe7   : > { %2815 = vmatpush.msra.mxu3 %v982_v63  ;;  %1280 = vmatpush.msra.mxu1 %v982_v63  ;;  %v777_v23 = vld [vmem:[%s3583_s29 + $0x8] sm:$0xff]  ;;  %v868_v24 = vld [vmem:[%s3583_s29 + $0x2e0] sm:$0xff]  ;;  %v779_v27 = vld [vmem:[%s3583_s29 + $0x18] sm:$0xff] }
  0xe8   : > { %2800 = vmatpush.msra.mxu2 %v965_v0  ;;  %994 = vmatpush.msra.mxu0 %v965_v0  ;;  %v869_v25 = vld [vmem:[%s3583_s29 + $0x2e8] sm:$0xff]  ;;  %v870_v28 = vld [vmem:[%s3583_s29 + $0x2f0] sm:$0xff]  ;;  %v871_v29 = vld [vmem:[%s3583_s29 + $0x2f8] sm:$0xff] }
  0xe9   : > { %2816 = vmatpush.msra.mxu3 %v981_v1  ;;  %1281 = vmatpush.msra.mxu1 %v981_v1  ;;  %v780_v30 = vld [vmem:[%s3583_s29 + $0x20] sm:$0xff]  ;;  %v781_v31 = vld [vmem:[%s3583_s29 + $0x28] sm:$0xff]  ;;  %v782_v34 = vld [vmem:[%s3583_s29 + $0x30] sm:$0xff] }
  0xea   : > { %2801 = vmatpush.msra.mxu2 %v964_v2  ;;  %995 = vmatpush.msra.mxu0 %v964_v2  ;;  %v872_v32 = vld [vmem:[%s3583_s29 + $0x300] sm:$0xff]  ;;  %v873_v33 = vld [vmem:[%s3583_s29 + $0x308] sm:$0xff]  ;;  %v783_v35 = vld [vmem:[%s3583_s29 + $0x38] sm:$0xff] }
  0xeb   : > { %2817 = vmatpush.msra.mxu3 %v980_v3  ;;  %1282 = vmatpush.msra.mxu1 %v980_v3  ;;  %v874_v36 = vld [vmem:[%s3583_s29 + $0x310] sm:$0xff]  ;;  %v875_v37 = vld [vmem:[%s3583_s29 + $0x318] sm:$0xff]  ;;  %v784_v38 = vld [vmem:[%s3583_s29 + $0x40] sm:$0xff] }
  0xec   : > { %2802 = vmatpush.msra.mxu2 %v963_v4  ;;  %996 = vmatpush.msra.mxu0 %v963_v4  ;;  %v785_v39 = vld [vmem:[%s3583_s29 + $0x48] sm:$0xff]  ;;  %v876_v40 = vld [vmem:[%s3583_s29 + $0x320] sm:$0xff]  ;;  %v786_v42 = vld [vmem:[%s3583_s29 + $0x50] sm:$0xff] }
  0xed   : > { %2818 = vmatpush.msra.mxu3 %v979_v5  ;;  %1283 = vmatpush.msra.mxu1 %v979_v5  ;;  %v877_v41 = vld [vmem:[%s3583_s29 + $0x328] sm:$0xff]  ;;  %v787_v43 = vld [vmem:[%s3583_s29 + $0x58] sm:$0xff]  ;;  %v878_v44 = vld [vmem:[%s3583_s29 + $0x330] sm:$0xff] }
  0xee   : > { %2803 = vmatpush.msra.mxu2 %v962_v6  ;;  %997 = vmatpush.msra.mxu0 %v962_v6  ;;  %v879_v45 = vld [vmem:[%s3583_s29 + $0x338] sm:$0xff]  ;;  %v788_v46 = vld [vmem:[%s3583_s29 + $0x60] sm:$0xff]  ;;  %v789_v47 = vld [vmem:[%s3583_s29 + $0x68] sm:$0xff] }
  0xef   : > { %2819 = vmatpush.msra.mxu3 %v978_v7  ;;  %1284 = vmatpush.msra.mxu1 %v978_v7  ;;  %v880_v48 = vld [vmem:[%s3583_s29 + $0x340] sm:$0xff]  ;;  %v881_v49 = vld [vmem:[%s3583_s29 + $0x348] sm:$0xff]  ;;  %v790_v50 = vld [vmem:[%s3583_s29 + $0x70] sm:$0xff] }
  0xf0   : > { %2804 = vmatpush.msra.mxu2 %v961_v8  ;;  %998 = vmatpush.msra.mxu0 %v961_v8  ;;  %v791_v51 = vld [vmem:[%s3583_s29 + $0x78] sm:$0xff]  ;;  %v882_v52 = vld [vmem:[%s3583_s29 + $0x350] sm:$0xff]  ;;  %v792_v54 = vld [vmem:[%s3583_s29 + $0x80] sm:$0xff] }
  0xf1   : > { %2820 = vmatpush.msra.mxu3 %v977_v9  ;;  %1285 = vmatpush.msra.mxu1 %v977_v9  ;;  %v883_v53 = vld [vmem:[%s3583_s29 + $0x358] sm:$0xff]  ;;  %v793_v55 = vld [vmem:[%s3583_s29 + $0x88] sm:$0xff]  ;;  %v884_v56 = vld [vmem:[%s3583_s29 + $0x360] sm:$0xff] }
  0xf2   : > { %2805 = vmatpush.msra.mxu2 %v960_v10  ;;  %999 = vmatpush.msra.mxu0 %v960_v10  ;;  %v885_v57 = vld [vmem:[%s3583_s29 + $0x368] sm:$0xff]  ;;  %v794_v58 = vld [vmem:[%s3583_s29 + $0x90] sm:$0xff]  ;;  %v795_v59 = vld [vmem:[%s3583_s29 + $0x98] sm:$0xff] }
  0xf3   : > { %2821 = vmatpush.msra.mxu3 %v976_v11  ;;  %1286 = vmatpush.msra.mxu1 %v976_v11  ;;  %v886_v60 = vld [vmem:[%s3583_s29 + $0x370] sm:$0xff]  ;;  %v887_v61 = vld [vmem:[%s3583_s29 + $0x378] sm:$0xff]  ;;  %v796_v62 = vld [vmem:[%s3583_s29 + $0xa0] sm:$0xff] }
  0xf4   : > { %2806 = vmatpush.msra.mxu2 %v959_v12  ;;  %1000 = vmatpush.msra.mxu0 %v959_v12  ;;  %v797_v63 = vld [vmem:[%s3583_s29 + $0xa8] sm:$0xff]  ;;  %v888_v0 = vld [vmem:[%s3583_s29 + $0x380] sm:$0xff]  ;;  %v798_v2 = vld [vmem:[%s3583_s29 + $0xb0] sm:$0xff] }
  0xf5   : > { %2822 = vmatpush.msra.mxu3 %v975_v13  ;;  %1287 = vmatpush.msra.mxu1 %v975_v13  ;;  %v889_v1 = vld [vmem:[%s3583_s29 + $0x388] sm:$0xff]  ;;  %v799_v3 = vld [vmem:[%s3583_s29 + $0xb8] sm:$0xff]  ;;  %v890_v4 = vld [vmem:[%s3583_s29 + $0x390] sm:$0xff] }
  0xf6   : > { %2807 = vmatpush.msra.mxu2 %v958_v14  ;;  %1001 = vmatpush.msra.mxu0 %v958_v14  ;;  %v891_v5 = vld [vmem:[%s3583_s29 + $0x398] sm:$0xff]  ;;  %v800_v6 = vld [vmem:[%s3583_s29 + $0xc0] sm:$0xff]  ;;  %v801_v7 = vld [vmem:[%s3583_s29 + $0xc8] sm:$0xff] }
  0xf7   : > { %2823 = vmatpush.msra.mxu3 %v974_v15  ;;  %1288 = vmatpush.msra.mxu1 %v974_v15  ;;  %v892_v8 = vld [vmem:[%s3583_s29 + $0x3a0] sm:$0xff]  ;;  %v893_v9 = vld [vmem:[%s3583_s29 + $0x3a8] sm:$0xff]  ;;  %v802_v10 = vld [vmem:[%s3583_s29 + $0xd0] sm:$0xff] }
  0xf8   : > { %2808 = vmatpush.msra.mxu2 %v957_v16  ;;  %1002 = vmatpush.msra.mxu0 %v957_v16  ;;  %v803_v11 = vld [vmem:[%s3583_s29 + $0xd8] sm:$0xff]  ;;  %v894_v12 = vld [vmem:[%s3583_s29 + $0x3b0] sm:$0xff]  ;;  %v804_v14 = vld [vmem:[%s3583_s29 + $0xe0] sm:$0xff] }
  0xf9   : > { %2824 = vmatpush.msra.mxu3 %v973_v17  ;;  %1289 = vmatpush.msra.mxu1 %v973_v17  ;;  %v895_v13 = vld [vmem:[%s3583_s29 + $0x3b8] sm:$0xff]  ;;  %v805_v15 = vld [vmem:[%s3583_s29 + $0xe8] sm:$0xff]  ;;  %v896_v16 = vld [vmem:[%s3583_s29 + $0x3c0] sm:$0xff] }
  0xfa   : > { %2809 = vmatpush.msra.mxu2 %v956_v18  ;;  %1003 = vmatpush.msra.mxu0 %v956_v18  ;;  %v897_v17 = vld [vmem:[%s3583_s29 + $0x3c8] sm:$0xff]  ;;  %v806_v18 = vld [vmem:[%s3583_s29 + $0xf0] sm:$0xff] }
  0xfb   : > { %2825 = vmatpush.msra.mxu3 %v972_v19  ;;  %1139 = vmatmul.f32.vlgmr.msra.gmra.mxu2 %v866_v20  ;;  %v898_v20 = vld [vmem:[%s3583_s29 + $0x3d0] sm:$0xff] }
  0xfc   : > { %1426 = vmatmul.f32.vlgmr.msra.gmra.mxu3 %v867_v21  ;;  %1290 = vmatpush.msra.mxu1 %v972_v19  ;;  %v807_v19 = vld [vmem:[%s3583_s29 + $0xf8] sm:$0xff] }
  0xfd   : > { %1004 = vmatmul.f32.vlgmr.msra.gmra.mxu0 %v776_v22  ;;  %1291 = vmatmul.f32.vlgmr.msra.gmra.mxu1 %v777_v23  ;;  %v899_v21 = vld [vmem:[%s3583_s29 + $0x3d8] sm:$0xff] }
 0x103   : > { %1142 = vmatmul.f32.gmra.mxu2 %v868_v24  ;;  %v808_v24 = vld [vmem:[%s3583_s29 + $0x100] sm:$0xff] }
 0x104   : > { %1429 = vmatmul.f32.gmra.mxu3 %v869_v25  ;;  %v809_v25 = vld [vmem:[%s3583_s29 + $0x108] sm:$0xff] }
 0x105   : > { %1007 = vmatmul.f32.gmra.mxu0 %v778_v26  ;;  %1294 = vmatmul.f32.gmra.mxu1 %v779_v27 }
 0x10b   : > { %1145 = vmatmul.f32.gmra.mxu2 %v870_v28 }
 0x10c   : > { %1432 = vmatmul.f32.gmra.mxu3 %v871_v29 }
 0x10d   : > { %1010 = vmatmul.f32.gmra.mxu0 %v780_v30  ;;  %1297 = vmatmul.f32.gmra.mxu1 %v781_v31  ;;  %v900_v30 = vld [vmem:[%s3583_s29 + $0x3e0] sm:$0xff]  ;;  %v901_v31 = vld [vmem:[%s3583_s29 + $0x3e8] sm:$0xff] }
 0x113   : > { %1148 = vmatmul.f32.gmra.mxu2 %v872_v32 }
 0x114   : > { %1435 = vmatmul.f32.gmra.mxu3 %v873_v33 }
 0x115   : > { %1013 = vmatmul.f32.gmra.mxu0 %v782_v34  ;;  %1300 = vmatmul.f32.gmra.mxu1 %v783_v35  ;;  %v810_v34 = vld [vmem:[%s3583_s29 + $0x110] sm:$0xff]  ;;  %v811_v35 = vld [vmem:[%s3583_s29 + $0x118] sm:$0xff] }
 0x11b   : > { %1151 = vmatmul.f32.gmra.mxu2 %v874_v36 }
 0x11c   : > { %1438 = vmatmul.f32.gmra.mxu3 %v875_v37 }
 0x11d   : > { %1016 = vmatmul.f32.gmra.mxu0 %v784_v38  ;;  %1303 = vmatmul.f32.gmra.mxu1 %v785_v39 }
 0x123   : > { %1154 = vmatmul.f32.gmra.mxu2 %v876_v40  ;;  %v902_v40 = vld [vmem:[%s3583_s29 + $0x3f0] sm:$0xff] }
 0x124   : > { %1441 = vmatmul.f32.gmra.mxu3 %v877_v41  ;;  %v903_v41 = vld [vmem:[%s3583_s29 + $0x3f8] sm:$0xff] }
 0x125   : > { %1019 = vmatmul.f32.gmra.mxu0 %v786_v42  ;;  %1306 = vmatmul.f32.gmra.mxu1 %v787_v43 }
 0x12b   : > { %1157 = vmatmul.f32.gmra.mxu2 %v878_v44  ;;  %v812_v44 = vld [vmem:[%s3583_s29 + $0x120] sm:$0xff] }
 0x12c   : > { %1444 = vmatmul.f32.gmra.mxu3 %v879_v45  ;;  %v813_v45 = vld [vmem:[%s3583_s29 + $0x128] sm:$0xff] }
 0x12d   : > { %1022 = vmatmul.f32.gmra.mxu0 %v788_v46  ;;  %1309 = vmatmul.f32.gmra.mxu1 %v789_v47 }
 0x133   : > { %1160 = vmatmul.f32.gmra.mxu2 %v880_v48 }
 0x134   : > { %1447 = vmatmul.f32.gmra.mxu3 %v881_v49 }
 0x135   : > { %1025 = vmatmul.f32.gmra.mxu0 %v790_v50  ;;  %1312 = vmatmul.f32.gmra.mxu1 %v791_v51  ;;  %v904_v50 = vld [vmem:[%s3583_s29 + $0x400] sm:$0xff]  ;;  %v905_v51 = vld [vmem:[%s3583_s29 + $0x408] sm:$0xff] }
 0x13b   : > { %1163 = vmatmul.f32.gmra.mxu2 %v882_v52 }
 0x13c   : > { %1450 = vmatmul.f32.gmra.mxu3 %v883_v53 }
 0x13d   : > { %1028 = vmatmul.f32.gmra.mxu0 %v792_v54  ;;  %1315 = vmatmul.f32.gmra.mxu1 %v793_v55  ;;  %v814_v54 = vld [vmem:[%s3583_s29 + $0x130] sm:$0xff]  ;;  %v815_v55 = vld [vmem:[%s3583_s29 + $0x138] sm:$0xff] }
 0x143   : > { %1166 = vmatmul.f32.gmra.mxu2 %v884_v56 }
 0x144   : > { %1453 = vmatmul.f32.gmra.mxu3 %v885_v57 }
 0x145   : > { %1031 = vmatmul.f32.gmra.mxu0 %v794_v58  ;;  %1318 = vmatmul.f32.gmra.mxu1 %v795_v59 }
 0x14b   : > { %1169 = vmatmul.f32.gmra.mxu2 %v886_v60  ;;  %v906_v60 = vld [vmem:[%s3583_s29 + $0x410] sm:$0xff] }
 0x14c   : > { %1456 = vmatmul.f32.gmra.mxu3 %v887_v61  ;;  %v907_v61 = vld [vmem:[%s3583_s29 + $0x418] sm:$0xff] }
 0x14d   : > { %1034 = vmatmul.f32.gmra.mxu0 %v796_v62  ;;  %1321 = vmatmul.f32.gmra.mxu1 %v797_v63 }
 0x153   : > { %1172 = vmatmul.f32.gmra.mxu2 %v888_v0  ;;  %v816_v0 = vld [vmem:[%s3583_s29 + $0x140] sm:$0xff] }
 0x154   : > { %1459 = vmatmul.f32.gmra.mxu3 %v889_v1  ;;  %v817_v1 = vld [vmem:[%s3583_s29 + $0x148] sm:$0xff] }
 0x155   : > { %1037 = vmatmul.f32.gmra.mxu0 %v798_v2  ;;  %1324 = vmatmul.f32.gmra.mxu1 %v799_v3 }
 0x15b   : > { %1175 = vmatmul.f32.gmra.mxu2 %v890_v4 }
 0x15c   : > { %1462 = vmatmul.f32.gmra.mxu3 %v891_v5 }
 0x15d   : > { %1040 = vmatmul.f32.gmra.mxu0 %v800_v6  ;;  %1327 = vmatmul.f32.gmra.mxu1 %v801_v7  ;;  %v908_v6 = vld [vmem:[%s3583_s29 + $0x420] sm:$0xff]  ;;  %v909_v7 = vld [vmem:[%s3583_s29 + $0x428] sm:$0xff] }
 0x163   : > { %1178 = vmatmul.f32.gmra.mxu2 %v892_v8 }
 0x164   : > { %1465 = vmatmul.f32.gmra.mxu3 %v893_v9 }
 0x165   : > { %1043 = vmatmul.f32.gmra.mxu0 %v802_v10  ;;  %1330 = vmatmul.f32.gmra.mxu1 %v803_v11  ;;  %v818_v10 = vld [vmem:[%s3583_s29 + $0x150] sm:$0xff]  ;;  %v819_v11 = vld [vmem:[%s3583_s29 + $0x158] sm:$0xff] }
 0x16b   : > { %1181 = vmatmul.f32.gmra.mxu2 %v894_v12 }
 0x16c   : > { %1468 = vmatmul.f32.gmra.mxu3 %v895_v13 }
 0x16d   : > { %1046 = vmatmul.f32.gmra.mxu0 %v804_v14  ;;  %1333 = vmatmul.f32.gmra.mxu1 %v805_v15 }
 0x173   : > { %1184 = vmatmul.f32.gmra.mxu2 %v896_v16  ;;  %v910_v16 = vld [vmem:[%s3583_s29 + $0x430] sm:$0xff] }
 0x174   : > { %1471 = vmatmul.f32.gmra.mxu3 %v897_v17  ;;  %v911_v17 = vld [vmem:[%s3583_s29 + $0x438] sm:$0xff] }
 0x175   : > { %1049 = vmatmul.f32.gmra.mxu0 %v806_v18  ;;  %1336 = vmatmul.f32.gmra.mxu1 %v807_v19 }
 0x17a   : > { %v1005_v22 = vpop.f32.mrf.mxu0  ;;  %v1292_v23 = vpop.f32.mrf.mxu1 }
 0x17b   : > { %1187 = vmatmul.f32.gmra.mxu2 %v898_v20  ;;  %v3653_v26 = vadd.f32 %v1292_v23, %v1005_v22  ;;  %v820_v20 = vld [vmem:[%s3583_s29 + $0x160] sm:$0xff] }
 0x17c   : > { %1474 = vmatmul.f32.gmra.mxu3 %v899_v21  ;;  %v821_v21 = vld [vmem:[%s3583_s29 + $0x168] sm:$0xff] }
 0x17d   : > { %1052 = vmatmul.f32.gmra.mxu0 %v808_v24  ;;  %1339 = vmatmul.f32.gmra.mxu1 %v809_v25 }
 0x17e   : > { %v1140_v27 = vpop.f32.mrf.mxu2 }
 0x17f   : > { %v1427_v28 = vpop.f32.mrf.mxu3 }
 0x180   : > { %v3655_v29 = vadd.f32 %v1427_v28, %v1140_v27  ;;  %v912_v27 = vld [vmem:[%s3583_s29 + $0x440] sm:$0xff]  ;;  %v913_v28 = vld [vmem:[%s3583_s29 + $0x448] sm:$0xff] }
 0x182   : > { %v1008_v32 = vpop.f32.mrf.mxu0  ;;  %v1295_v33 = vpop.f32.mrf.mxu1 }
 0x183   : > { %1190 = vmatmul.f32.gmra.mxu2 %v900_v30  ;;  %v3661_v36 = vadd.f32 %v1295_v33, %v1008_v32  ;;  %v822_v32 = vld [vmem:[%s3583_s29 + $0x170] sm:$0xff]  ;;  %v823_v33 = vld [vmem:[%s3583_s29 + $0x178] sm:$0xff] }
 0x184   : > { %1477 = vmatmul.f32.gmra.mxu3 %v901_v31 }
 0x185   : > { %1055 = vmatmul.f32.gmra.mxu0 %v810_v34  ;;  %1342 = vmatmul.f32.gmra.mxu1 %v811_v35 }
 0x186   : > { %v1143_v37 = vpop.f32.mrf.mxu2 }
 0x187   : > { %v1430_v38 = vpop.f32.mrf.mxu3 }
 0x188   : > { %v3663_v39 = vadd.f32 %v1430_v38, %v1143_v37 }
 0x18a   : > { %v1011_v42 = vpop.f32.mrf.mxu0  ;;  %v1298_v43 = vpop.f32.mrf.mxu1 }
 0x18b   : > { %1193 = vmatmul.f32.gmra.mxu2 %v902_v40  ;;  %v3669_v46 = vadd.f32 %v1298_v43, %v1011_v42  ;;  %v914_v40 = vld [vmem:[%s3583_s29 + $0x450] sm:$0xff] }
 0x18c   : > { %1480 = vmatmul.f32.gmra.mxu3 %v903_v41  ;;  %v915_v41 = vld [vmem:[%s3583_s29 + $0x458] sm:$0xff] }
 0x18d   : > { %1058 = vmatmul.f32.gmra.mxu0 %v812_v44  ;;  %1345 = vmatmul.f32.gmra.mxu1 %v813_v45  ;;  %v824_v44 = vld [vmem:[%s3583_s29 + $0x180] sm:$0xff]  ;;  %v825_v45 = vld [vmem:[%s3583_s29 + $0x188] sm:$0xff] }
 0x18e   : > { %v1146_v47 = vpop.f32.mrf.mxu2 }
 0x18f   : > { %v1433_v48 = vpop.f32.mrf.mxu3 }
 0x190   : > { %v3671_v49 = vadd.f32 %v1433_v48, %v1146_v47 }
 0x192   : > { %v1014_v52 = vpop.f32.mrf.mxu0  ;;  %v1301_v53 = vpop.f32.mrf.mxu1 }
 0x193   : > { %1196 = vmatmul.f32.gmra.mxu2 %v904_v50  ;;  %v3677_v56 = vadd.f32 %v1301_v53, %v1014_v52  ;;  %v916_v52 = vld [vmem:[%s3583_s29 + $0x460] sm:$0xff]  ;;  %v917_v53 = vld [vmem:[%s3583_s29 + $0x468] sm:$0xff] }
 0x194   : > { %1483 = vmatmul.f32.gmra.mxu3 %v905_v51 }
 0x195   : > { %1061 = vmatmul.f32.gmra.mxu0 %v814_v54  ;;  %1348 = vmatmul.f32.gmra.mxu1 %v815_v55 }
 0x196   : > { %v1149_v57 = vpop.f32.mrf.mxu2 }
 0x197   : > { %v1436_v58 = vpop.f32.mrf.mxu3 }
 0x198   : > { %v3679_v59 = vadd.f32 %v1436_v58, %v1149_v57  ;;  %v826_v57 = vld [vmem:[%s3583_s29 + $0x190] sm:$0xff]  ;;  %v827_v58 = vld [vmem:[%s3583_s29 + $0x198] sm:$0xff] }
 0x19a   : > { %v1017_v62 = vpop.f32.mrf.mxu0  ;;  %v1304_v63 = vpop.f32.mrf.mxu1 }
 0x19b   : > { %1199 = vmatmul.f32.gmra.mxu2 %v906_v60  ;;  %v3685_v2 = vadd.f32 %v1304_v63, %v1017_v62 }
 0x19c   : > { %1486 = vmatmul.f32.gmra.mxu3 %v907_v61 }
 0x19d   : > { %1064 = vmatmul.f32.gmra.mxu0 %v816_v0  ;;  %1351 = vmatmul.f32.gmra.mxu1 %v817_v1  ;;  %v918_v0 = vld [vmem:[%s3583_s29 + $0x470] sm:$0xff]  ;;  %v919_v1 = vld [vmem:[%s3583_s29 + $0x478] sm:$0xff] }
 0x19e   : > { %v1152_v3 = vpop.f32.mrf.mxu2 }
 0x19f   : > { %v1439_v4 = vpop.f32.mrf.mxu3 }
 0x1a0   : > { %v3687_v5 = vadd.f32 %v1439_v4, %v1152_v3 }
 0x1a2   : > { %v1020_v8 = vpop.f32.mrf.mxu0  ;;  %v1307_v9 = vpop.f32.mrf.mxu1 }
 0x1a3   : > { %1202 = vmatmul.f32.gmra.mxu2 %v908_v6  ;;  %v3693_v12 = vadd.f32 %v1307_v9, %v1020_v8  ;;  %v828_v6 = vld [vmem:[%s3583_s29 + $0x1a0] sm:$0xff] }
 0x1a4   : > { %1489 = vmatmul.f32.gmra.mxu3 %v909_v7  ;;  %v829_v7 = vld [vmem:[%s3583_s29 + $0x1a8] sm:$0xff] }
 0x1a5   : > { %1067 = vmatmul.f32.gmra.mxu0 %v818_v10  ;;  %1354 = vmatmul.f32.gmra.mxu1 %v819_v11 }
 0x1a6   : > { %v1155_v13 = vpop.f32.mrf.mxu2 }
 0x1a7   : > { %v1442_v14 = vpop.f32.mrf.mxu3 }
 0x1a8   : > { %v3695_v15 = vadd.f32 %v1442_v14, %v1155_v13  ;;  %v920_v13 = vld [vmem:[%s3583_s29 + $0x480] sm:$0xff]  ;;  %v921_v14 = vld [vmem:[%s3583_s29 + $0x488] sm:$0xff] }
 0x1aa   : > { %4634 = vst [vmem:[#allocation8_spill] sm:$0xff] %v3695_v15  ;;  %v1023_v18 = vpop.f32.mrf.mxu0  ;;  %v1310_v19 = vpop.f32.mrf.mxu1 }
 0x1ab   : > { %1205 = vmatmul.f32.gmra.mxu2 %v910_v16  ;;  %v3701_v22 = vadd.f32 %v1310_v19, %v1023_v18  ;;  %v830_v18 = vld [vmem:[%s3583_s29 + $0x1b0] sm:$0xff]  ;;  %v831_v19 = vld [vmem:[%s3583_s29 + $0x1b8] sm:$0xff] }
 0x1ac   : > { %1492 = vmatmul.f32.gmra.mxu3 %v911_v17 }
 0x1ad   : > { %1070 = vmatmul.f32.gmra.mxu0 %v820_v20  ;;  %1357 = vmatmul.f32.gmra.mxu1 %v821_v21 }
 0x1ae   : > { %v1158_v23 = vpop.f32.mrf.mxu2 }
 0x1af   : > { %v1445_v24 = vpop.f32.mrf.mxu3 }
 0x1b0   : > { %v3703_v25 = vadd.f32 %v1445_v24, %v1158_v23 }
 0x1b2   : > { %4635 = vst [vmem:[#allocation9_spill] sm:$0xff] %v3703_v25  ;;  %v1026_v30 = vpop.f32.mrf.mxu0  ;;  %v1313_v31 = vpop.f32.mrf.mxu1 }
 0x1b3   : > { %1208 = vmatmul.f32.gmra.mxu2 %v912_v27  ;;  %v3709_v34 = vadd.f32 %v1313_v31, %v1026_v30  ;;  %v922_v27 = vld [vmem:[%s3583_s29 + $0x490] sm:$0xff] }
 0x1b4   : > { %1495 = vmatmul.f32.gmra.mxu3 %v913_v28  ;;  %v923_v28 = vld [vmem:[%s3583_s29 + $0x498] sm:$0xff] }
 0x1b5   : > { %1073 = vmatmul.f32.gmra.mxu0 %v822_v32  ;;  %1360 = vmatmul.f32.gmra.mxu1 %v823_v33  ;;  %v832_v32 = vld [vmem:[%s3583_s29 + $0x1c0] sm:$0xff]  ;;  %v833_v33 = vld [vmem:[%s3583_s29 + $0x1c8] sm:$0xff] }
 0x1b6   : > { %v1161_v35 = vpop.f32.mrf.mxu2 }
 0x1b7   : > { %v1448_v37 = vpop.f32.mrf.mxu3 }
 0x1b8   : > { %v3711_v38 = vadd.f32 %v1448_v37, %v1161_v35 }
 0x1ba   : > { %4636 = vst [vmem:[#allocation10_spill] sm:$0xff] %v3711_v38  ;;  %v1029_v42 = vpop.f32.mrf.mxu0  ;;  %v1316_v43 = vpop.f32.mrf.mxu1 }
 0x1bb   : > { %1211 = vmatmul.f32.gmra.mxu2 %v914_v40  ;;  %v3717_v47 = vadd.f32 %v1316_v43, %v1029_v42  ;;  %v924_v42 = vld [vmem:[%s3583_s29 + $0x4a0] sm:$0xff]  ;;  %v925_v43 = vld [vmem:[%s3583_s29 + $0x4a8] sm:$0xff] }
 0x1bc   : > { %1498 = vmatmul.f32.gmra.mxu3 %v915_v41 }
 0x1bd   : > { %1076 = vmatmul.f32.gmra.mxu0 %v824_v44  ;;  %1363 = vmatmul.f32.gmra.mxu1 %v825_v45 }
 0x1be   : > { %v1164_v48 = vpop.f32.mrf.mxu2 }
 0x1bf   : > { %v1451_v50 = vpop.f32.mrf.mxu3 }
 0x1c0   : > { %v3719_v51 = vadd.f32 %v1451_v50, %v1164_v48  ;;  %v834_v48 = vld [vmem:[%s3583_s29 + $0x1d0] sm:$0xff]  ;;  %v835_v50 = vld [vmem:[%s3583_s29 + $0x1d8] sm:$0xff] }
 0x1c2   : > { %4637 = vst [vmem:[#allocation11_spill] sm:$0xff] %v3719_v51  ;;  %v1032_v54 = vpop.f32.mrf.mxu0  ;;  %v1319_v55 = vpop.f32.mrf.mxu1 }
 0x1c3   : > { %1214 = vmatmul.f32.gmra.mxu2 %v916_v52  ;;  %v3725_v60 = vadd.f32 %v1319_v55, %v1032_v54 }
 0x1c4   : > { %1501 = vmatmul.f32.gmra.mxu3 %v917_v53 }
 0x1c5   : > { %1079 = vmatmul.f32.gmra.mxu0 %v826_v57  ;;  %1366 = vmatmul.f32.gmra.mxu1 %v827_v58  ;;  %v926_v57 = vld [vmem:[%s3583_s29 + $0x4b0] sm:$0xff]  ;;  %v927_v58 = vld [vmem:[%s3583_s29 + $0x4b8] sm:$0xff] }
 0x1c6   : > { %v1167_v61 = vpop.f32.mrf.mxu2 }
 0x1c7   : > { %v1454_v62 = vpop.f32.mrf.mxu3 }
 0x1c8   : > { %v3727_v63 = vadd.f32 %v1454_v62, %v1167_v61 }
 0x1ca   : > { %4638 = vst [vmem:[#allocation12_spill] sm:$0xff] %v3727_v63  ;;  %v1035_v3 = vpop.f32.mrf.mxu0  ;;  %v1322_v4 = vpop.f32.mrf.mxu1 }
 0x1cb   : > { %1217 = vmatmul.f32.gmra.mxu2 %v918_v0  ;;  %v3733_v8 = vadd.f32 %v1322_v4, %v1035_v3  ;;  %v836_v0 = vld [vmem:[%s3583_s29 + $0x1e0] sm:$0xff] }
 0x1cc   : > { %1504 = vmatmul.f32.gmra.mxu3 %v919_v1  ;;  %v837_v1 = vld [vmem:[%s3583_s29 + $0x1e8] sm:$0xff] }
 0x1cd   : > { %1082 = vmatmul.f32.gmra.mxu0 %v828_v6  ;;  %1369 = vmatmul.f32.gmra.mxu1 %v829_v7 }
 0x1ce   : > { %v1170_v9 = vpop.f32.mrf.mxu2 }
 0x1cf   : > { %v1457_v10 = vpop.f32.mrf.mxu3 }
 0x1d0   : > { %v3735_v11 = vadd.f32 %v1457_v10, %v1170_v9  ;;  %v928_v9 = vld [vmem:[%s3583_s29 + $0x4c0] sm:$0xff]  ;;  %v929_v10 = vld [vmem:[%s3583_s29 + $0x4c8] sm:$0xff] }
 0x1d2   : > { %4639 = vst [vmem:[#allocation13_spill] sm:$0xff] %v3735_v11  ;;  %v1038_v16 = vpop.f32.mrf.mxu0  ;;  %v1325_v17 = vpop.f32.mrf.mxu1 }
 0x1d3   : > { %1220 = vmatmul.f32.gmra.mxu2 %v920_v13  ;;  %v3741_v20 = vadd.f32 %v1325_v17, %v1038_v16  ;;  %v838_v16 = vld [vmem:[%s3583_s29 + $0x1f0] sm:$0xff]  ;;  %v839_v17 = vld [vmem:[%s3583_s29 + $0x1f8] sm:$0xff] }
 0x1d4   : > { %1507 = vmatmul.f32.gmra.mxu3 %v921_v14 }
 0x1d5   : > { %1085 = vmatmul.f32.gmra.mxu0 %v830_v18  ;;  %1372 = vmatmul.f32.gmra.mxu1 %v831_v19 }
 0x1d6   : > { %v1173_v21 = vpop.f32.mrf.mxu2 }
 0x1d7   : > { %v1460_v23 = vpop.f32.mrf.mxu3 }
 0x1d8   : > { %v3743_v24 = vadd.f32 %v1460_v23, %v1173_v21 }
 0x1da   : > { %4640 = vst [vmem:[#allocation14_spill] sm:$0xff] %v3743_v24  ;;  %v1041_v30 = vpop.f32.mrf.mxu0  ;;  %v1328_v31 = vpop.f32.mrf.mxu1 }
 0x1db   : > { %1223 = vmatmul.f32.gmra.mxu2 %v922_v27  ;;  %v3749_v35 = vadd.f32 %v1328_v31, %v1041_v30  ;;  %v930_v27 = vld [vmem:[%s3583_s29 + $0x4d0] sm:$0xff] }
 0x1dc   : > { %1510 = vmatmul.f32.gmra.mxu3 %v923_v28  ;;  %v931_v28 = vld [vmem:[%s3583_s29 + $0x4d8] sm:$0xff] }
 0x1dd   : > { %1088 = vmatmul.f32.gmra.mxu0 %v832_v32  ;;  %1375 = vmatmul.f32.gmra.mxu1 %v833_v33  ;;  %v840_v32 = vld [vmem:[%s3583_s29 + $0x200] sm:$0xff]  ;;  %v841_v33 = vld [vmem:[%s3583_s29 + $0x208] sm:$0xff] }
 0x1de   : > { %v1176_v37 = vpop.f32.mrf.mxu2 }
 0x1df   : > { %v1463_v40 = vpop.f32.mrf.mxu3 }
 0x1e0   : > { %v3751_v41 = vadd.f32 %v1463_v40, %v1176_v37 }
 0x1e2   : > { %4641 = vst [vmem:[#allocation15_spill] sm:$0xff] %v3751_v41  ;;  %v1044_v44 = vpop.f32.mrf.mxu0  ;;  %v1331_v45 = vpop.f32.mrf.mxu1 }
 0x1e3   : > { %1226 = vmatmul.f32.gmra.mxu2 %v924_v42  ;;  %v3757_v52 = vadd.f32 %v1331_v45, %v1044_v44  ;;  %v932_v44 = vld [vmem:[%s3583_s29 + $0x4e0] sm:$0xff]  ;;  %v933_v45 = vld [vmem:[%s3583_s29 + $0x4e8] sm:$0xff] }
 0x1e4   : > { %1513 = vmatmul.f32.gmra.mxu3 %v925_v43 }
 0x1e5   : > { %1091 = vmatmul.f32.gmra.mxu0 %v834_v48  ;;  %1378 = vmatmul.f32.gmra.mxu1 %v835_v50 }
 0x1e6   : > { %v1179_v53 = vpop.f32.mrf.mxu2 }
 0x1e7   : > { %v1466_v54 = vpop.f32.mrf.mxu3 }
 0x1e8   : > { %v3759_v55 = vadd.f32 %v1466_v54, %v1179_v53  ;;  %v842_v53 = vld [vmem:[%s3583_s29 + $0x210] sm:$0xff]  ;;  %v843_v54 = vld [vmem:[%s3583_s29 + $0x218] sm:$0xff] }
 0x1ea   : > { %4642 = vst [vmem:[#allocation16_spill] sm:$0xff] %v3759_v55  ;;  %v1047_v61 = vpop.f32.mrf.mxu0  ;;  %v1334_v62 = vpop.f32.mrf.mxu1 }
 0x1eb   : > { %1229 = vmatmul.f32.gmra.mxu2 %v926_v57  ;;  %v3765_v3 = vadd.f32 %v1334_v62, %v1047_v61 }
 0x1ec   : > { %1516 = vmatmul.f32.gmra.mxu3 %v927_v58 }
 0x1ed   : > { %1094 = vmatmul.f32.gmra.mxu0 %v836_v0  ;;  %1381 = vmatmul.f32.gmra.mxu1 %v837_v1  ;;  %v934_v0 = vld [vmem:[%s3583_s29 + $0x4f0] sm:$0xff]  ;;  %v935_v1 = vld [vmem:[%s3583_s29 + $0x4f8] sm:$0xff] }
 0x1ee   : > { %v1182_v4 = vpop.f32.mrf.mxu2 }
 0x1ef   : > { %v1469_v6 = vpop.f32.mrf.mxu3 }
 0x1f0   : > { %v3767_v7 = vadd.f32 %v1469_v6, %v1182_v4 }
 0x1f2   : > { %4643 = vst [vmem:[#allocation17_spill] sm:$0xff] %v3767_v7  ;;  %v1050_v13 = vpop.f32.mrf.mxu0  ;;  %v1337_v14 = vpop.f32.mrf.mxu1 }
 0x1f3   : > { %1232 = vmatmul.f32.gmra.mxu2 %v928_v9  ;;  %v3773_v18 = vadd.f32 %v1337_v14, %v1050_v13  ;;  %v844_v9 = vld [vmem:[%s3583_s29 + $0x220] sm:$0xff] }
 0x1f4   : > { %1519 = vmatmul.f32.gmra.mxu3 %v929_v10  ;;  %v845_v10 = vld [vmem:[%s3583_s29 + $0x228] sm:$0xff] }
 0x1f5   : > { %1097 = vmatmul.f32.gmra.mxu0 %v838_v16  ;;  %1384 = vmatmul.f32.gmra.mxu1 %v839_v17 }
 0x1f6   : > { %v1185_v19 = vpop.f32.mrf.mxu2 }
 0x1f7   : > { %v1472_v21 = vpop.f32.mrf.mxu3 }
 0x1f8   : > { %v3775_v23 = vadd.f32 %v1472_v21, %v1185_v19  ;;  %v936_v19 = vld [vmem:[%s3583_s29 + $0x500] sm:$0xff]  ;;  %v937_v21 = vld [vmem:[%s3583_s29 + $0x508] sm:$0xff] }
 0x1fa   : > { %4644 = vst [vmem:[#allocation18_spill] sm:$0xff] %v3775_v23  ;;  %v1053_v30 = vpop.f32.mrf.mxu0  ;;  %v1340_v31 = vpop.f32.mrf.mxu1 }
 0x1fb   : > { %1235 = vmatmul.f32.gmra.mxu2 %v930_v27  ;;  %v3781_v37 = vadd.f32 %v1340_v31, %v1053_v30  ;;  %v846_v30 = vld [vmem:[%s3583_s29 + $0x230] sm:$0xff]  ;;  %v847_v31 = vld [vmem:[%s3583_s29 + $0x238] sm:$0xff] }
 0x1fc   : > { %1522 = vmatmul.f32.gmra.mxu3 %v931_v28 }
 0x1fd   : > { %1100 = vmatmul.f32.gmra.mxu0 %v840_v32  ;;  %1387 = vmatmul.f32.gmra.mxu1 %v841_v33 }
 0x1fe   : > { %v1188_v40 = vpop.f32.mrf.mxu2 }
 0x1ff   : > { %v1475_v42 = vpop.f32.mrf.mxu3 }
 0x200   : > { %v3783_v43 = vadd.f32 %v1475_v42, %v1188_v40 }
 0x202   : > { %4645 = vst [vmem:[#allocation19_spill] sm:$0xff] %v3783_v43  ;;  %v1056_v48 = vpop.f32.mrf.mxu0  ;;  %v1343_v50 = vpop.f32.mrf.mxu1 }
 0x203   : > { %1238 = vmatmul.f32.gmra.mxu2 %v932_v44  ;;  %v3789_v57 = vadd.f32 %v1343_v50, %v1056_v48  ;;  %v938_v44 = vld [vmem:[%s3583_s29 + $0x510] sm:$0xff] }
 0x204   : > { %1525 = vmatmul.f32.gmra.mxu3 %v933_v45  ;;  %v939_v45 = vld [vmem:[%s3583_s29 + $0x518] sm:$0xff] }
 0x205   : > { %1103 = vmatmul.f32.gmra.mxu0 %v842_v53  ;;  %1390 = vmatmul.f32.gmra.mxu1 %v843_v54  ;;  %v848_v53 = vld [vmem:[%s3583_s29 + $0x240] sm:$0xff]  ;;  %v849_v54 = vld [vmem:[%s3583_s29 + $0x248] sm:$0xff] }
 0x206   : > { %v1191_v58 = vpop.f32.mrf.mxu2 }
 0x207   : > { %v1478_v61 = vpop.f32.mrf.mxu3 }
 0x208   : > { %v3791_v62 = vadd.f32 %v1478_v61, %v1191_v58 }
 0x20a   : > { %4646 = vst [vmem:[#allocation20_spill] sm:$0xff] %v3791_v62  ;;  %v1059_v4 = vpop.f32.mrf.mxu0  ;;  %v1346_v6 = vpop.f32.mrf.mxu1 }
 0x20b   : > { %1241 = vmatmul.f32.gmra.mxu2 %v934_v0  ;;  %v3797_v13 = vadd.f32 %v1346_v6, %v1059_v4  ;;  %v940_v4 = vld [vmem:[%s3583_s29 + $0x520] sm:$0xff]  ;;  %v941_v6 = vld [vmem:[%s3583_s29 + $0x528] sm:$0xff] }
 0x20c   : > { %1528 = vmatmul.f32.gmra.mxu3 %v935_v1 }
 0x20d   : > { %1106 = vmatmul.f32.gmra.mxu0 %v844_v9  ;;  %1393 = vmatmul.f32.gmra.mxu1 %v845_v10 }
 0x20e   : > { %v1194_v14 = vpop.f32.mrf.mxu2 }
 0x20f   : > { %v1481_v16 = vpop.f32.mrf.mxu3 }
 0x210   : > { %v3799_v17 = vadd.f32 %v1481_v16, %v1194_v14  ;;  %v850_v14 = vld [vmem:[%s3583_s29 + $0x250] sm:$0xff]  ;;  %v851_v16 = vld [vmem:[%s3583_s29 + $0x258] sm:$0xff] }
 0x212   : > { %4647 = vst [vmem:[#allocation21_spill] sm:$0xff] %v3799_v17  ;;  %v1062_v27 = vpop.f32.mrf.mxu0  ;;  %v1349_v28 = vpop.f32.mrf.mxu1 }
 0x213   : > { %1244 = vmatmul.f32.gmra.mxu2 %v936_v19  ;;  %v3805_v32 = vadd.f32 %v1349_v28, %v1062_v27 }
 0x214   : > { %1531 = vmatmul.f32.gmra.mxu3 %v937_v21 }
 0x215   : > { %1109 = vmatmul.f32.gmra.mxu0 %v846_v30  ;;  %1396 = vmatmul.f32.gmra.mxu1 %v847_v31  ;;  %v942_v30 = vld [vmem:[%s3583_s29 + $0x530] sm:$0xff]  ;;  %v943_v31 = vld [vmem:[%s3583_s29 + $0x538] sm:$0xff] }
 0x216   : > { %v1197_v33 = vpop.f32.mrf.mxu2 }
 0x217   : > { %v1484_v40 = vpop.f32.mrf.mxu3 }
 0x218   : > { %v3807_v42 = vadd.f32 %v1484_v40, %v1197_v33 }
 0x21a   : > { %4648 = vst [vmem:[#allocation22_spill] sm:$0xff] %v3807_v42  ;;  %v1065_v48 = vpop.f32.mrf.mxu0  ;;  %v1352_v50 = vpop.f32.mrf.mxu1 }
 0x21b   : > { %1247 = vmatmul.f32.gmra.mxu2 %v938_v44  ;;  %v3813_v58 = vadd.f32 %v1352_v50, %v1065_v48  ;;  %v852_v44 = vld [vmem:[%s3583_s29 + $0x260] sm:$0xff] }
 0x21c   : > { %1534 = vmatmul.f32.gmra.mxu3 %v939_v45  ;;  %v853_v45 = vld [vmem:[%s3583_s29 + $0x268] sm:$0xff] }
 0x21d   : > { %1112 = vmatmul.f32.gmra.mxu0 %v848_v53  ;;  %1399 = vmatmul.f32.gmra.mxu1 %v849_v54 }
 0x21e   : > { %v1200_v61 = vpop.f32.mrf.mxu2 }
 0x21f   : > { %v1487_v0 = vpop.f32.mrf.mxu3 }
 0x220   : > { %v3815_v1 = vadd.f32 %v1487_v0, %v1200_v61  ;;  %v944_v61 = vld [vmem:[%s3583_s29 + $0x540] sm:$0xff]  ;;  %v945_v0 = vld [vmem:[%s3583_s29 + $0x548] sm:$0xff] }
 0x222   : > { %4649 = vst [vmem:[#allocation23_spill] sm:$0xff] %v3815_v1  ;;  %v1068_v9 = vpop.f32.mrf.mxu0  ;;  %v1355_v10 = vpop.f32.mrf.mxu1 }
 0x223   : > { %1250 = vmatmul.f32.gmra.mxu2 %v940_v4  ;;  %v3821_v19 = vadd.f32 %v1355_v10, %v1068_v9  ;;  %v854_v9 = vld [vmem:[%s3583_s29 + $0x270] sm:$0xff]  ;;  %v855_v10 = vld [vmem:[%s3583_s29 + $0x278] sm:$0xff] }
 0x224   : > { %1537 = vmatmul.f32.gmra.mxu3 %v941_v6 }
 0x225   : > { %1115 = vmatmul.f32.gmra.mxu0 %v850_v14  ;;  %1402 = vmatmul.f32.gmra.mxu1 %v851_v16 }
 0x226   : > { %v1203_v21 = vpop.f32.mrf.mxu2 }
 0x227   : > { %v1490_v27 = vpop.f32.mrf.mxu3 }
 0x228   : > { %v3823_v28 = vadd.f32 %v1490_v27, %v1203_v21 }
 0x22a   : > { %4650 = vst [vmem:[#allocation24_spill] sm:$0xff] %v3823_v28  ;;  %v1071_v33 = vpop.f32.mrf.mxu0  ;;  %v1358_v40 = vpop.f32.mrf.mxu1  ;;  %v865_v28 = vld [vmem:[%s3583_s29 + $0x2c8] sm:$0xff] }
 0x22b   : > { %1253 = vmatmul.f32.gmra.mxu2 %v942_v30  ;;  %v3829_v48 = vadd.f32 %v1358_v40, %v1071_v33  ;;  %v946_v30 = vld [vmem:[%s3583_s29 + $0x550] sm:$0xff] }
 0x22c   : > { %1540 = vmatmul.f32.gmra.mxu3 %v943_v31  ;;  %v947_v31 = vld [vmem:[%s3583_s29 + $0x558] sm:$0xff] }
 0x22d   : > { %1118 = vmatmul.f32.gmra.mxu0 %v852_v44  ;;  %1405 = vmatmul.f32.gmra.mxu1 %v853_v45  ;;  %v856_v44 = vld [vmem:[%s3583_s29 + $0x280] sm:$0xff]  ;;  %v857_v45 = vld [vmem:[%s3583_s29 + $0x288] sm:$0xff] }
 0x22e   : > { %v1206_v50 = vpop.f32.mrf.mxu2 }
 0x22f   : > { %v1493_v53 = vpop.f32.mrf.mxu3 }
 0x230   : > { %v3831_v54 = vadd.f32 %v1493_v53, %v1206_v50 }
 0x232   : > { %4651 = vst [vmem:[#allocation25_spill] sm:$0xff] %v3831_v54  ;;  %v1074_v4 = vpop.f32.mrf.mxu0  ;;  %v1361_v6 = vpop.f32.mrf.mxu1  ;;  %v863_v54 = vld [vmem:[%s3583_s29 + $0x2b8] sm:$0xff] }
 0x233   : > { %1256 = vmatmul.f32.gmra.mxu2 %v944_v61  ;;  %v3837_v14 = vadd.f32 %v1361_v6, %v1074_v4  ;;  %v948_v4 = vld [vmem:[%s3583_s29 + $0x560] sm:$0xff]  ;;  %v949_v6 = vld [vmem:[%s3583_s29 + $0x568] sm:$0xff] }
 0x234   : > { %1543 = vmatmul.f32.gmra.mxu3 %v945_v0 }
 0x235   : > { %1121 = vmatmul.f32.gmra.mxu0 %v854_v9  ;;  %1408 = vmatmul.f32.gmra.mxu1 %v855_v10 }
 0x236   : > { %v1209_v16 = vpop.f32.mrf.mxu2 }
 0x237   : > { %v1496_v21 = vpop.f32.mrf.mxu3 }
 0x238   : > { %v3839_v27 = vadd.f32 %v1496_v21, %v1209_v16  ;;  %v858_v16 = vld [vmem:[%s3583_s29 + $0x290] sm:$0xff]  ;;  %v859_v21 = vld [vmem:[%s3583_s29 + $0x298] sm:$0xff] }
 0x23a   : > { %4652 = vst [vmem:[#allocation26_spill] sm:$0xff] %v3839_v27  ;;  %v1077_v33 = vpop.f32.mrf.mxu0  ;;  %v1364_v40 = vpop.f32.mrf.mxu1  ;;  %v861_v27 = vld [vmem:[%s3583_s29 + $0x2a8] sm:$0xff] }
 0x23b   : > { %1259 = vmatmul.f32.gmra.mxu2 %v946_v30  ;;  %v3845_v50 = vadd.f32 %v1364_v40, %v1077_v33 }
 0x23c   : > { %1546 = vmatmul.f32.gmra.mxu3 %v947_v31 }
 0x23d   : > { %1124 = vmatmul.f32.gmra.mxu0 %v856_v44  ;;  %1411 = vmatmul.f32.gmra.mxu1 %v857_v45  ;;  %v950_v44 = vld [vmem:[%s3583_s29 + $0x570] sm:$0xff]  ;;  %v951_v45 = vld [vmem:[%s3583_s29 + $0x578] sm:$0xff] }
 0x23e   : > { %v1212_v53 = vpop.f32.mrf.mxu2 }
 0x23f   : > { %v1499_v61 = vpop.f32.mrf.mxu3 }
 0x240   : > { %v3847_v0 = vadd.f32 %v1499_v61, %v1212_v53 }
 0x242   : > { %4653 = vst [vmem:[#allocation27_spill] sm:$0xff] %v3847_v0  ;;  %v1080_v9 = vpop.f32.mrf.mxu0  ;;  %v1367_v10 = vpop.f32.mrf.mxu1  ;;  %v860_v0 = vld [vmem:[%s3583_s29 + $0x2a0] sm:$0xff] }
 0x243   : > { %1262 = vmatmul.f32.gmra.mxu2 %v948_v4  ;;  %v3853_v30 = vadd.f32 %v1367_v10, %v1080_v9 }
 0x244   : > { %1549 = vmatmul.f32.gmra.mxu3 %v949_v6 }
 0x245   : > { %1127 = vmatmul.f32.gmra.mxu0 %v858_v16  ;;  %1414 = vmatmul.f32.gmra.mxu1 %v859_v21  ;;  %v952_v16 = vld [vmem:[%s3583_s29 + $0x580] sm:$0xff]  ;;  %v953_v21 = vld [vmem:[%s3583_s29 + $0x588] sm:$0xff] }
 0x246   : > { %v1215_v31 = vpop.f32.mrf.mxu2 }
 0x247   : > { %v1502_v33 = vpop.f32.mrf.mxu3 }
 0x248   : > { %v3855_v40 = vadd.f32 %v1502_v33, %v1215_v31 }
 0x24a   : > { %4654 = vst [vmem:[#allocation28_spill] sm:$0xff] %v3855_v40  ;;  %v1083_v53 = vpop.f32.mrf.mxu0  ;;  %v1370_v61 = vpop.f32.mrf.mxu1  ;;  %v862_v40 = vld [vmem:[%s3583_s29 + $0x2b0] sm:$0xff] }
 0x24b   : > { %1265 = vmatmul.f32.gmra.mxu2 %v950_v44  ;;  %v3861_v4 = vadd.f32 %v1370_v61, %v1083_v53  ;;  %v954_v53 = vld [vmem:[%s3583_s29 + $0x590] sm:$0xff]  ;;  %v955_v61 = vld [vmem:[%s3583_s29 + $0x598] sm:$0xff] }
 0x24c   : > { %1552 = vmatmul.f32.gmra.mxu3 %v951_v45 }
 0x24d   : > { %1130 = vmatmul.f32.gmra.mxu0 %v860_v0  ;;  %1417 = vmatmul.f32.gmra.mxu1 %v861_v27 }
 0x24e   : > { %v1218_v6 = vpop.f32.mrf.mxu2 }
 0x24f   : > { %v1505_v9 = vpop.f32.mrf.mxu3 }
 0x250   : > { %v3863_v10 = vadd.f32 %v1505_v9, %v1218_v6 }
 0x252   : > { %4655 = vst [vmem:[#allocation29_spill] sm:$0xff] %v3863_v10  ;;  %v1086_v31 = vpop.f32.mrf.mxu0  ;;  %v1373_v33 = vpop.f32.mrf.mxu1  ;;  %v864_v10 = vld [vmem:[%s3583_s29 + $0x2c0] sm:$0xff] }
 0x253   : > { %1268 = vmatmul.f32.gmra.mxu2 %v952_v16  ;;  %v3869_v44 = vadd.f32 %v1373_v33, %v1086_v31 }
 0x254   : > { %1555 = vmatmul.f32.gmra.mxu3 %v953_v21 }
 0x255   : > { %1133 = vmatmul.f32.gmra.mxu0 %v862_v40  ;;  %1420 = vmatmul.f32.gmra.mxu1 %v863_v54 }
 0x256   : > { %v1221_v27 = vpop.f32.mrf.mxu2 }
 0x257   : > { %v1508_v0 = vpop.f32.mrf.mxu3 }
 0x258   : > { %v3871_v45 = vadd.f32 %v1508_v0, %v1221_v27 }
 0x25a   : > { %4656 = vst [vmem:[#allocation30_spill] sm:$0xff] %v3871_v45  ;;  %v1089_v6 = vpop.f32.mrf.mxu0  ;;  %v1376_v9 = vpop.f32.mrf.mxu1 }
 0x25b   : > { %1271 = vmatmul.f32.gmra.mxu2 %v954_v53  ;;  %v3877_v1 = vadd.f32 %v1376_v9, %v1089_v6 }
 0x25c   : > { %1558 = vmatmul.f32.gmra.mxu3 %v955_v61 }
 0x25d   : > { %1136 = vmatmul.f32.gmra.mxu0 %v864_v10  ;;  %1423 = vmatmul.f32.gmra.mxu1 %v865_v28 }
 0x25e   : > { %v1224_v16 = vpop.f32.mrf.mxu2 }
 0x25f   : > { %v1511_v21 = vpop.f32.mrf.mxu3 }
 0x260   : > { %v3879_v40 = vadd.f32 %v1511_v21, %v1224_v16 }
 0x262   : > { %4657 = vst [vmem:[#allocation31_spill] sm:$0xff] %v3879_v40  ;;  %v1092_v54 = vpop.f32.mrf.mxu0  ;;  %v1379_v31 = vpop.f32.mrf.mxu1 }
 0x263   : > { %v3881_v33 = vadd.f32 %v1379_v31, %v1092_v54 }
 0x266   : > { %v1227_v27 = vpop.f32.mrf.mxu2 }
 0x267   : > { %v1514_v0 = vpop.f32.mrf.mxu3 }
 0x268   : > { %v3883_v45 = vadd.f32 %v1514_v0, %v1227_v27 }
 0x26a   : > { %4658 = vst [vmem:[#allocation32_spill] sm:$0xff] %v3883_v45  ;;  %v1095_v42 = vpop.f32.mrf.mxu0  ;;  %v1382_v17 = vpop.f32.mrf.mxu1 }
 0x26b   : > { %v3885_v53 = vadd.f32 %v1382_v17, %v1095_v42 }
 0x26e   : > { %v1230_v61 = vpop.f32.mrf.mxu2 }
 0x26f   : > { %v1517_v6 = vpop.f32.mrf.mxu3 }
 0x270   : > { %v3887_v10 = vadd.f32 %v1517_v6, %v1230_v61 }
 0x272   : > { %4659 = vst [vmem:[#allocation33_spill] sm:$0xff] %v3887_v10  ;;  %v1098_v28 = vpop.f32.mrf.mxu0  ;;  %v1385_v9 = vpop.f32.mrf.mxu1 }
 0x273   : > { %v3889_v16 = vadd.f32 %v1385_v9, %v1098_v28 }
 0x276   : > { %v1233_v21 = vpop.f32.mrf.mxu2 }
 0x277   : > { %v1520_v40 = vpop.f32.mrf.mxu3 }
 0x278   : > { %v3891_v54 = vadd.f32 %v1520_v40, %v1233_v21 }
 0x27a   : > { %4660 = vst [vmem:[#allocation34_spill] sm:$0xff] %v3891_v54  ;;  %v1101_v31 = vpop.f32.mrf.mxu0  ;;  %v1388_v62 = vpop.f32.mrf.mxu1 }
 0x27b   : > { %v3893_v27 = vadd.f32 %v1388_v62, %v1101_v31 }
 0x27e   : > { %v1236_v0 = vpop.f32.mrf.mxu2 }
 0x27f   : > { %v1523_v45 = vpop.f32.mrf.mxu3 }
 0x280   : > { %v3895_v17 = vadd.f32 %v1523_v45, %v1236_v0 }
 0x282   : > { %4661 = vst [vmem:[#allocation35_spill] sm:$0xff] %v3895_v17  ;;  %v1104_v42 = vpop.f32.mrf.mxu0  ;;  %v1391_v43 = vpop.f32.mrf.mxu1 }
 0x283   : > { %v3897_v61 = vadd.f32 %v1391_v43, %v1104_v42 }
 0x286   : > { %v1239_v6 = vpop.f32.mrf.mxu2 }
 0x287   : > { %v1526_v10 = vpop.f32.mrf.mxu3 }
 0x288   : > { %v3899_v28 = vadd.f32 %v1526_v10, %v1239_v6 }
 0x28a   : > { %4662 = vst [vmem:[#allocation36_spill] sm:$0xff] %v3899_v28  ;;  %v1107_v9 = vpop.f32.mrf.mxu0  ;;  %v1394_v23 = vpop.f32.mrf.mxu1 }
 0x28b   : > { %v3901_v40 = vadd.f32 %v1394_v23, %v1107_v9 }
 0x28e   : > { %v1242_v21 = vpop.f32.mrf.mxu2 }
 0x28f   : > { %v1529_v54 = vpop.f32.mrf.mxu3 }
 0x290   : > { %v3903_v62 = vadd.f32 %v1529_v54, %v1242_v21 }
 0x292   : > { %4663 = vst [vmem:[#allocation37_spill] sm:$0xff] %v3903_v62  ;;  %v1110_v31 = vpop.f32.mrf.mxu0  ;;  %v1397_v7 = vpop.f32.mrf.mxu1 }
 0x293   : > { %v3905_v45 = vadd.f32 %v1397_v7, %v1110_v31 }
 0x296   : > { %v1245_v0 = vpop.f32.mrf.mxu2 }
 0x297   : > { %v1532_v17 = vpop.f32.mrf.mxu3 }
 0x298   : > { %v3907_v43 = vadd.f32 %v1532_v17, %v1245_v0 }
 0x29a   : > { %4664 = vst [vmem:[#allocation38_spill] sm:$0xff] %v3907_v43  ;;  %v1113_v42 = vpop.f32.mrf.mxu0  ;;  %v1400_v55 = vpop.f32.mrf.mxu1 }
 0x29b   : > { %v3909_v10 = vadd.f32 %v1400_v55, %v1113_v42 }
 0x29e   : > { %v1248_v6 = vpop.f32.mrf.mxu2 }
 0x29f   : > { %v1535_v28 = vpop.f32.mrf.mxu3 }
 0x2a0   : > { %v3911_v23 = vadd.f32 %v1535_v28, %v1248_v6 }
 0x2a2   : > { %4665 = vst [vmem:[#allocation39_spill] sm:$0xff] %v3911_v23  ;;  %v1116_v9 = vpop.f32.mrf.mxu0  ;;  %v1403_v41 = vpop.f32.mrf.mxu1 }
 0x2a3   : > { %v3913_v54 = vadd.f32 %v1403_v41, %v1116_v9 }
 0x2a6   : > { %v1251_v21 = vpop.f32.mrf.mxu2 }
 0x2a7   : > { %v1538_v62 = vpop.f32.mrf.mxu3 }
 0x2a8   : > { %v3915_v7 = vadd.f32 %v1538_v62, %v1251_v21 }
 0x2aa   : > { %4666 = vst [vmem:[#allocation40_spill] sm:$0xff] %v3915_v7  ;;  %v1119_v31 = vpop.f32.mrf.mxu0  ;;  %v1406_v24 = vpop.f32.mrf.mxu1 }
 0x2ab   : > { %v3917_v17 = vadd.f32 %v1406_v24, %v1119_v31 }
 0x2ae   : > { %v1254_v0 = vpop.f32.mrf.mxu2 }
 0x2af   : > { %v1541_v43 = vpop.f32.mrf.mxu3 }
 0x2b0   : > { %v3919_v55 = vadd.f32 %v1541_v43, %v1254_v0 }
 0x2b2   : > { %4667 = vst [vmem:[#allocation41_spill] sm:$0xff] %v3919_v55  ;;  %v1122_v42 = vpop.f32.mrf.mxu0  ;;  %v1409_v11 = vpop.f32.mrf.mxu1 }
 0x2b3   : > { %v3921_v28 = vadd.f32 %v1409_v11, %v1122_v42 }
 0x2b6   : > { %v1257_v6 = vpop.f32.mrf.mxu2 }
 0x2b7   : > { %v1544_v23 = vpop.f32.mrf.mxu3 }
 0x2b8   : > { %v3923_v41 = vadd.f32 %v1544_v23, %v1257_v6 }
 0x2ba   : > { %4668 = vst [vmem:[#allocation42_spill] sm:$0xff] %v3923_v41  ;;  %v1125_v9 = vpop.f32.mrf.mxu0  ;;  %v1412_v63 = vpop.f32.mrf.mxu1 }
 0x2bb   : > { %v3925_v62 = vadd.f32 %v1412_v63, %v1125_v9 }
 0x2be   : > { %v1260_v21 = vpop.f32.mrf.mxu2 }
 0x2bf   : > { %v1547_v7 = vpop.f32.mrf.mxu3 }
 0x2c0   : > { %v3927_v24 = vadd.f32 %v1547_v7, %v1260_v21 }
 0x2c2   : > { %4669 = vst [vmem:[#allocation43_spill] sm:$0xff] %v3927_v24  ;;  %v1128_v31 = vpop.f32.mrf.mxu0  ;;  %v1415_v51 = vpop.f32.mrf.mxu1 }
 0x2c3   : > { %v3929_v43 = vadd.f32 %v1415_v51, %v1128_v31 }
 0x2c6   : > { %v1263_v0 = vpop.f32.mrf.mxu2 }
 0x2c7   : > { %v1550_v55 = vpop.f32.mrf.mxu3 }
 0x2c8   : > { %v3931_v11 = vadd.f32 %v1550_v55, %v1263_v0 }
 0x2ca   : > { %4670 = vst [vmem:[#allocation44_spill] sm:$0xff] %v3931_v11  ;;  %v1131_v42 = vpop.f32.mrf.mxu0  ;;  %v1418_v38 = vpop.f32.mrf.mxu1 }
 0x2cb   : > { %v3933_v23 = vadd.f32 %v1418_v38, %v1131_v42 }
 0x2ce   : > { %v1266_v6 = vpop.f32.mrf.mxu2 }
 0x2cf   : > { %v1553_v41 = vpop.f32.mrf.mxu3 }
 0x2d0   : > { %v3935_v63 = vadd.f32 %v1553_v41, %v1266_v6 }
 0x2d2   : > { %4671 = vst [vmem:[#allocation45_spill] sm:$0xff] %v3935_v63  ;;  %v1134_v9 = vpop.f32.mrf.mxu0  ;;  %v1421_v25 = vpop.f32.mrf.mxu1 }
 0x2d3   : > { %v3937_v7 = vadd.f32 %v1421_v25, %v1134_v9 }
 0x2d6   : > { %v1269_v21 = vpop.f32.mrf.mxu2 }
 0x2d7   : > { %v1556_v24 = vpop.f32.mrf.mxu3 }
 0x2d8   : > { %v3939_v51 = vadd.f32 %v1556_v24, %v1269_v21 }
 0x2da   : > { %4672 = vst [vmem:[#allocation46_spill] sm:$0xff] %v3939_v51  ;;  %v1137_v31 = vpop.f32.mrf.mxu0  ;;  %v1424_v15 = vpop.f32.mrf.mxu1 }
 0x2db   : > { %v3941_v55 = vadd.f32 %v1424_v15, %v1137_v31 }
 0x2de   : > { %v1272_v0 = vpop.f32.mrf.mxu2  ;;  %1565 = sbr.rel (%p2769_p13) target bundleno = 830 (0x33e), region = 83 }
 0x2df   : > { %v1559_v11 = vpop.f32.mrf.mxu3 }
 0x2e0   : > { %v3943_v38 = vadd.f32 %v1559_v11, %v1272_v0 }
 0x2e2   : > { %4673 = vst [vmem:[#allocation47_spill] sm:$0xff] %v3943_v38 }
 0x2e3   : > { %vm1566_vm0 = vcmask 15360   ;;  %v4674_v15 = vld [vmem:[#allocation8_spill] sm:$0xff]  ;;  %v4675_v25 = vld [vmem:[#allocation9_spill] sm:$0xff]  ;;  %v4676_v41 = vld [vmem:[#allocation10_spill] sm:$0xff] }
 0x2e4   : > { %1567 = vst.msk [vmem:[#allocation2] sm:$0xff] %vm1566_vm0, %v3653_v26  ;;  %v4677_v24 = vld [vmem:[#allocation11_spill] sm:$0xff]  ;;  %v4678_v11 = vld [vmem:[#allocation12_spill] sm:$0xff]  ;;  %v4679_v42 = vld [vmem:[#allocation13_spill] sm:$0xff] }
 0x2e5   : > { %1568 = vst.msk [vmem:[#allocation2 + $0x8] sm:$0xff] %vm1566_vm0, %v3661_v36  ;;  %v4680_v6 = vld [vmem:[#allocation14_spill] sm:$0xff]  ;;  %v4681_v9 = vld [vmem:[#allocation15_spill] sm:$0xff]  ;;  %v4682_v21 = vld [vmem:[#allocation16_spill] sm:$0xff] }
 0x2e6   : > { %1569 = vst.msk [vmem:[#allocation2 + $0x10] sm:$0xff] %vm1566_vm0, %v3669_v46  ;;  %v4683_v31 = vld [vmem:[#allocation17_spill] sm:$0xff]  ;;  %v4684_v0 = vld [vmem:[#allocation18_spill] sm:$0xff] }
 0x2e7   : > { %1570 = vst.msk [vmem:[#allocation2 + $0x18] sm:$0xff] %vm1566_vm0, %v3677_v56 }
 0x2e8   : > { %1571 = vst.msk [vmem:[#allocation2 + $0x20] sm:$0xff] %vm1566_vm0, %v3685_v2 }
 0x2e9   : > { %1572 = vst.msk [vmem:[#allocation2 + $0x28] sm:$0xff] %vm1566_vm0, %v3693_v12 }
 0x2ea   : > { %1573 = vst.msk [vmem:[#allocation2 + $0x30] sm:$0xff] %vm1566_vm0, %v3701_v22 }
 0x2eb   : > { %1574 = vst.msk [vmem:[#allocation2 + $0x38] sm:$0xff] %vm1566_vm0, %v3709_v34 }
 0x2ec   : > { %1575 = vst.msk [vmem:[#allocation2 + $0x40] sm:$0xff] %vm1566_vm0, %v3717_v47 }
 0x2ed   : > { %1576 = vst.msk [vmem:[#allocation2 + $0x48] sm:$0xff] %vm1566_vm0, %v3725_v60 }
 0x2ee   : > { %1577 = vst.msk [vmem:[#allocation2 + $0x50] sm:$0xff] %vm1566_vm0, %v3733_v8 }
 0x2ef   : > { %1578 = vst.msk [vmem:[#allocation2 + $0x58] sm:$0xff] %vm1566_vm0, %v3741_v20 }
 0x2f0   : > { %1579 = vst.msk [vmem:[#allocation2 + $0x60] sm:$0xff] %vm1566_vm0, %v3749_v35 }
 0x2f1   : > { %1580 = vst.msk [vmem:[#allocation2 + $0x68] sm:$0xff] %vm1566_vm0, %v3757_v52 }
 0x2f2   : > { %1581 = vst.msk [vmem:[#allocation2 + $0x70] sm:$0xff] %vm1566_vm0, %v3765_v3 }
 0x2f3   : > { %1582 = vst.msk [vmem:[#allocation2 + $0x78] sm:$0xff] %vm1566_vm0, %v3773_v18 }
 0x2f4   : > { %1583 = vst.msk [vmem:[#allocation2 + $0x80] sm:$0xff] %vm1566_vm0, %v3781_v37 }
 0x2f5   : > { %1584 = vst.msk [vmem:[#allocation2 + $0x88] sm:$0xff] %vm1566_vm0, %v3789_v57 }
 0x2f6   : > { %1585 = vst.msk [vmem:[#allocation2 + $0x90] sm:$0xff] %vm1566_vm0, %v3797_v13 }
 0x2f7   : > { %1586 = vst.msk [vmem:[#allocation2 + $0x98] sm:$0xff] %vm1566_vm0, %v3805_v32 }
 0x2f8   : > { %1587 = vst.msk [vmem:[#allocation2 + $0xa0] sm:$0xff] %vm1566_vm0, %v3813_v58 }
 0x2f9   : > { %1588 = vst.msk [vmem:[#allocation2 + $0xa8] sm:$0xff] %vm1566_vm0, %v3821_v19 }
 0x2fa   : > { %1589 = vst.msk [vmem:[#allocation2 + $0xb0] sm:$0xff] %vm1566_vm0, %v3829_v48 }
 0x2fb   : > { %1590 = vst.msk [vmem:[#allocation2 + $0xb8] sm:$0xff] %vm1566_vm0, %v3837_v14 }
 0x2fc   : > { %1591 = vst.msk [vmem:[#allocation2 + $0xc0] sm:$0xff] %vm1566_vm0, %v3845_v50 }
 0x2fd   : > { %1592 = vst.msk [vmem:[#allocation2 + $0xc8] sm:$0xff] %vm1566_vm0, %v3853_v30 }
 0x2fe   : > { %1593 = vst.msk [vmem:[#allocation2 + $0xd0] sm:$0xff] %vm1566_vm0, %v3861_v4 }
 0x2ff   : > { %1594 = vst.msk [vmem:[#allocation2 + $0xd8] sm:$0xff] %vm1566_vm0, %v3869_v44 }
 0x300   : > { %1595 = vst.msk [vmem:[#allocation2 + $0xe0] sm:$0xff] %vm1566_vm0, %v3877_v1 }
 0x301   : > { %1596 = vst.msk [vmem:[#allocation2 + $0xe8] sm:$0xff] %vm1566_vm0, %v3881_v33 }
 0x302   : > { %1597 = vst.msk [vmem:[#allocation2 + $0xf0] sm:$0xff] %vm1566_vm0, %v3885_v53 }
 0x303   : > { %1598 = vst.msk [vmem:[#allocation2 + $0xf8] sm:$0xff] %vm1566_vm0, %v3889_v16 }
 0x304   : > { %1599 = vst.msk [vmem:[#allocation2 + $0x100] sm:$0xff] %vm1566_vm0, %v3893_v27 }
 0x305   : > { %1600 = vst.msk [vmem:[#allocation2 + $0x108] sm:$0xff] %vm1566_vm0, %v3897_v61 }
 0x306   : > { %1601 = vst.msk [vmem:[#allocation2 + $0x110] sm:$0xff] %vm1566_vm0, %v3901_v40 }
 0x307   : > { %1602 = vst.msk [vmem:[#allocation2 + $0x118] sm:$0xff] %vm1566_vm0, %v3905_v45 }
 0x308   : > { %1603 = vst.msk [vmem:[#allocation2 + $0x120] sm:$0xff] %vm1566_vm0, %v3909_v10 }
 0x309   : > { %1604 = vst.msk [vmem:[#allocation2 + $0x128] sm:$0xff] %vm1566_vm0, %v3913_v54 }
 0x30a   : > { %1605 = vst.msk [vmem:[#allocation2 + $0x130] sm:$0xff] %vm1566_vm0, %v3917_v17 }
 0x30b   : > { %1606 = vst.msk [vmem:[#allocation2 + $0x138] sm:$0xff] %vm1566_vm0, %v3921_v28 }
 0x30c   : > { %1607 = vst.msk [vmem:[#allocation2 + $0x140] sm:$0xff] %vm1566_vm0, %v3925_v62 }
 0x30d   : > { %1608 = vst.msk [vmem:[#allocation2 + $0x148] sm:$0xff] %vm1566_vm0, %v3929_v43 }
 0x30e   : > { %1609 = vst.msk [vmem:[#allocation2 + $0x150] sm:$0xff] %vm1566_vm0, %v3933_v23 }
 0x30f   : > { %1610 = vst.msk [vmem:[#allocation2 + $0x158] sm:$0xff] %vm1566_vm0, %v3937_v7 }
 0x310   : > { %1611 = vst.msk [vmem:[#allocation2 + $0x160] sm:$0xff] %vm1566_vm0, %v3941_v55 }
 0x311   : > { %1612 = vst.msk [vmem:[#allocation2 + $0x168] sm:$0xff] %vm1566_vm0, %v3655_v29 }
 0x312   : > { %1613 = vst.msk [vmem:[#allocation2 + $0x170] sm:$0xff] %vm1566_vm0, %v3663_v39 }
 0x313   : > { %1614 = vst.msk [vmem:[#allocation2 + $0x178] sm:$0xff] %vm1566_vm0, %v3671_v49 }
 0x314   : > { %1615 = vst.msk [vmem:[#allocation2 + $0x180] sm:$0xff] %vm1566_vm0, %v3679_v59 }
 0x315   : > { %1616 = vst.msk [vmem:[#allocation2 + $0x188] sm:$0xff] %vm1566_vm0, %v3687_v5 }
 0x316   : > { %1617 = vst.msk [vmem:[#allocation2 + $0x190] sm:$0xff] %vm1566_vm0, %v4674_v15  ;;  %v4685_v15 = vld [vmem:[#allocation19_spill] sm:$0xff] }
 0x317   : > { %1618 = vst.msk [vmem:[#allocation2 + $0x198] sm:$0xff] %vm1566_vm0, %v4675_v25  ;;  %v4686_v25 = vld [vmem:[#allocation20_spill] sm:$0xff] }
 0x318   : > { %1619 = vst.msk [vmem:[#allocation2 + $0x1a0] sm:$0xff] %vm1566_vm0, %v4676_v41  ;;  %v4687_v41 = vld [vmem:[#allocation21_spill] sm:$0xff] }
 0x319   : > { %1620 = vst.msk [vmem:[#allocation2 + $0x1a8] sm:$0xff] %vm1566_vm0, %v4677_v24  ;;  %v4688_v24 = vld [vmem:[#allocation22_spill] sm:$0xff] }
 0x31a   : > { %1621 = vst.msk [vmem:[#allocation2 + $0x1b0] sm:$0xff] %vm1566_vm0, %v4678_v11  ;;  %v4689_v11 = vld [vmem:[#allocation23_spill] sm:$0xff] }
 0x31b   : > { %1622 = vst.msk [vmem:[#allocation2 + $0x1b8] sm:$0xff] %vm1566_vm0, %v4679_v42  ;;  %v4690_v42 = vld [vmem:[#allocation24_spill] sm:$0xff] }
 0x31c   : > { %1623 = vst.msk [vmem:[#allocation2 + $0x1c0] sm:$0xff] %vm1566_vm0, %v4680_v6  ;;  %v4691_v6 = vld [vmem:[#allocation25_spill] sm:$0xff] }
 0x31d   : > { %1624 = vst.msk [vmem:[#allocation2 + $0x1c8] sm:$0xff] %vm1566_vm0, %v4681_v9  ;;  %v4692_v9 = vld [vmem:[#allocation26_spill] sm:$0xff] }
 0x31e   : > { %1625 = vst.msk [vmem:[#allocation2 + $0x1d0] sm:$0xff] %vm1566_vm0, %v4682_v21  ;;  %v4693_v21 = vld [vmem:[#allocation27_spill] sm:$0xff] }
 0x31f   : > { %1626 = vst.msk [vmem:[#allocation2 + $0x1d8] sm:$0xff] %vm1566_vm0, %v4683_v31  ;;  %v4694_v31 = vld [vmem:[#allocation28_spill] sm:$0xff] }
 0x320   : > { %1627 = vst.msk [vmem:[#allocation2 + $0x1e0] sm:$0xff] %vm1566_vm0, %v4684_v0  ;;  %v4695_v0 = vld [vmem:[#allocation29_spill] sm:$0xff] }
 0x321   : > { %1628 = vst.msk [vmem:[#allocation2 + $0x1e8] sm:$0xff] %vm1566_vm0, %v4685_v15  ;;  %v4696_v15 = vld [vmem:[#allocation30_spill] sm:$0xff] }
 0x322   : > { %1629 = vst.msk [vmem:[#allocation2 + $0x1f0] sm:$0xff] %vm1566_vm0, %v4686_v25  ;;  %v4697_v25 = vld [vmem:[#allocation31_spill] sm:$0xff] }
 0x323   : > { %1630 = vst.msk [vmem:[#allocation2 + $0x1f8] sm:$0xff] %vm1566_vm0, %v4687_v41  ;;  %v4698_v41 = vld [vmem:[#allocation32_spill] sm:$0xff] }
 0x324   : > { %1631 = vst.msk [vmem:[#allocation2 + $0x200] sm:$0xff] %vm1566_vm0, %v4688_v24  ;;  %v4699_v24 = vld [vmem:[#allocation33_spill] sm:$0xff] }
 0x325   : > { %1632 = vst.msk [vmem:[#allocation2 + $0x208] sm:$0xff] %vm1566_vm0, %v4689_v11  ;;  %v4700_v11 = vld [vmem:[#allocation34_spill] sm:$0xff] }
 0x326   : > { %1633 = vst.msk [vmem:[#allocation2 + $0x210] sm:$0xff] %vm1566_vm0, %v4690_v42  ;;  %v4701_v42 = vld [vmem:[#allocation35_spill] sm:$0xff] }
 0x327   : > { %1634 = vst.msk [vmem:[#allocation2 + $0x218] sm:$0xff] %vm1566_vm0, %v4691_v6  ;;  %v4702_v6 = vld [vmem:[#allocation36_spill] sm:$0xff] }
 0x328   : > { %1635 = vst.msk [vmem:[#allocation2 + $0x220] sm:$0xff] %vm1566_vm0, %v4692_v9  ;;  %v4703_v9 = vld [vmem:[#allocation37_spill] sm:$0xff] }
 0x329   : > { %1636 = vst.msk [vmem:[#allocation2 + $0x228] sm:$0xff] %vm1566_vm0, %v4693_v21  ;;  %v4704_v21 = vld [vmem:[#allocation38_spill] sm:$0xff] }
 0x32a   : > { %1637 = vst.msk [vmem:[#allocation2 + $0x230] sm:$0xff] %vm1566_vm0, %v4694_v31  ;;  %v4705_v31 = vld [vmem:[#allocation39_spill] sm:$0xff] }
 0x32b   : > { %1638 = vst.msk [vmem:[#allocation2 + $0x238] sm:$0xff] %vm1566_vm0, %v4695_v0  ;;  %v4706_v0 = vld [vmem:[#allocation40_spill] sm:$0xff] }
 0x32c   : > { %1639 = vst.msk [vmem:[#allocation2 + $0x240] sm:$0xff] %vm1566_vm0, %v4696_v15  ;;  %v4707_v15 = vld [vmem:[#allocation41_spill] sm:$0xff] }
 0x32d   : > { %1640 = vst.msk [vmem:[#allocation2 + $0x248] sm:$0xff] %vm1566_vm0, %v4697_v25  ;;  %v4708_v25 = vld [vmem:[#allocation42_spill] sm:$0xff] }
 0x32e   : > { %1641 = vst.msk [vmem:[#allocation2 + $0x250] sm:$0xff] %vm1566_vm0, %v4698_v41  ;;  %v4709_v41 = vld [vmem:[#allocation43_spill] sm:$0xff] }
 0x32f   : > { %1642 = vst.msk [vmem:[#allocation2 + $0x258] sm:$0xff] %vm1566_vm0, %v4699_v24  ;;  %v4710_v24 = vld [vmem:[#allocation44_spill] sm:$0xff] }
 0x330   : > { %1643 = vst.msk [vmem:[#allocation2 + $0x260] sm:$0xff] %vm1566_vm0, %v4700_v11 }
 0x331   : > { %1644 = vst.msk [vmem:[#allocation2 + $0x268] sm:$0xff] %vm1566_vm0, %v4701_v42 }
 0x332   : > { %1645 = vst.msk [vmem:[#allocation2 + $0x270] sm:$0xff] %vm1566_vm0, %v4702_v6 }
 0x333   : > { %1646 = vst.msk [vmem:[#allocation2 + $0x278] sm:$0xff] %vm1566_vm0, %v4703_v9 }
 0x334   : > { %1647 = vst.msk [vmem:[#allocation2 + $0x280] sm:$0xff] %vm1566_vm0, %v4704_v21 }
 0x335   : > { %1648 = vst.msk [vmem:[#allocation2 + $0x288] sm:$0xff] %vm1566_vm0, %v4705_v31 }
 0x336   : > { %1649 = vst.msk [vmem:[#allocation2 + $0x290] sm:$0xff] %vm1566_vm0, %v4706_v0 }
 0x337   : > { %1650 = vst.msk [vmem:[#allocation2 + $0x298] sm:$0xff] %vm1566_vm0, %v4707_v15 }
 0x338   : > { %1651 = vst.msk [vmem:[#allocation2 + $0x2a0] sm:$0xff] %vm1566_vm0, %v4708_v25 }
 0x339   : > { %1652 = vst.msk [vmem:[#allocation2 + $0x2a8] sm:$0xff] %vm1566_vm0, %v4709_v41 }
 0x33a   : > { %1653 = vst.msk [vmem:[#allocation2 + $0x2b0] sm:$0xff] %vm1566_vm0, %v4710_v24 }
 0x33b   : > { %1654 = vst.msk [vmem:[#allocation2 + $0x2b8] sm:$0xff] %vm1566_vm0, %v3935_v63 }
 0x33c   : > { %1655 = vst.msk [vmem:[#allocation2 + $0x2c0] sm:$0xff] %vm1566_vm0, %v3939_v51 }
 0x33d   : > { %1656 = vst.msk [vmem:[#allocation2 + $0x2c8] sm:$0xff] %vm1566_vm0, %v3943_v38 }
 0x33e PF: > { %p2770_p0 = scmp.eq.s32.totalorder %s4769_s0, 0 }
 0x340   : > { %1660 = sbr.rel (%p2770_p0) target bundleno = 930 (0x3a2), region = 87 }
 0x345   : > { %v1661_v11 = vld [vmem:[#allocation2] sm:$0xff]  ;;  %vm1841_vm1 = vcmask 15360   ;;  %v1662_v42 = vld [vmem:[#allocation2 + $0x8] sm:$0xff]  ;;  %v1663_v6 = vld [vmem:[#allocation2 + $0x10] sm:$0xff] }
 0x346   : > { %v1751_v9 = vadd.f32 %v1661_v11, %v3653_v26  ;;  %v1752_v21 = vadd.f32 %v1662_v42, %v3661_v36  ;;  %v1753_v31 = vadd.f32 %v1663_v6, %v3669_v46  ;;  %v1664_v0 = vld [vmem:[#allocation2 + $0x18] sm:$0xff]  ;;  %v1665_v15 = vld [vmem:[#allocation2 + $0x20] sm:$0xff]  ;;  %v1666_v25 = vld [vmem:[#allocation2 + $0x28] sm:$0xff] }
 0x347   : > { %v1754_v41 = vadd.f32 %v1664_v0, %v3677_v56  ;;  %v1667_v24 = vld [vmem:[#allocation2 + $0x30] sm:$0xff]  ;;  %v1755_v38 = vadd.f32 %v1665_v15, %v3685_v2  ;;  %v1668_v51 = vld [vmem:[#allocation2 + $0x38] sm:$0xff]  ;;  %v1756_v63 = vadd.f32 %v1666_v25, %v3693_v12  ;;  %v1669_v26 = vld [vmem:[#allocation2 + $0x40] sm:$0xff] }
 0x348   : > { %1842 = vst.msk [vmem:[#allocation2] sm:$0xff] %vm1841_vm1, %v1751_v9  ;;  %v1757_v36 = vadd.f32 %v1667_v24, %v3701_v22  ;;  %v1670_v46 = vld [vmem:[#allocation2 + $0x48] sm:$0xff]  ;;  %v1758_v56 = vadd.f32 %v1668_v51, %v3709_v34  ;;  %v1671_v11 = vld [vmem:[#allocation2 + $0x50] sm:$0xff]  ;;  %v1759_v2 = vadd.f32 %v1669_v26, %v3717_v47  ;;  %v1672_v42 = vld [vmem:[#allocation2 + $0x58] sm:$0xff] }
 0x349   : > { %1843 = vst.msk [vmem:[#allocation2 + $0x8] sm:$0xff] %vm1841_vm1, %v1752_v21  ;;  %v1760_v12 = vadd.f32 %v1670_v46, %v3725_v60  ;;  %v1673_v6 = vld [vmem:[#allocation2 + $0x60] sm:$0xff]  ;;  %v1761_v22 = vadd.f32 %v1671_v11, %v3733_v8  ;;  %v1674_v9 = vld [vmem:[#allocation2 + $0x68] sm:$0xff]  ;;  %v1762_v34 = vadd.f32 %v1672_v42, %v3741_v20  ;;  %v1675_v51 = vld [vmem:[#allocation2 + $0x70] sm:$0xff] }
 0x34a   : > { %1844 = vst.msk [vmem:[#allocation2 + $0x10] sm:$0xff] %vm1841_vm1, %v1753_v31  ;;  %v1763_v47 = vadd.f32 %v1673_v6, %v3749_v35  ;;  %v1764_v60 = vadd.f32 %v1674_v9, %v3757_v52  ;;  %v1765_v8 = vadd.f32 %v1675_v51, %v3765_v3  ;;  %v1678_v21 = vld [vmem:[#allocation2 + $0x88] sm:$0xff]  ;;  %v1679_v31 = vld [vmem:[#allocation2 + $0x90] sm:$0xff]  ;;  %v1680_v0 = vld [vmem:[#allocation2 + $0x98] sm:$0xff] }
 0x34b   : > { %1845 = vst.msk [vmem:[#allocation2 + $0x18] sm:$0xff] %vm1841_vm1, %v1754_v41  ;;  %v1768_v52 = vadd.f32 %v1678_v21, %v3789_v57  ;;  %v1681_v15 = vld [vmem:[#allocation2 + $0xa0] sm:$0xff]  ;;  %v1769_v3 = vadd.f32 %v1679_v31, %v3797_v13  ;;  %v1682_v25 = vld [vmem:[#allocation2 + $0xa8] sm:$0xff]  ;;  %v1683_v41 = vld [vmem:[#allocation2 + $0xb0] sm:$0xff] }
 0x34c   : > { %1846 = vst.msk [vmem:[#allocation2 + $0x20] sm:$0xff] %vm1841_vm1, %v1755_v38  ;;  %v1676_v38 = vld [vmem:[#allocation2 + $0x78] sm:$0xff]  ;;  %v1772_v57 = vadd.f32 %v1682_v25, %v3821_v19  ;;  %v1685_v26 = vld [vmem:[#allocation2 + $0xc0] sm:$0xff]  ;;  %v1773_v13 = vadd.f32 %v1683_v41, %v3829_v48  ;;  %v1687_v46 = vld [vmem:[#allocation2 + $0xd0] sm:$0xff] }
 0x34d   : > { %1847 = vst.msk [vmem:[#allocation2 + $0x28] sm:$0xff] %vm1841_vm1, %v1756_v63  ;;  %v1677_v63 = vld [vmem:[#allocation2 + $0x80] sm:$0xff]  ;;  %v1766_v20 = vadd.f32 %v1676_v38, %v3773_v18  ;;  %v1770_v18 = vadd.f32 %v1680_v0, %v3805_v32  ;;  %v1684_v24 = vld [vmem:[#allocation2 + $0xb8] sm:$0xff]  ;;  %v1777_v48 = vadd.f32 %v1687_v46, %v3861_v4  ;;  %v1691_v42 = vld [vmem:[#allocation2 + $0xf0] sm:$0xff] }
 0x34e   : > { %1848 = vst.msk [vmem:[#allocation2 + $0x30] sm:$0xff] %vm1841_vm1, %v1757_v36  ;;  %v1767_v35 = vadd.f32 %v1677_v63, %v3781_v37  ;;  %v1771_v37 = vadd.f32 %v1681_v15, %v3813_v58  ;;  %v1686_v36 = vld [vmem:[#allocation2 + $0xc8] sm:$0xff]  ;;  %v1774_v32 = vadd.f32 %v1684_v24, %v3837_v14  ;;  %v1775_v58 = vadd.f32 %v1685_v26, %v3845_v50  ;;  %v1689_v11 = vld [vmem:[#allocation2 + $0xe0] sm:$0xff]  ;;  %v1695_v9 = vld [vmem:[#allocation2 + $0x110] sm:$0xff] }
 0x34f   : > { %1849 = vst.msk [vmem:[#allocation2 + $0x38] sm:$0xff] %vm1841_vm1, %v1758_v56  ;;  %v1688_v56 = vld [vmem:[#allocation2 + $0xd8] sm:$0xff]  ;;  %v1776_v19 = vadd.f32 %v1686_v36, %v3853_v30  ;;  %v1779_v50 = vadd.f32 %v1689_v11, %v3877_v1  ;;  %v1693_v6 = vld [vmem:[#allocation2 + $0x100] sm:$0xff]  ;;  %v1781_v4 = vadd.f32 %v1691_v42, %v3885_v53  ;;  %v1785_v53 = vadd.f32 %v1695_v9, %v3901_v40  ;;  %v1699_v38 = vld [vmem:[#allocation2 + $0x130] sm:$0xff] }
 0x350   : > { %1850 = vst.msk [vmem:[#allocation2 + $0x40] sm:$0xff] %vm1841_vm1, %v1759_v2  ;;  %v1690_v2 = vld [vmem:[#allocation2 + $0xe8] sm:$0xff]  ;;  %v1778_v14 = vadd.f32 %v1688_v56, %v3869_v44  ;;  %v1783_v1 = vadd.f32 %v1693_v6, %v3893_v27  ;;  %v1697_v51 = vld [vmem:[#allocation2 + $0x120] sm:$0xff]  ;;  %v1789_v40 = vadd.f32 %v1699_v38, %v3917_v17  ;;  %v1703_v21 = vld [vmem:[#allocation2 + $0x150] sm:$0xff] }
 0x351   : > { %1851 = vst.msk [vmem:[#allocation2 + $0x48] sm:$0xff] %vm1841_vm1, %v1760_v12  ;;  %v1692_v12 = vld [vmem:[#allocation2 + $0xf8] sm:$0xff]  ;;  %v1780_v30 = vadd.f32 %v1690_v2, %v3881_v33  ;;  %v1787_v27 = vadd.f32 %v1697_v51, %v3909_v10  ;;  %v1701_v63 = vld [vmem:[#allocation2 + $0x140] sm:$0xff]  ;;  %v1793_v17 = vadd.f32 %v1703_v21, %v3933_v23  ;;  %v1707_v0 = vld [vmem:[#allocation2 + $0x170] sm:$0xff] }
 0x352   : > { %1852 = vst.msk [vmem:[#allocation2 + $0x50] sm:$0xff] %vm1841_vm1, %v1761_v22  ;;  %v1694_v22 = vld [vmem:[#allocation2 + $0x108] sm:$0xff]  ;;  %v1782_v44 = vadd.f32 %v1692_v12, %v3889_v16  ;;  %v1791_v10 = vadd.f32 %v1701_v63, %v3925_v62  ;;  %v1705_v31 = vld [vmem:[#allocation2 + $0x160] sm:$0xff]  ;;  %v1797_v23 = vadd.f32 %v1707_v0, %v3663_v39  ;;  %v1711_v25 = vld [vmem:[#allocation2 + $0x190] sm:$0xff] }
 0x353   : > { %1853 = vst.msk [vmem:[#allocation2 + $0x58] sm:$0xff] %vm1841_vm1, %v1762_v34  ;;  %v1696_v34 = vld [vmem:[#allocation2 + $0x118] sm:$0xff]  ;;  %v1784_v33 = vadd.f32 %v1694_v22, %v3897_v61  ;;  %v1795_v62 = vadd.f32 %v1705_v31, %v3941_v55  ;;  %v1709_v15 = vld [vmem:[#allocation2 + $0x180] sm:$0xff]  ;;  %v1714_v24 = vld [vmem:[#allocation2 + $0x1a8] sm:$0xff] }
 0x354   : > { %1854 = vst.msk [vmem:[#allocation2 + $0x60] sm:$0xff] %vm1841_vm1, %v1763_v47  ;;  %v1698_v47 = vld [vmem:[#allocation2 + $0x128] sm:$0xff]  ;;  %v1786_v16 = vadd.f32 %v1696_v34, %v3905_v45  ;;  %v1799_v55 = vadd.f32 %v1709_v15, %v3679_v59  ;;  %v1713_v41 = vld [vmem:[#allocation2 + $0x1a0] sm:$0xff]  ;;  %v1715_v26 = vld [vmem:[#allocation2 + $0x1b0] sm:$0xff] }
 0x355   : > { %1855 = vst.msk [vmem:[#allocation2 + $0x68] sm:$0xff] %vm1841_vm1, %v1764_v60  ;;  %v1700_v60 = vld [vmem:[#allocation2 + $0x138] sm:$0xff]  ;;  %v1788_v61 = vadd.f32 %v1698_v47, %v3913_v54  ;;  %v1717_v46 = vld [vmem:[#allocation2 + $0x1c0] sm:$0xff]  ;;  %v1719_v2 = vld [vmem:[#allocation2 + $0x1d0] sm:$0xff] }
 0x356   : > { %1856 = vst.msk [vmem:[#allocation2 + $0x70] sm:$0xff] %vm1841_vm1, %v1765_v8  ;;  %v1702_v8 = vld [vmem:[#allocation2 + $0x148] sm:$0xff]  ;;  %v1790_v45 = vadd.f32 %v1700_v60, %v3921_v28  ;;  %v1716_v36 = vld [vmem:[#allocation2 + $0x1b8] sm:$0xff]  ;;  %v4716_v11 = vld [vmem:[#allocation13_spill] sm:$0xff] }
 0x357   : > { %1857 = vst.msk [vmem:[#allocation2 + $0x78] sm:$0xff] %vm1841_vm1, %v1766_v20  ;;  %v1704_v20 = vld [vmem:[#allocation2 + $0x158] sm:$0xff]  ;;  %v1792_v54 = vadd.f32 %v1702_v8, %v3929_v43  ;;  %v4718_v12 = vld [vmem:[#allocation15_spill] sm:$0xff]  ;;  %v1721_v6 = vld [vmem:[#allocation2 + $0x1e0] sm:$0xff] }
 0x358   : > { %1858 = vst.msk [vmem:[#allocation2 + $0x80] sm:$0xff] %vm1841_vm1, %v1767_v35  ;;  %v1706_v35 = vld [vmem:[#allocation2 + $0x168] sm:$0xff]  ;;  %v1794_v28 = vadd.f32 %v1704_v20, %v3937_v7  ;;  %v4720_v9 = vld [vmem:[#allocation17_spill] sm:$0xff]  ;;  %v1723_v34 = vld [vmem:[#allocation2 + $0x1f0] sm:$0xff] }
 0x359   : > { %1859 = vst.msk [vmem:[#allocation2 + $0x88] sm:$0xff] %vm1841_vm1, %v1768_v52  ;;  %v1708_v52 = vld [vmem:[#allocation2 + $0x178] sm:$0xff]  ;;  %v1796_v43 = vadd.f32 %v1706_v35, %v3655_v29  ;;  %v4722_v47 = vld [vmem:[#allocation19_spill] sm:$0xff]  ;;  %v1725_v38 = vld [vmem:[#allocation2 + $0x200] sm:$0xff] }
 0x35a   : > { %1860 = vst.msk [vmem:[#allocation2 + $0x90] sm:$0xff] %vm1841_vm1, %v1769_v3  ;;  %v1710_v3 = vld [vmem:[#allocation2 + $0x188] sm:$0xff]  ;;  %v1798_v7 = vadd.f32 %v1708_v52, %v3671_v49  ;;  %v4724_v63 = vld [vmem:[#allocation21_spill] sm:$0xff]  ;;  %v1727_v8 = vld [vmem:[#allocation2 + $0x210] sm:$0xff] }
 0x35b   : > { %1861 = vst.msk [vmem:[#allocation2 + $0x98] sm:$0xff] %vm1841_vm1, %v1770_v18  ;;  %v1712_v18 = vld [vmem:[#allocation2 + $0x198] sm:$0xff]  ;;  %v1800_v29 = vadd.f32 %v1710_v3, %v3687_v5  ;;  %v4726_v20 = vld [vmem:[#allocation23_spill] sm:$0xff]  ;;  %v1729_v31 = vld [vmem:[#allocation2 + $0x220] sm:$0xff] }
 0x35c   : > { %1862 = vst.msk [vmem:[#allocation2 + $0xa0] sm:$0xff] %vm1841_vm1, %v1771_v37  ;;  %v4711_v37 = vld [vmem:[#allocation8_spill] sm:$0xff]  ;;  %v4728_v0 = vld [vmem:[#allocation25_spill] sm:$0xff]  ;;  %v1731_v52 = vld [vmem:[#allocation2 + $0x230] sm:$0xff] }
 0x35d   : > { %1863 = vst.msk [vmem:[#allocation2 + $0xa8] sm:$0xff] %vm1841_vm1, %v1772_v57  ;;  %v1801_v39 = vadd.f32 %v1711_v25, %v4711_v37  ;;  %v4712_v57 = vld [vmem:[#allocation9_spill] sm:$0xff]  ;;  %v4730_v3 = vld [vmem:[#allocation27_spill] sm:$0xff] }
 0x35e   : > { %1864 = vst.msk [vmem:[#allocation2 + $0xb0] sm:$0xff] %vm1841_vm1, %v1773_v13  ;;  %v1802_v49 = vadd.f32 %v1712_v18, %v4712_v57  ;;  %v4713_v13 = vld [vmem:[#allocation10_spill] sm:$0xff]  ;;  %v1733_v25 = vld [vmem:[#allocation2 + $0x240] sm:$0xff] }
 0x35f   : > { %1865 = vst.msk [vmem:[#allocation2 + $0xb8] sm:$0xff] %vm1841_vm1, %v1774_v32  ;;  %v1803_v59 = vadd.f32 %v1713_v41, %v4713_v13  ;;  %v4714_v32 = vld [vmem:[#allocation11_spill] sm:$0xff]  ;;  %v4732_v41 = vld [vmem:[#allocation29_spill] sm:$0xff] }
 0x360   : > { %1866 = vst.msk [vmem:[#allocation2 + $0xc0] sm:$0xff] %vm1841_vm1, %v1775_v58  ;;  %v1804_v5 = vadd.f32 %v1714_v24, %v4714_v32  ;;  %v4715_v58 = vld [vmem:[#allocation12_spill] sm:$0xff]  ;;  %v4733_v24 = vld [vmem:[#allocation30_spill] sm:$0xff] }
 0x361   : > { %1867 = vst.msk [vmem:[#allocation2 + $0xc8] sm:$0xff] %vm1841_vm1, %v1776_v19  ;;  %v1805_v56 = vadd.f32 %v1715_v26, %v4715_v58  ;;  %v1718_v19 = vld [vmem:[#allocation2 + $0x1c8] sm:$0xff]  ;;  %v1823_v57 = vadd.f32 %v1733_v25, %v4733_v24  ;;  %v4734_v26 = vld [vmem:[#allocation31_spill] sm:$0xff] }
 0x362   : > { %1868 = vst.msk [vmem:[#allocation2 + $0xd0] sm:$0xff] %vm1841_vm1, %v1777_v48  ;;  %v1806_v48 = vadd.f32 %v1716_v36, %v4716_v11  ;;  %v4735_v36 = vld [vmem:[#allocation32_spill] sm:$0xff] }
 0x363   : > { %1869 = vst.msk [vmem:[#allocation2 + $0xd8] sm:$0xff] %vm1841_vm1, %v1778_v14  ;;  %v4717_v14 = vld [vmem:[#allocation14_spill] sm:$0xff] }
 0x364   : > { %1870 = vst.msk [vmem:[#allocation2 + $0xe0] sm:$0xff] %vm1841_vm1, %v1779_v50  ;;  %v1807_v42 = vadd.f32 %v1717_v46, %v4717_v14  ;;  %v1720_v50 = vld [vmem:[#allocation2 + $0x1d8] sm:$0xff]  ;;  %v4736_v46 = vld [vmem:[#allocation33_spill] sm:$0xff] }
 0x365   : > { %1871 = vst.msk [vmem:[#allocation2 + $0xe8] sm:$0xff] %vm1841_vm1, %v1780_v30  ;;  %v1808_v30 = vadd.f32 %v1718_v19, %v4718_v12  ;;  %v4737_v19 = vld [vmem:[#allocation34_spill] sm:$0xff] }
 0x366   : > { %1872 = vst.msk [vmem:[#allocation2 + $0xf0] sm:$0xff] %vm1841_vm1, %v1781_v4  ;;  %v4719_v4 = vld [vmem:[#allocation16_spill] sm:$0xff] }
 0x367   : > { %1873 = vst.msk [vmem:[#allocation2 + $0xf8] sm:$0xff] %vm1841_vm1, %v1782_v44  ;;  %v1809_v22 = vadd.f32 %v1719_v2, %v4719_v4  ;;  %v1722_v44 = vld [vmem:[#allocation2 + $0x1e8] sm:$0xff]  ;;  %v4738_v2 = vld [vmem:[#allocation35_spill] sm:$0xff] }
 0x368   : > { %1874 = vst.msk [vmem:[#allocation2 + $0x100] sm:$0xff] %vm1841_vm1, %v1783_v1  ;;  %v1810_v1 = vadd.f32 %v1720_v50, %v4720_v9  ;;  %v4739_v50 = vld [vmem:[#allocation36_spill] sm:$0xff] }
 0x369   : > { %1875 = vst.msk [vmem:[#allocation2 + $0x108] sm:$0xff] %vm1841_vm1, %v1784_v33  ;;  %v4721_v33 = vld [vmem:[#allocation18_spill] sm:$0xff] }
 0x36a   : > { %1876 = vst.msk [vmem:[#allocation2 + $0x110] sm:$0xff] %vm1841_vm1, %v1785_v53  ;;  %v1811_v51 = vadd.f32 %v1721_v6, %v4721_v33  ;;  %v1724_v53 = vld [vmem:[#allocation2 + $0x1f8] sm:$0xff]  ;;  %v4740_v6 = vld [vmem:[#allocation37_spill] sm:$0xff] }
 0x36b   : > { %1877 = vst.msk [vmem:[#allocation2 + $0x118] sm:$0xff] %vm1841_vm1, %v1786_v16  ;;  %v1812_v16 = vadd.f32 %v1722_v44, %v4722_v47  ;;  %v4741_v44 = vld [vmem:[#allocation38_spill] sm:$0xff] }
 0x36c   : > { %1878 = vst.msk [vmem:[#allocation2 + $0x120] sm:$0xff] %vm1841_vm1, %v1787_v27  ;;  %v4723_v27 = vld [vmem:[#allocation20_spill] sm:$0xff] }
 0x36d   : > { %1879 = vst.msk [vmem:[#allocation2 + $0x128] sm:$0xff] %vm1841_vm1, %v1788_v61  ;;  %v1813_v60 = vadd.f32 %v1723_v34, %v4723_v27  ;;  %v1726_v61 = vld [vmem:[#allocation2 + $0x208] sm:$0xff]  ;;  %v4742_v34 = vld [vmem:[#allocation39_spill] sm:$0xff] }
 0x36e   : > { %1880 = vst.msk [vmem:[#allocation2 + $0x130] sm:$0xff] %vm1841_vm1, %v1789_v40  ;;  %v1814_v40 = vadd.f32 %v1724_v53, %v4724_v63  ;;  %v4743_v53 = vld [vmem:[#allocation40_spill] sm:$0xff] }
 0x36f   : > { %1881 = vst.msk [vmem:[#allocation2 + $0x138] sm:$0xff] %vm1841_vm1, %v1790_v45  ;;  %v4725_v45 = vld [vmem:[#allocation22_spill] sm:$0xff] }
 0x370   : > { %1882 = vst.msk [vmem:[#allocation2 + $0x140] sm:$0xff] %vm1841_vm1, %v1791_v10  ;;  %v1815_v21 = vadd.f32 %v1725_v38, %v4725_v45  ;;  %v1728_v10 = vld [vmem:[#allocation2 + $0x218] sm:$0xff]  ;;  %v4744_v38 = vld [vmem:[#allocation41_spill] sm:$0xff] }
 0x371   : > { %1883 = vst.msk [vmem:[#allocation2 + $0x148] sm:$0xff] %vm1841_vm1, %v1792_v54  ;;  %v1816_v54 = vadd.f32 %v1726_v61, %v4726_v20  ;;  %v4745_v61 = vld [vmem:[#allocation42_spill] sm:$0xff] }
 0x372   : > { %1884 = vst.msk [vmem:[#allocation2 + $0x150] sm:$0xff] %vm1841_vm1, %v1793_v17  ;;  %v4727_v17 = vld [vmem:[#allocation24_spill] sm:$0xff] }
 0x373   : > { %1885 = vst.msk [vmem:[#allocation2 + $0x158] sm:$0xff] %vm1841_vm1, %v1794_v28  ;;  %v1817_v35 = vadd.f32 %v1727_v8, %v4727_v17  ;;  %v1730_v28 = vld [vmem:[#allocation2 + $0x228] sm:$0xff]  ;;  %v4746_v8 = vld [vmem:[#allocation43_spill] sm:$0xff] }
 0x374   : > { %1886 = vst.msk [vmem:[#allocation2 + $0x160] sm:$0xff] %vm1841_vm1, %v1795_v62  ;;  %v1818_v62 = vadd.f32 %v1728_v10, %v4728_v0  ;;  %v4747_v10 = vld [vmem:[#allocation44_spill] sm:$0xff]  ;;  %v4750_v0 = vld [vmem:[#allocation47_spill] sm:$0xff] }
 0x375   : > { %1887 = vst.msk [vmem:[#allocation2 + $0x168] sm:$0xff] %vm1841_vm1, %v1796_v43  ;;  %v4729_v43 = vld [vmem:[#allocation26_spill] sm:$0xff] }
 0x376   : > { %1888 = vst.msk [vmem:[#allocation2 + $0x170] sm:$0xff] %vm1841_vm1, %v1797_v23  ;;  %v1819_v15 = vadd.f32 %v1729_v31, %v4729_v43  ;;  %v1732_v23 = vld [vmem:[#allocation2 + $0x238] sm:$0xff]  ;;  %v4748_v31 = vld [vmem:[#allocation45_spill] sm:$0xff] }
 0x377   : > { %1889 = vst.msk [vmem:[#allocation2 + $0x178] sm:$0xff] %vm1841_vm1, %v1798_v7  ;;  %v1820_v7 = vadd.f32 %v1730_v28, %v4730_v3  ;;  %v1822_v37 = vadd.f32 %v1732_v23, %v4732_v41 }
 0x378   : > { %1890 = vst.msk [vmem:[#allocation2 + $0x180] sm:$0xff] %vm1841_vm1, %v1799_v55  ;;  %v4731_v55 = vld [vmem:[#allocation28_spill] sm:$0xff] }
 0x379   : > { %1891 = vst.msk [vmem:[#allocation2 + $0x188] sm:$0xff] %vm1841_vm1, %v1800_v29  ;;  %v1821_v18 = vadd.f32 %v1731_v52, %v4731_v55  ;;  %v1734_v29 = vld [vmem:[#allocation2 + $0x248] sm:$0xff] }
 0x37a   : > { %1892 = vst.msk [vmem:[#allocation2 + $0x190] sm:$0xff] %vm1841_vm1, %v1801_v39  ;;  %v1735_v39 = vld [vmem:[#allocation2 + $0x250] sm:$0xff]  ;;  %v1824_v13 = vadd.f32 %v1734_v29, %v4734_v26 }
 0x37b   : > { %1893 = vst.msk [vmem:[#allocation2 + $0x198] sm:$0xff] %vm1841_vm1, %v1802_v49  ;;  %v1736_v49 = vld [vmem:[#allocation2 + $0x258] sm:$0xff]  ;;  %v1825_v32 = vadd.f32 %v1735_v39, %v4735_v36 }
 0x37c   : > { %1894 = vst.msk [vmem:[#allocation2 + $0x1a0] sm:$0xff] %vm1841_vm1, %v1803_v59  ;;  %v1737_v59 = vld [vmem:[#allocation2 + $0x260] sm:$0xff]  ;;  %v1826_v58 = vadd.f32 %v1736_v49, %v4736_v46 }
 0x37d   : > { %1895 = vst.msk [vmem:[#allocation2 + $0x1a8] sm:$0xff] %vm1841_vm1, %v1804_v5  ;;  %v1738_v5 = vld [vmem:[#allocation2 + $0x268] sm:$0xff]  ;;  %v1827_v11 = vadd.f32 %v1737_v59, %v4737_v19 }
 0x37e   : > { %1896 = vst.msk [vmem:[#allocation2 + $0x1b0] sm:$0xff] %vm1841_vm1, %v1805_v56  ;;  %v1739_v56 = vld [vmem:[#allocation2 + $0x270] sm:$0xff]  ;;  %v1828_v14 = vadd.f32 %v1738_v5, %v4738_v2 }
 0x37f   : > { %1897 = vst.msk [vmem:[#allocation2 + $0x1b8] sm:$0xff] %vm1841_vm1, %v1806_v48  ;;  %v1740_v48 = vld [vmem:[#allocation2 + $0x278] sm:$0xff]  ;;  %v1829_v12 = vadd.f32 %v1739_v56, %v4739_v50 }
 0x380   : > { %1898 = vst.msk [vmem:[#allocation2 + $0x1c0] sm:$0xff] %vm1841_vm1, %v1807_v42  ;;  %v1741_v42 = vld [vmem:[#allocation2 + $0x280] sm:$0xff]  ;;  %v1830_v4 = vadd.f32 %v1740_v48, %v4740_v6 }
 0x381   : > { %1899 = vst.msk [vmem:[#allocation2 + $0x1c8] sm:$0xff] %vm1841_vm1, %v1808_v30  ;;  %v1742_v30 = vld [vmem:[#allocation2 + $0x288] sm:$0xff]  ;;  %v1831_v9 = vadd.f32 %v1741_v42, %v4741_v44 }
 0x382   : > { %1900 = vst.msk [vmem:[#allocation2 + $0x1d0] sm:$0xff] %vm1841_vm1, %v1809_v22  ;;  %v1743_v22 = vld [vmem:[#allocation2 + $0x290] sm:$0xff]  ;;  %v1832_v33 = vadd.f32 %v1742_v30, %v4742_v34 }
 0x383   : > { %1901 = vst.msk [vmem:[#allocation2 + $0x1d8] sm:$0xff] %vm1841_vm1, %v1810_v1  ;;  %v1744_v1 = vld [vmem:[#allocation2 + $0x298] sm:$0xff]  ;;  %v1833_v47 = vadd.f32 %v1743_v22, %v4743_v53 }
 0x384   : > { %1902 = vst.msk [vmem:[#allocation2 + $0x1e0] sm:$0xff] %vm1841_vm1, %v1811_v51  ;;  %v1745_v51 = vld [vmem:[#allocation2 + $0x2a0] sm:$0xff]  ;;  %v1834_v27 = vadd.f32 %v1744_v1, %v4744_v38 }
 0x385   : > { %1903 = vst.msk [vmem:[#allocation2 + $0x1e8] sm:$0xff] %vm1841_vm1, %v1812_v16  ;;  %v1746_v16 = vld [vmem:[#allocation2 + $0x2a8] sm:$0xff]  ;;  %v1835_v63 = vadd.f32 %v1745_v51, %v4745_v61 }
 0x386   : > { %1904 = vst.msk [vmem:[#allocation2 + $0x1f0] sm:$0xff] %vm1841_vm1, %v1813_v60  ;;  %v1747_v60 = vld [vmem:[#allocation2 + $0x2b0] sm:$0xff]  ;;  %v1836_v45 = vadd.f32 %v1746_v16, %v4746_v8 }
 0x387   : > { %1905 = vst.msk [vmem:[#allocation2 + $0x1f8] sm:$0xff] %vm1841_vm1, %v1814_v40  ;;  %v1748_v40 = vld [vmem:[#allocation2 + $0x2b8] sm:$0xff]  ;;  %v1837_v20 = vadd.f32 %v1747_v60, %v4747_v10 }
 0x388   : > { %1906 = vst.msk [vmem:[#allocation2 + $0x200] sm:$0xff] %vm1841_vm1, %v1815_v21  ;;  %v1749_v21 = vld [vmem:[#allocation2 + $0x2c0] sm:$0xff]  ;;  %v1838_v17 = vadd.f32 %v1748_v40, %v4748_v31 }
 0x389   : > { %1907 = vst.msk [vmem:[#allocation2 + $0x208] sm:$0xff] %vm1841_vm1, %v1816_v54  ;;  %v1750_v54 = vld [vmem:[#allocation2 + $0x2c8] sm:$0xff] }
 0x38a   : > { %1908 = vst.msk [vmem:[#allocation2 + $0x210] sm:$0xff] %vm1841_vm1, %v1817_v35  ;;  %v4749_v35 = vld [vmem:[#allocation46_spill] sm:$0xff] }
 0x38b   : > { %1909 = vst.msk [vmem:[#allocation2 + $0x218] sm:$0xff] %vm1841_vm1, %v1818_v62  ;;  %v1839_v28 = vadd.f32 %v1749_v21, %v4749_v35  ;;  %v1840_v62 = vadd.f32 %v1750_v54, %v4750_v0 }
 0x38c   : > { %1910 = vst.msk [vmem:[#allocation2 + $0x220] sm:$0xff] %vm1841_vm1, %v1819_v15 }
 0x38d   : > { %1911 = vst.msk [vmem:[#allocation2 + $0x228] sm:$0xff] %vm1841_vm1, %v1820_v7 }
 0x38e   : > { %1912 = vst.msk [vmem:[#allocation2 + $0x230] sm:$0xff] %vm1841_vm1, %v1821_v18 }
 0x38f   : > { %1913 = vst.msk [vmem:[#allocation2 + $0x238] sm:$0xff] %vm1841_vm1, %v1822_v37 }
 0x390   : > { %1914 = vst.msk [vmem:[#allocation2 + $0x240] sm:$0xff] %vm1841_vm1, %v1823_v57 }
 0x391   : > { %1915 = vst.msk [vmem:[#allocation2 + $0x248] sm:$0xff] %vm1841_vm1, %v1824_v13 }
 0x392   : > { %1916 = vst.msk [vmem:[#allocation2 + $0x250] sm:$0xff] %vm1841_vm1, %v1825_v32 }
 0x393   : > { %1917 = vst.msk [vmem:[#allocation2 + $0x258] sm:$0xff] %vm1841_vm1, %v1826_v58 }
 0x394   : > { %1918 = vst.msk [vmem:[#allocation2 + $0x260] sm:$0xff] %vm1841_vm1, %v1827_v11 }
 0x395   : > { %1919 = vst.msk [vmem:[#allocation2 + $0x268] sm:$0xff] %vm1841_vm1, %v1828_v14 }
 0x396   : > { %1920 = vst.msk [vmem:[#allocation2 + $0x270] sm:$0xff] %vm1841_vm1, %v1829_v12 }
 0x397   : > { %1921 = vst.msk [vmem:[#allocation2 + $0x278] sm:$0xff] %vm1841_vm1, %v1830_v4 }
 0x398   : > { %1922 = vst.msk [vmem:[#allocation2 + $0x280] sm:$0xff] %vm1841_vm1, %v1831_v9 }
 0x399   : > { %1923 = vst.msk [vmem:[#allocation2 + $0x288] sm:$0xff] %vm1841_vm1, %v1832_v33 }
 0x39a   : > { %1924 = vst.msk [vmem:[#allocation2 + $0x290] sm:$0xff] %vm1841_vm1, %v1833_v47 }
 0x39b   : > { %1925 = vst.msk [vmem:[#allocation2 + $0x298] sm:$0xff] %vm1841_vm1, %v1834_v27 }
 0x39c   : > { %1926 = vst.msk [vmem:[#allocation2 + $0x2a0] sm:$0xff] %vm1841_vm1, %v1835_v63 }
 0x39d   : > { %1927 = vst.msk [vmem:[#allocation2 + $0x2a8] sm:$0xff] %vm1841_vm1, %v1836_v45 }
 0x39e   : > { %1928 = vst.msk [vmem:[#allocation2 + $0x2b0] sm:$0xff] %vm1841_vm1, %v1837_v20 }
 0x39f   : > { %1929 = vst.msk [vmem:[#allocation2 + $0x2b8] sm:$0xff] %vm1841_vm1, %v1838_v17 }
 0x3a0   : > { %1930 = vst.msk [vmem:[#allocation2 + $0x2c0] sm:$0xff] %vm1841_vm1, %v1839_v28 }
 0x3a1   : > { %1931 = vst.msk [vmem:[#allocation2 + $0x2c8] sm:$0xff] %vm1841_vm1, %v1840_v62 }
 0x3a2 PF: > { %p2771_p1 = scmp.ne.s32.totalorder %s2966_s15, 0 }
 0x3a4   : > { %1935 = sbr.rel (%p2771_p1) target bundleno = 939 (0x3ab), region = 91 }
 0x3a9   : > { %vm1936_vm2 = vcmask 15360   ;;  %v2984_v52 = vmov inf  }
 0x3aa   : > { %1937 = vst.msk [vmem:[#allocation3] sm:$0xff] %vm1936_vm2, %v2984_v52 }
 0x3ab PF: > { %p2772_p2 = scmp.ne.s32.totalorder %s4769_s0, 1 }
 0x3ad   : > { %1941 = sbr.rel (%p2772_p2) target bundleno = 1580 (0x62c), region = 95 }
 0x3b2   : > { %v1957_v43 = vld [vmem:[#allocation2 + $0x78] sm:$0xff]  ;;  %v1956_v3 = vld [vmem:[#allocation2 + $0x70] sm:$0xff]  ;;  %v1955_v55 = vld [vmem:[#allocation2 + $0x68] sm:$0xff]  ;;  %v2985_v47 = vmov 0   ;;  %vm2128_vm3 = vcmask 654336   ;;  %vm2463_vm4 = vcmask 523264  }
 0x3b3   : > { %v1973_v15 = vld [vmem:[#allocation2 + $0xf8] sm:$0xff]  ;;  %2153 = vmatpush.msra.mxu0 %v1957_v43  ;;  %2826 = vmatpush.msra.mxu3 %v1957_v43  ;;  %v1972_v7 = vld [vmem:[#allocation2 + $0xf0] sm:$0xff]  ;;  %v1971_v18 = vld [vmem:[#allocation2 + $0xe8] sm:$0xff]  ;;  %vm2537_vm5 = vcmask 15360  }
 0x3b4   : > { %v1989_v23 = vld [vmem:[#allocation2 + $0x178] sm:$0xff]  ;;  %v1988_v25 = vld [vmem:[#allocation2 + $0x170] sm:$0xff]  ;;  %2194 = vmatpush.msra.mxu1 %v1973_v15  ;;  %v1987_v29 = vld [vmem:[#allocation2 + $0x168] sm:$0xff]  ;;  %2922 = vset.pattern.permute.xlu1 %v2985_v47 }
 0x3b5   : > { %2235 = vmatpush.msra.mxu2 %v1989_v23  ;;  %2154 = vmatpush.msra.mxu0 %v1956_v3  ;;  %v1954_v41 = vld [vmem:[#allocation2 + $0x60] sm:$0xff]  ;;  %v1953_v24 = vld [vmem:[#allocation2 + $0x58] sm:$0xff]  ;;  %v1952_v26 = vld [vmem:[#allocation2 + $0x50] sm:$0xff] }
 0x3b6   : > { %2827 = vmatpush.msra.mxu3 %v1956_v3  ;;  %2195 = vmatpush.msra.mxu1 %v1972_v7  ;;  %v1970_v37 = vld [vmem:[#allocation2 + $0xe0] sm:$0xff]  ;;  %v1969_v57 = vld [vmem:[#allocation2 + $0xd8] sm:$0xff]  ;;  %v1968_v13 = vld [vmem:[#allocation2 + $0xd0] sm:$0xff] }
 0x3b7   : > { %2236 = vmatpush.msra.mxu2 %v1988_v25  ;;  %2155 = vmatpush.msra.mxu0 %v1955_v55  ;;  %v1986_v39 = vld [vmem:[#allocation2 + $0x160] sm:$0xff]  ;;  %v1985_v49 = vld [vmem:[#allocation2 + $0x158] sm:$0xff]  ;;  %v1984_v59 = vld [vmem:[#allocation2 + $0x150] sm:$0xff] }
 0x3b8   : > { %2828 = vmatpush.msra.mxu3 %v1955_v55  ;;  %2196 = vmatpush.msra.mxu1 %v1971_v18  ;;  %v1951_v36 = vld [vmem:[#allocation2 + $0x48] sm:$0xff]  ;;  %v1950_v46 = vld [vmem:[#allocation2 + $0x40] sm:$0xff]  ;;  %v1949_v19 = vld [vmem:[#allocation2 + $0x38] sm:$0xff] }
 0x3b9   : > { %2237 = vmatpush.msra.mxu2 %v1987_v29  ;;  %2156 = vmatpush.msra.mxu0 %v1954_v41  ;;  %v1967_v32 = vld [vmem:[#allocation2 + $0xc8] sm:$0xff]  ;;  %v1966_v58 = vld [vmem:[#allocation2 + $0xc0] sm:$0xff]  ;;  %v1965_v11 = vld [vmem:[#allocation2 + $0xb8] sm:$0xff] }
 0x3ba   : > { %2829 = vmatpush.msra.mxu3 %v1954_v41  ;;  %2197 = vmatpush.msra.mxu1 %v1970_v37  ;;  %v1983_v5 = vld [vmem:[#allocation2 + $0x148] sm:$0xff]  ;;  %v1982_v56 = vld [vmem:[#allocation2 + $0x140] sm:$0xff]  ;;  %v1981_v48 = vld [vmem:[#allocation2 + $0x138] sm:$0xff] }
 0x3bb   : > { %2238 = vmatpush.msra.mxu2 %v1986_v39  ;;  %2157 = vmatpush.msra.mxu0 %v1953_v24  ;;  %v1948_v2 = vld [vmem:[#allocation2 + $0x30] sm:$0xff]  ;;  %v1947_v50 = vld [vmem:[#allocation2 + $0x28] sm:$0xff]  ;;  %v1946_v6 = vld [vmem:[#allocation2 + $0x20] sm:$0xff] }
 0x3bc   : > { %2830 = vmatpush.msra.mxu3 %v1953_v24  ;;  %2198 = vmatpush.msra.mxu1 %v1969_v57  ;;  %v1964_v14 = vld [vmem:[#allocation2 + $0xb0] sm:$0xff]  ;;  %v1963_v12 = vld [vmem:[#allocation2 + $0xa8] sm:$0xff]  ;;  %v1962_v4 = vld [vmem:[#allocation2 + $0xa0] sm:$0xff] }
 0x3bd   : > { %2239 = vmatpush.msra.mxu2 %v1985_v49  ;;  %2158 = vmatpush.msra.mxu0 %v1952_v26  ;;  %v1980_v42 = vld [vmem:[#allocation2 + $0x130] sm:$0xff]  ;;  %v1979_v30 = vld [vmem:[#allocation2 + $0x128] sm:$0xff]  ;;  %v1978_v22 = vld [vmem:[#allocation2 + $0x120] sm:$0xff] }
 0x3be   : > { %2831 = vmatpush.msra.mxu3 %v1952_v26  ;;  %2199 = vmatpush.msra.mxu1 %v1968_v13  ;;  %v1945_v44 = vld [vmem:[#allocation2 + $0x18] sm:$0xff]  ;;  %v1944_v34 = vld [vmem:[#allocation2 + $0x10] sm:$0xff]  ;;  %v2085_v33 = vld [vmem:[%s4615_s3 + $0x28] sm:$0xff] }
 0x3bf   : > { %2240 = vmatpush.msra.mxu2 %v1984_v59  ;;  %2159 = vmatpush.msra.mxu0 %v1951_v36  ;;  %v1961_v9 = vld [vmem:[#allocation2 + $0x98] sm:$0xff]  ;;  %v1960_v51 = vld [vmem:[#allocation2 + $0x90] sm:$0xff]  ;;  %v1943_v16 = vld [vmem:[#allocation2 + $0x8] sm:$0xff] }
 0x3c0   : > { %2832 = vmatpush.msra.mxu3 %v1951_v36  ;;  %2200 = vmatpush.msra.mxu1 %v1967_v32  ;;  %v1977_v1 = vld [vmem:[#allocation2 + $0x118] sm:$0xff]  ;;  %v1976_v53 = vld [vmem:[#allocation2 + $0x110] sm:$0xff]  ;;  %v1959_v38 = vld [vmem:[#allocation2 + $0x88] sm:$0xff] }
 0x3c1   : > { %2241 = vmatpush.msra.mxu2 %v1983_v5  ;;  %2160 = vmatpush.msra.mxu0 %v1950_v46  ;;  %v1975_v27 = vld [vmem:[#allocation2 + $0x108] sm:$0xff]  ;;  %v1942_v60 = vld [vmem:[#allocation2] sm:$0xff]  ;;  %v2034_v21 = vld [vmem:[%s4614_s2 + $0x10] sm:$0xff] }
 0x3c2   : > { %2833 = vmatpush.msra.mxu3 %v1950_v46  ;;  %2201 = vmatpush.msra.mxu1 %v1966_v58  ;;  %v1958_v61 = vld [vmem:[#allocation2 + $0x80] sm:$0xff]  ;;  %v2033_v45 = vld [vmem:[%s4614_s2 + $0x8] sm:$0xff]  ;;  %v2005_v10 = vld [vmem:[#allocation2 + $0x1f8] sm:$0xff] }
 0x3c3   : > { %2242 = vmatpush.msra.mxu2 %v1982_v56  ;;  %2161 = vmatpush.msra.mxu0 %v1949_v19  ;;  %v1974_v63 = vld [vmem:[#allocation2 + $0x100] sm:$0xff]  ;;  %v2021_v20 = vld [vmem:[#allocation2 + $0x278] sm:$0xff]  ;;  %v2004_v17 = vld [vmem:[#allocation2 + $0x1f0] sm:$0xff] }
 0x3c4   : > { %2834 = vmatpush.msra.mxu3 %v1949_v19  ;;  %2202 = vmatpush.msra.mxu1 %v1965_v11  ;;  %v2032_v40 = vld [vmem:[%s4614_s2] sm:$0xff]  ;;  %v2087_v31 = vld [vmem:[%s4615_s3 + $0x38] sm:$0xff]  ;;  %v2020_v35 = vld [vmem:[#allocation2 + $0x270] sm:$0xff] }
 0x3c5   : > { %2243 = vmatpush.msra.mxu2 %v1981_v48  ;;  %2162 = vmatpush.msra.mxu0 %v1948_v2  ;;  %v2056_v8 = vld [vmem:[%s4614_s2 + $0xc0] sm:$0xff]  ;;  %v2003_v28 = vld [vmem:[#allocation2 + $0x1e8] sm:$0xff]  ;;  %v2038_v52 = vld [vmem:[%s4614_s2 + $0x30] sm:$0xff] }
 0x3c6   : > { %2835 = vmatpush.msra.mxu3 %v1948_v2  ;;  %2203 = vmatpush.msra.mxu1 %v1964_v14  ;;  %v2084_v54 = vld [vmem:[%s4615_s3 + $0x20] sm:$0xff]  ;;  %v2019_v0 = vld [vmem:[#allocation2 + $0x268] sm:$0xff]  ;;  %v2062_v15 = vld [vmem:[%s4614_s2 + $0xf0] sm:$0xff] }
 0x3c7   : > { %2244 = vmatpush.msra.mxu2 %v1980_v42  ;;  %2163 = vmatpush.msra.mxu0 %v1947_v50  ;;  %v2002_v62 = vld [vmem:[#allocation2 + $0x1e0] sm:$0xff]  ;;  %v2039_v23 = vld [vmem:[%s4614_s2 + $0x38] sm:$0xff]  ;;  %v2086_v55 = vld [vmem:[%s4615_s3 + $0x30] sm:$0xff] }
 0x3c8   : > { %2836 = vmatpush.msra.mxu3 %v1947_v50  ;;  %2204 = vmatpush.msra.mxu1 %v1963_v12  ;;  %v2018_v43 = vld [vmem:[#allocation2 + $0x260] sm:$0xff]  ;;  %v2001_v7 = vld [vmem:[#allocation2 + $0x1d8] sm:$0xff]  ;;  %v2000_v29 = vld [vmem:[#allocation2 + $0x1d0] sm:$0xff] }
 0x3c9   : > { %2245 = vmatpush.msra.mxu2 %v1979_v30  ;;  %2164 = vmatpush.msra.mxu0 %v1946_v6  ;;  %v2040_v3 = vld [vmem:[%s4614_s2 + $0x40] sm:$0xff]  ;;  %v2017_v25 = vld [vmem:[#allocation2 + $0x258] sm:$0xff]  ;;  %v2016_v41 = vld [vmem:[#allocation2 + $0x250] sm:$0xff] }
 0x3ca   : > { %2837 = vmatpush.msra.mxu3 %v1946_v6  ;;  %2205 = vmatpush.msra.mxu1 %v1962_v4  ;;  %v2080_v18 = vld [vmem:[%s4615_s3] sm:$0xff]  ;;  %v1999_v37 = vld [vmem:[#allocation2 + $0x1c8] sm:$0xff]  ;;  %v2083_v24 = vld [vmem:[%s4615_s3 + $0x18] sm:$0xff] }
 0x3cb   : > { %2246 = vmatpush.msra.mxu2 %v1978_v22  ;;  %2165 = vmatpush.msra.mxu0 %v1945_v44  ;;  %v2015_v39 = vld [vmem:[#allocation2 + $0x248] sm:$0xff]  ;;  %v2044_v49 = vld [vmem:[%s4614_s2 + $0x60] sm:$0xff]  ;;  %v2046_v5 = vld [vmem:[%s4614_s2 + $0x70] sm:$0xff] }
 0x3cc   : > { %2838 = vmatpush.msra.mxu3 %v1945_v44  ;;  %2206 = vmatpush.msra.mxu1 %v1961_v9  ;;  %v4351_v57 = vld [vmem:[#allocation2 + $0x2c8] sm:$0xff]  ;;  %v4356_v26 = vld [vmem:[#allocation2 + $0x2c0] sm:$0xff]  ;;  %v1997_v46 = vld [vmem:[#allocation2 + $0x1b8] sm:$0xff] }
 0x3cd   : > { %2247 = vmatpush.msra.mxu2 %v1977_v1  ;;  %2166 = vmatpush.msra.mxu0 %v1944_v34  ;;  %v1998_v13 = vld [vmem:[#allocation2 + $0x1c0] sm:$0xff]  ;;  %v2045_v32 = vld [vmem:[%s4614_s2 + $0x68] sm:$0xff]  ;;  %v2013_v58 = vld [vmem:[#allocation2 + $0x238] sm:$0xff] }
 0x3ce   : > { %2115 = vperm.xlu1 %2922, %v2085_v33   ;;  %2839 = vmatpush.msra.mxu3 %v1944_v34  ;;  %v2014_v59 = vld [vmem:[#allocation2 + $0x240] sm:$0xff]  ;;  %v2081_v56 = vld [vmem:[%s4615_s3 + $0x8] sm:$0xff]  ;;  %v1996_v19 = vld [vmem:[#allocation2 + $0x1b0] sm:$0xff] }
 0x3cf   : > { %2207 = vmatpush.msra.mxu1 %v1960_v51  ;;  %2248 = vmatpush.msra.mxu2 %v1976_v53  ;;  %v2068_v36 = vld [vmem:[%s4614_s2 + $0x120] sm:$0xff]  ;;  %v2012_v11 = vld [vmem:[#allocation2 + $0x230] sm:$0xff]  ;;  %v1995_v48 = vld [vmem:[#allocation2 + $0x1a8] sm:$0xff] }
 0x3d0   : > { %2167 = vmatpush.msra.mxu0 %v1943_v16  ;;  %2840 = vmatpush.msra.mxu3 %v1943_v16  ;;  %v4372_v2 = vld [vmem:[#allocation2 + $0x2b8] sm:$0xff]  ;;  %v2082_v14 = vld [vmem:[%s4615_s3 + $0x10] sm:$0xff]  ;;  %v2011_v50 = vld [vmem:[#allocation2 + $0x228] sm:$0xff] }
 0x3d1   : > { %2208 = vmatpush.msra.mxu1 %v1959_v38  ;;  %2249 = vmatpush.msra.mxu2 %v1975_v27  ;;  %v4377_v42 = vld [vmem:[#allocation2 + $0x2b0] sm:$0xff]  ;;  %v1994_v12 = vld [vmem:[#allocation2 + $0x1a0] sm:$0xff]  ;;  %v2051_v22 = vld [vmem:[%s4614_s2 + $0x98] sm:$0xff] }
 0x3d2   : > { %2168 = vmatpush.msra.mxu0 %v1942_v60  ;;  %2841 = vmatpush.msra.mxu3 %v1942_v60  ;;  %v2050_v30 = vld [vmem:[%s4614_s2 + $0x90] sm:$0xff]  ;;  %v2010_v6 = vld [vmem:[#allocation2 + $0x220] sm:$0xff]  ;;  %v1993_v9 = vld [vmem:[#allocation2 + $0x198] sm:$0xff] }
 0x3d3   : > { %2209 = vmatpush.msra.mxu1 %v1958_v61  ;;  %2250 = vmatpush.msra.mxu2 %v1974_v63  ;;  %v2074_v4 = vld [vmem:[%s4614_s2 + $0x150] sm:$0xff]  ;;  %v2052_v44 = vld [vmem:[%s4614_s2 + $0xa0] sm:$0xff]  ;;  %v2009_v1 = vld [vmem:[#allocation2 + $0x218] sm:$0xff] }
 0x3d4   : > { %2169 = vmatmul.f32.vlgmr.msra.gmra.mxu0 %v2032_v40  ;;  %2181 = vmatmul.f32.vlgmr.msra.gmra.mxu3 %v2056_v8  ;;  %v2027_v34 = vld [vmem:[#allocation2 + $0x2a8] sm:$0xff]  ;;  %v1992_v33 = vld [vmem:[#allocation2 + $0x190] sm:$0xff]  ;;  %v2026_v53 = vld [vmem:[#allocation2 + $0x2a0] sm:$0xff] }
 0x3d5   : > { %2210 = vmatmul.f32.vlgmr.msra.gmra.mxu1 %v2033_v45  ;;  %2251 = vmatmul.f32.vlgmr.msra.gmra.mxu2 %v2034_v21  ;;  %v2008_v51 = vld [vmem:[#allocation2 + $0x210] sm:$0xff]  ;;  %v2007_v16 = vld [vmem:[#allocation2 + $0x208] sm:$0xff]  ;;  %v2025_v38 = vld [vmem:[#allocation2 + $0x298] sm:$0xff] }
 0x3d6   : > { %2276 = vmatpush.msrb.mxu3 %v2005_v10  ;;  %2317 = vmatpush.msrb.mxu0 %v2021_v20  ;;  %v1990_v27 = vld [vmem:[#allocation2 + $0x180] sm:$0xff]  ;;  %v2057_v61 = vld [vmem:[%s4614_s2 + $0xc8] sm:$0xff]  ;;  %v2058_v63 = vld [vmem:[%s4614_s2 + $0xd0] sm:$0xff] }
 0x3d7   : > { %2921 = vset.pattern.permute.xlu0 %v2985_v47  ;;  %2110 = vperm.xlu1 %2922, %v2084_v54   ;;  %v2006_v60 = vld [vmem:[#allocation2 + $0x200] sm:$0xff]  ;;  %v2035_v40 = vld [vmem:[%s4614_s2 + $0x18] sm:$0xff]  ;;  %v2024_v45 = vld [vmem:[#allocation2 + $0x290] sm:$0xff] }
 0x3d8   : > { %2125 = vperm.xlu0 %2921, %v2087_v31   ;;  %2277 = vmatpush.msrb.mxu3 %v2004_v17  ;;  %v2036_v8 = vld [vmem:[%s4614_s2 + $0x20] sm:$0xff]  ;;  %v2023_v21 = vld [vmem:[#allocation2 + $0x288] sm:$0xff]  ;;  %v2063_v20 = vld [vmem:[%s4614_s2 + $0xf8] sm:$0xff] }
 0x3d9   : > { %2318 = vmatpush.msrb.mxu0 %v2020_v35  ;;  %2923 = vset.pattern.permute.xlu2 %v2985_v47  ;;  %v1991_v47 = vld [vmem:[#allocation2 + $0x188] sm:$0xff]  ;;  %v2022_v10 = vld [vmem:[#allocation2 + $0x280] sm:$0xff]  ;;  %v2042_v17 = vld [vmem:[%s4614_s2 + $0x50] sm:$0xff] }
 0x3da   : > { %2278 = vmatpush.msrb.mxu3 %v2003_v28  ;;  %2105 = vperm.xlu2 %2923, %v2083_v24   ;;  %v2064_v54 = vld [vmem:[%s4614_s2 + $0x100] sm:$0xff]  ;;  %v2041_v31 = vld [vmem:[%s4614_s2 + $0x48] sm:$0xff]  ;;  %v2070_v28 = vld [vmem:[%s4614_s2 + $0x130] sm:$0xff] }
 0x3db   : > { %2319 = vmatpush.msrb.mxu0 %v2019_v0  ;;  %2842 = vmatpush.msrb.mxu1 %v4351_v57  ;;  %v2069_v35 = vld [vmem:[%s4614_s2 + $0x128] sm:$0xff]  ;;  %v2047_v0 = vld [vmem:[%s4614_s2 + $0x78] sm:$0xff]  ;;  %v2066_v24 = vld [vmem:[%s4614_s2 + $0x110] sm:$0xff] }
 0x3dc   : > { %2279 = vmatpush.msrb.mxu3 %v2002_v62  ;;  %2172 = vmatmul.f32.gmra.mxu0 %v2038_v52  ;;  %v2048_v62 = vld [vmem:[%s4614_s2 + $0x80] sm:$0xff]  ;;  %v2075_v52 = vld [vmem:[%s4614_s2 + $0x158] sm:$0xff] }
 0x3dd   : > { %2320 = vmatpush.msrb.mxu0 %v2018_v43  ;;  %2184 = vmatmul.f32.gmra.mxu3 %v2062_v15  ;;  %v2076_v43 = vld [vmem:[%s4614_s2 + $0x160] sm:$0xff]  ;;  %v2053_v15 = vld [vmem:[%s4614_s2 + $0xa8] sm:$0xff] }
 0x3de   : > { %2213 = vmatmul.f32.gmra.mxu1 %v2039_v23  ;;  %2254 = vmatmul.f32.gmra.mxu2 %v2040_v3  ;;  %v2054_v23 = vld [vmem:[%s4614_s2 + $0xb0] sm:$0xff] }
 0x3df   : > { %2280 = vmatpush.msrb.mxu3 %v2001_v7  ;;  %2321 = vmatpush.msrb.mxu0 %v2017_v25  ;;  %v2421_v3 = vld [vmem:[%s4617_s5 + $0x30] sm:$0xff]  ;;  %v2420_v7 = vld [vmem:[%s4617_s5 + $0x28] sm:$0xff]  ;;  %v2043_v25 = vld [vmem:[%s4614_s2 + $0x58] sm:$0xff] }
 0x3e0   : > { %2120 = vperm.xlu0 %2921, %v2086_v55   ;;  %2090 = vperm.xlu1 %2922, %v2080_v18   ;;  %v2059_v55 = vld [vmem:[%s4614_s2 + $0xd8] sm:$0xff]  ;;  %v2060_v18 = vld [vmem:[%s4614_s2 + $0xe0] sm:$0xff] }
 0x3e1   : > { %2281 = vmatpush.msrb.mxu3 %v2000_v29  ;;  %2322 = vmatpush.msrb.mxu0 %v2016_v41  ;;  %v2418_v29 = vld [vmem:[%s4617_s5 + $0x18] sm:$0xff]  ;;  %v2417_v41 = vld [vmem:[%s4617_s5 + $0x10] sm:$0xff] }
 0x3e2   : > { %2843 = vmatpush.msrb.mxu1 %v4356_v26  ;;  %2100 = vperm.xlu2 %2923, %v2082_v14   ;;  %v2079_v14 = vld [vmem:[%s4614_s2 + $0x178] sm:$0xff] }
 0x3e3   : > { %2282 = vmatpush.msrb.mxu3 %v1999_v37  ;;  %2323 = vmatpush.msrb.mxu0 %v2015_v39  ;;  %v2049_v37 = vld [vmem:[%s4614_s2 + $0x88] sm:$0xff] }
 0x3e4   : > { %2175 = vmatmul.f32.gmra.mxu0 %v2044_v49  ;;  %2844 = vmatpush.msrb.mxu1 %v4372_v2  ;;  %v2065_v39 = vld [vmem:[%s4614_s2 + $0x108] sm:$0xff]  ;;  %v2585_v49 = vld [vmem:[%s4619_s7] sm:$0xff] }
 0x3e5   : > { %2283 = vmatpush.msrb.mxu3 %v1998_v13  ;;  %2324 = vmatpush.msrb.mxu0 %v2014_v59  ;;  %v2071_v13 = vld [vmem:[%s4614_s2 + $0x138] sm:$0xff]  ;;  %v2072_v59 = vld [vmem:[%s4614_s2 + $0x140] sm:$0xff] }
 0x3e6   : > { %2187 = vmatmul.f32.gmra.mxu3 %v2068_v36  ;;  %2216 = vmatmul.f32.gmra.mxu1 %v2045_v32  ;;  %v2422_v36 = vld [vmem:[%s4617_s5 + $0x38] sm:$0xff]  ;;  %v2061_v32 = vld [vmem:[%s4614_s2 + $0xe8] sm:$0xff] }
 0x3e7   : > { %2257 = vmatmul.f32.gmra.mxu2 %v2046_v5  ;;  %2284 = vmatpush.msrb.mxu3 %v1997_v46  ;;  %v2077_v5 = vld [vmem:[%s4614_s2 + $0x168] sm:$0xff]  ;;  %v2078_v46 = vld [vmem:[%s4614_s2 + $0x170] sm:$0xff] }
 0x3e8   : > { %2325 = vmatpush.msrb.mxu0 %v2013_v58  ;;  %2095 = vperm.xlu0 %2921, %v2081_v56   ;;  %v2067_v58 = vld [vmem:[%s4614_s2 + $0x118] sm:$0xff]  ;;  %v2037_v56 = vld [vmem:[%s4614_s2 + $0x28] sm:$0xff] }
 0x3e9   : > { %2285 = vmatpush.msrb.mxu3 %v1996_v19  ;;  %2845 = vmatpush.msrb.mxu1 %v4377_v42  ;;  %v2419_v19 = vld [vmem:[%s4617_s5 + $0x20] sm:$0xff] }
 0x3ea   : > { %2326 = vmatpush.msrb.mxu0 %v2012_v11  ;;  %2450 = vperm.xlu1 %2922, %v2420_v7   ;;  %v2073_v11 = vld [vmem:[%s4614_s2 + $0x148] sm:$0xff] }
 0x3eb   : > { %2286 = vmatpush.msrb.mxu3 %v1995_v48  ;;  %2846 = vmatpush.msrb.mxu1 %v2027_v34  ;;  %v2416_v48 = vld [vmem:[%s4617_s5 + $0x8] sm:$0xff] }
 0x3ec   : > { %2327 = vmatpush.msrb.mxu0 %v2011_v50  ;;  %2460 = vperm.xlu2 %2923, %v2422_v36  }
 0x3ed   : > { %2287 = vmatpush.msrb.mxu3 %v1994_v12  ;;  %2178 = vmatmul.f32.gmra.mxu0 %v2050_v30 }
 0x3ee   : > { %2328 = vmatpush.msrb.mxu0 %v2010_v6  ;;  %2190 = vmatmul.f32.gmra.mxu3 %v2074_v4 }
 0x3ef   : > { %2219 = vmatmul.f32.gmra.mxu1 %v2051_v22  ;;  %2260 = vmatmul.f32.gmra.mxu2 %v2052_v44 }
 0x3f0   : > { %2288 = vmatpush.msrb.mxu3 %v1993_v9  ;;  %2329 = vmatpush.msrb.mxu0 %v2009_v1 }
 0x3f1   : > { %2847 = vmatpush.msrb.mxu1 %v2026_v53  ;;  %2455 = vperm.xlu0 %2921, %v2421_v3  }
 0x3f2   : > { %2289 = vmatpush.msrb.mxu3 %v1992_v33  ;;  %2330 = vmatpush.msrb.mxu0 %v2008_v51 }
 0x3f3   : > { %2848 = vmatpush.msrb.mxu1 %v2025_v38  ;;  %2435 = vperm.xlu1 %2922, %v2417_v41  }
 0x3f4   : > { %2290 = vmatpush.msrb.mxu3 %v1991_v47  ;;  %2331 = vmatpush.msrb.mxu0 %v2007_v16 }
 0x3f5   : > { %2849 = vmatpush.msrb.mxu1 %v2024_v45  ;;  %2445 = vperm.xlu2 %2923, %v2419_v19  }
 0x3f6   : > { %2291 = vmatpush.msrb.mxu3 %v1990_v27  ;;  %2332 = vmatpush.msrb.mxu0 %v2006_v60 }
 0x3f7   : > { %2222 = vmatmul.f32.gmra.mxu1 %v2057_v61  ;;  %2263 = vmatmul.f32.gmra.mxu2 %v2058_v63 }
 0x3f8   : > { %2292 = vmatmul.f32.vlgmr.msrb.gmra.mxu3 %v2035_v40  ;;  %2333 = vmatmul.f32.vlgmr.msrb.gmra.mxu0 %v2036_v8 }
 0x3f9   : > { %2364 = vmatpush.msra.mxu0 %v4351_v57  ;;  %2850 = vmatpush.msrb.mxu1 %v2023_v21  ;;  %v2415_v57 = vld [vmem:[%s4617_s5] sm:$0xff] }
 0x3fa   : > { %2440 = vperm.xlu0 %2921, %v2418_v29  }
 0x3fb   : > { %2365 = vmatpush.msra.mxu0 %v4356_v26  ;;  %2851 = vmatpush.msrb.mxu1 %v2022_v10  ;;  %v2055_v26 = vld [vmem:[%s4614_s2 + $0xb8] sm:$0xff] }
 0x3fc   : > { %2588 = vperm.xlu1 %2922, %v2585_v49  }
 0x3fd   : > { %2366 = vmatpush.msra.mxu0 %v4372_v2  ;;  %2430 = vperm.xlu2 %2923, %v2416_v48  }
 0x3ff   : > { %2225 = vmatmul.f32.gmra.mxu1 %v2063_v20  ;;  %2266 = vmatmul.f32.gmra.mxu2 %v2064_v54 }
 0x400   : > { %2295 = vmatmul.f32.gmra.mxu3 %v2041_v31  ;;  %2336 = vmatmul.f32.gmra.mxu0 %v2042_v17 }
 0x401   : > { %2367 = vmatpush.msra.mxu0 %v4377_v42 }
 0x402   : > { %2425 = vperm.xlu0 %2921, %v2415_v57  }
 0x403   : > { %2368 = vmatpush.msra.mxu0 %v2027_v34 }
 0x405   : > { %2369 = vmatpush.msra.mxu0 %v2026_v53 }
 0x407   : > { %2228 = vmatmul.f32.gmra.mxu1 %v2069_v35  ;;  %2269 = vmatmul.f32.gmra.mxu2 %v2070_v28 }
 0x408   : > { %2298 = vmatmul.f32.gmra.mxu3 %v2047_v0  ;;  %2339 = vmatmul.f32.gmra.mxu0 %v2048_v62 }
 0x409   : > { %2370 = vmatpush.msra.mxu0 %v2025_v38 }
 0x40b   : > { %2371 = vmatpush.msra.mxu0 %v2024_v45 }
 0x40d   : > { %2372 = vmatpush.msra.mxu0 %v2023_v21 }
 0x40f   : > { %2231 = vmatmul.f32.gmra.mxu1 %v2075_v52  ;;  %2272 = vmatmul.f32.gmra.mxu2 %v2076_v43 }
 0x410   : > { %2301 = vmatmul.f32.gmra.mxu3 %v2053_v15  ;;  %2342 = vmatmul.f32.gmra.mxu0 %v2054_v23 }
 0x411   : > { %2373 = vmatpush.msra.mxu0 %v2022_v10 }
 0x417   : > { %2774 = vmatmul.msk.f32.vlgmr.msrb.gmra.mxu1 %vm2128_vm3, %v2043_v25 }
 0x418   : > { %2304 = vmatmul.f32.gmra.mxu3 %v2059_v55  ;;  %2345 = vmatmul.f32.gmra.mxu0 %v2060_v18 }
 0x41f   : > { %2775 = vmatmul.msk.f32.gmra.mxu1 %vm2128_vm3, %v2049_v37 }
 0x420   : > { %2307 = vmatmul.f32.gmra.mxu3 %v2065_v39  ;;  %2348 = vmatmul.f32.gmra.mxu0 %v2066_v24 }
 0x427   : > { %2776 = vmatmul.msk.f32.gmra.mxu1 %vm2128_vm3, %v2055_v26 }
 0x428   : > { %2310 = vmatmul.f32.gmra.mxu3 %v2071_v13  ;;  %2351 = vmatmul.f32.gmra.mxu0 %v2072_v59 }
 0x42f   : > { %2777 = vmatmul.msk.f32.gmra.mxu1 %vm2128_vm3, %v2061_v32 }
 0x430   : > { %2313 = vmatmul.f32.gmra.mxu3 %v2077_v5  ;;  %2354 = vmatmul.f32.gmra.mxu0 %v2078_v46 }
 0x434   : > { %v2106_v9 = vpop.permute.xlu2 %2105 }
 0x437   : > { %2778 = vmatmul.msk.f32.gmra.mxu1 %vm2128_vm3, %v2067_v58 }
 0x438   : > { %2773 = vmatmul.msk.f32.vlgmr.msra.gmra.mxu0 %vm2128_vm3, %v2037_v56 }
 0x43c   : > { %v2101_v27 = vpop.permute.xlu2 %2100 }
 0x43f   : > { %2779 = vmatmul.msk.f32.gmra.mxu1 %vm2128_vm3, %v2073_v11 }
 0x440   : > { %v2116_v2 = vpop.permute.xlu1 %2115 }
 0x447   : > { %2780 = vmatmul.msk.f32.gmra.mxu1 %vm2128_vm3, %v2079_v14 }
 0x449   : > { %v2111_v42 = vpop.permute.xlu1 %2110 }
 0x44a   : > { %v4528_v50 = vpop.permute.xlu0 %2125 }
 0x451   : > { %v2170_v12 = vpop.f32.mrf.mxu0 }
 0x452   : > { %v2121_v30 = vpop.permute.xlu0 %2120  ;;  %v2091_v6 = vpop.permute.xlu1 %2090 }
 0x453   : > { %v2171_v4 = vadd.f32 %v2170_v12, %v2091_v6  ;;  %v2211_v22 = vpop.f32.mrf.mxu1 }
 0x455   : > { %v2212_v44 = vadd.f32 %v2211_v22, %v2171_v4 }
 0x457   : > { %v2182_v1 = vpop.f32.mrf.mxu3 }
 0x458   : > { %v2252_v34 = vpop.f32.mrf.mxu2  ;;  %v2183_v17 = vadd.f32 %v2182_v1, %v2111_v42 }
 0x459   : > { %v2253_v33 = vadd.f32 %v2252_v34, %v2212_v44  ;;  %v2173_v51 = vpop.f32.mrf.mxu0 }
 0x45a   : > { %v2096_v53 = vpop.permute.xlu0 %2095 }
 0x45b   : > { %v2174_v47 = vadd.f32 %v2173_v51, %v2096_v53  ;;  %v2214_v16 = vpop.f32.mrf.mxu1 }
 0x45d   : > { %v4530_v38 = vadd.f32 %v2214_v16, %v2174_v47 }
 0x460   : > { %v2185_v60 = vpop.f32.mrf.mxu3 }
 0x461   : > { %v2176_v61 = vpop.f32.mrf.mxu0  ;;  %v2186_v0 = vadd.f32 %v2185_v60, %v2116_v2  ;;  %v2255_v3 = vpop.f32.mrf.mxu2 }
 0x462   : > { %v2177_v63 = vadd.f32 %v2176_v61, %v2101_v27 }
 0x463   : > { %v2217_v40 = vpop.f32.mrf.mxu1 }
 0x464   : > { %v2218_v8 = vadd.f32 %v2217_v40, %v2177_v63 }
 0x469   : > { %v2188_v45 = vpop.f32.mrf.mxu3 }
 0x46a   : > { %v2179_v21 = vpop.f32.mrf.mxu0  ;;  %v2258_v29 = vpop.f32.mrf.mxu2  ;;  %v2189_v42 = vadd.f32 %v2188_v45, %v2121_v30 }
 0x46b   : > { %v2180_v10 = vadd.f32 %v2179_v21, %v2106_v9  ;;  %v2259_v30 = vadd.f32 %v2258_v29, %v2218_v8 }
 0x46c   : > { %v2220_v20 = vpop.f32.mrf.mxu1 }
 0x46d   : > { %v2221_v54 = vadd.f32 %v2220_v20, %v2180_v10 }
 0x471   : > { %v2191_v31 = vpop.f32.mrf.mxu3 }
 0x472   : > { %v2261_v24 = vpop.f32.mrf.mxu2  ;;  %v2192_v12 = vadd.f32 %v2191_v31, %v4528_v50  ;;  %v2256_v31 = vadd.f32 %v2255_v3, %v4530_v38 }
 0x473   : > { %v2262_v60 = vadd.f32 %v2261_v24, %v2221_v54 }
 0x474   : > { %v2223_v35 = vpop.f32.mrf.mxu1 }
 0x475   : > { %v2224_v28 = vadd.f32 %v2223_v35, %v2183_v17  ;;  %v2334_v52 = vpop.f32.mrf.mxu0 }
 0x47a   : > { %v2264_v13 = vpop.f32.mrf.mxu2 }
 0x47b   : > { %v2293_v62 = vpop.f32.mrf.mxu3  ;;  %v2265_v47 = vadd.f32 %v2264_v13, %v2224_v28  ;;  %v2411_v13 = vld [vmem:[%s4616_s4 + $0x20] sm:$0xff] }
 0x47c   : > { %v2294_v43 = vadd.f32 %v2293_v62, %v2253_v33  ;;  %v2226_v15 = vpop.f32.mrf.mxu1 }
 0x47d   : > { %v2227_v23 = vadd.f32 %v2226_v15, %v2186_v0  ;;  %v4534_v18 = vpop.f32.mrf.mxu0 }
 0x47e   : > { %v4532_v7 = vadd.f32 %v2334_v52, %v2294_v43 }
 0x482   : > { %v2267_v46 = vpop.f32.mrf.mxu2 }
 0x483   : > { %v2296_v25 = vpop.f32.mrf.mxu3  ;;  %v2268_v33 = vadd.f32 %v2267_v46, %v2227_v23  ;;  %v2456_v46 = vpop.permute.xlu0 %2455 }
 0x484   : > { %v2229_v55 = vpop.f32.mrf.mxu1  ;;  %v2297_v52 = vadd.f32 %v2296_v25, %v2256_v31 }
 0x485   : > { %v2340_v39 = vpop.f32.mrf.mxu0  ;;  %v2230_v4 = vadd.f32 %v2229_v55, %v2189_v42 }
 0x486   : > { %v2338_v55 = vadd.f32 %v4534_v18, %v2297_v52  ;;  %v2407_v18 = vld [vmem:[%s4616_s4] sm:$0xff] }
 0x48a   : > { %v2270_v11 = vpop.f32.mrf.mxu2 }
 0x48b   : > { %v2299_v41 = vpop.f32.mrf.mxu3  ;;  %v2271_v1 = vadd.f32 %v2270_v11, %v2230_v4 }
 0x48c   : > { %v2232_v37 = vpop.f32.mrf.mxu1  ;;  %v2300_v17 = vadd.f32 %v2299_v41, %v2259_v30 }
 0x48d   : > { %v2343_v26 = vpop.f32.mrf.mxu0  ;;  %v2233_v22 = vadd.f32 %v2232_v37, %v2192_v12 }
 0x48e   : > { %v2341_v54 = vadd.f32 %v2340_v39, %v2300_v17 }
 0x492   : > { %v2273_v6 = vpop.f32.mrf.mxu2 }
 0x493   : > { %v2302_v57 = vpop.f32.mrf.mxu3  ;;  %v2274_v34 = vadd.f32 %v2273_v6, %v2233_v22 }
 0x494   : > { %v2378_v49 = vpop.f32.mrf.mxu1  ;;  %v2303_v50 = vadd.f32 %v2302_v57, %v2262_v60 }
 0x495   : > { %v2346_v32 = vpop.f32.mrf.mxu0  ;;  %v2379_v3 = vadd.f32 %v2378_v49, %v2338_v55  ;;  %v2408_v49 = vld [vmem:[%s4616_s4 + $0x8] sm:$0xff] }
 0x496   : > { %v2344_v28 = vadd.f32 %v2343_v26, %v2303_v50  ;;  %v2410_v26 = vld [vmem:[%s4616_s4 + $0x18] sm:$0xff] }
 0x497   : > { %v2400_v39 = vmax.f32 %v2379_v3, 0.0 }
 0x49b   : > { %v2305_v36 = vpop.f32.mrf.mxu3 }
 0x49c   : > { %v2381_v59 = vpop.f32.mrf.mxu1  ;;  %v2306_v61 = vadd.f32 %v2305_v36, %v2265_v47  ;;  %v2413_v36 = vld [vmem:[%s4616_s4 + $0x30] sm:$0xff] }
 0x49d   : > { %v2349_v19 = vpop.f32.mrf.mxu0  ;;  %v2382_v29 = vadd.f32 %v2381_v59, %v2341_v54  ;;  %v2412_v59 = vld [vmem:[%s4616_s4 + $0x28] sm:$0xff] }
 0x49e   : > { %v2347_v35 = vadd.f32 %v2346_v32, %v2306_v61  ;;  %v2414_v32 = vld [vmem:[%s4616_s4 + $0x38] sm:$0xff] }
 0x49f   : > { %v2401_v25 = vmax.f32 %v2382_v29, 0.0  ;;  %v2559_v29 = vld [vmem:[%s4618_s6] sm:$0xff] }
 0x4a3   : > { %v2308_v58 = vpop.f32.mrf.mxu3 }
 0x4a4   : > { %v2384_v5 = vpop.f32.mrf.mxu1  ;;  %v2309_v16 = vadd.f32 %v2308_v58, %v2268_v33 }
 0x4a5   : > { %v2352_v14 = vpop.f32.mrf.mxu0  ;;  %v2385_v23 = vadd.f32 %v2384_v5, %v2344_v28  ;;  %v2461_v5 = vpop.permute.xlu2 %2460 }
 0x4a6   : > { %v2350_v21 = vadd.f32 %v2349_v19, %v2309_v16  ;;  %v2451_v19 = vpop.permute.xlu1 %2450 }
 0x4a7   : > { %v2402_v41 = vmax.f32 %v2385_v23, 0.0 }
 0x4ab   : > { %v2311_v48 = vpop.f32.mrf.mxu3 }
 0x4ac   : > { %v2387_v56 = vpop.f32.mrf.mxu1  ;;  %v2312_v51 = vadd.f32 %v2311_v48, %v2271_v1 }
 0x4ad   : > { %v2355_v27 = vpop.f32.mrf.mxu0  ;;  %v2388_v43 = vadd.f32 %v2387_v56, %v2347_v35  ;;  %v2446_v58 = vpop.permute.xlu2 %2445 }
 0x4ae   : > { %v2353_v63 = vadd.f32 %v2352_v14, %v2312_v51  ;;  %v2441_v56 = vpop.permute.xlu0 %2440  ;;  %v2436_v22 = vpop.permute.xlu1 %2435 }
 0x4af   : > { %v2403_v37 = vmax.f32 %v2388_v43, 0.0 }
 0x4b3   : > { %v2314_v44 = vpop.f32.mrf.mxu3 }
 0x4b4   : > { %v2390_v2 = vpop.f32.mrf.mxu1  ;;  %v2315_v53 = vadd.f32 %v2314_v44, %v2274_v34 }
 0x4b5   : > { %v2391_v0 = vadd.f32 %v2390_v2, %v2350_v21  ;;  %v2375_v38 = vpop.f32.mrf.mxu0  ;;  %v2431_v11 = vpop.permute.xlu2 %2430 }
 0x4b6   : > { %v2356_v40 = vadd.f32 %v2355_v27, %v2315_v53  ;;  %v2376_v24 = vadd.f32 %v2375_v38, %v4532_v7  ;;  %v2409_v7 = vld [vmem:[%s4616_s4 + $0x10] sm:$0xff]  ;;  %v2426_v42 = vpop.permute.xlu0 %2425 }
 0x4b7   : > { %v2404_v8 = vmax.f32 %v2391_v0, 0.0 }
 0x4b8   : > { %v2399_v57 = vmax.f32 %v2376_v24, 0.0 }
 0x4bc   : > { %v2393_v9 = vpop.f32.mrf.mxu1 }
 0x4bd   : > { %v2394_v10 = vadd.f32 %v2393_v9, %v2353_v63 }
 0x4bf   : > { %v2405_v15 = vmax.f32 %v2394_v10, 0.0 }
 0x4c4   : > { %v2396_v45 = vpop.f32.mrf.mxu1 }
 0x4c5   : > { %v2397_v20 = vadd.f32 %v2396_v45, %v2356_v40 }
 0x4c7   : > { %v2406_v62 = vmax.f32 %v2397_v20, 0.0 }
 0x4c9   : > { %2496 = vmatpush.msrb.mxu0 %v2406_v62  ;;  %2852 = vmatpush.msrb.mxu2 %v2406_v62 }
 0x4cb   : > { %2497 = vmatpush.msrb.mxu0 %v2405_v15  ;;  %2853 = vmatpush.msrb.mxu2 %v2405_v15 }
 0x4cd   : > { %2498 = vmatpush.msrb.mxu0 %v2404_v8  ;;  %2854 = vmatpush.msrb.mxu2 %v2404_v8 }
 0x4cf   : > { %2499 = vmatpush.msrb.mxu0 %v2403_v37  ;;  %2855 = vmatpush.msrb.mxu2 %v2403_v37 }
 0x4d1   : > { %2500 = vmatpush.msrb.mxu0 %v2402_v41  ;;  %2856 = vmatpush.msrb.mxu2 %v2402_v41 }
 0x4d3   : > { %2501 = vmatpush.msrb.mxu0 %v2401_v25  ;;  %2857 = vmatpush.msrb.mxu2 %v2401_v25 }
 0x4d5   : > { %2502 = vmatpush.msrb.mxu0 %v2400_v39  ;;  %2858 = vmatpush.msrb.mxu2 %v2400_v39 }
 0x4d7   : > { %2503 = vmatpush.msrb.mxu0 %v2399_v57  ;;  %2859 = vmatpush.msrb.mxu2 %v2399_v57 }
 0x4d8   : > { %2781 = vmatmul.msk.f32.vlgmr.msrb.gmra.mxu0 %vm2463_vm4, %v2407_v18  ;;  %2782 = vmatmul.msk.f32.vlgmr.msrb.gmra.mxu2 %vm2463_vm4, %v2408_v49  ;;  %v2589_v49 = vpop.permute.xlu1 %2588 }
 0x4e0   : > { %2783 = vmatmul.msk.f32.gmra.mxu2 %vm2463_vm4, %v2409_v7 }
 0x4e8   : > { %2784 = vmatmul.msk.f32.gmra.mxu2 %vm2463_vm4, %v2410_v26  ;;  %v2593_v26 = vld [vmem:[#allocation3] sm:$0xff] }
 0x4f0   : > { %2785 = vmatmul.msk.f32.gmra.mxu2 %vm2463_vm4, %v2411_v13 }
 0x4f8   : > { %2786 = vmatmul.msk.f32.gmra.mxu2 %vm2463_vm4, %v2412_v59 }
 0x500   : > { %2787 = vmatmul.msk.f32.gmra.mxu2 %vm2463_vm4, %v2413_v36 }
 0x508   : > { %2788 = vmatmul.msk.f32.gmra.mxu2 %vm2463_vm4, %v2414_v32 }
 0x555   : > { %v2505_v48 = vpop.f32.mrf.mxu0 }
 0x556   : > { %v2506_v12 = vadd.f32 %v2505_v48, %v2426_v42 }
 0x558   : > { %v2529_v4 = vmul.f32 %v2506_v12, %v2506_v12 }
 0x55a   : > { %v2538_v34 = vsel %vm2537_vm5, %v2529_v4, 0.0 }
 0x55b   : > { %v2508_v2 = vpop.f32.mrf.mxu2 }
 0x55c   : > { %v2509_v14 = vadd.f32 %v2508_v2, %v2431_v11 }
 0x55e   : > { %v2530_v6 = vmul.f32 %v2509_v14, %v2509_v14 }
 0x560   : > { %v2539_v9 = vsel %vm2537_vm5, %v2530_v6, 0.0 }
 0x561   : > { %v2540_v51 = vadd.f32 %v2539_v9, %v2538_v34 }
 0x563   : > { %v2511_v44 = vpop.f32.mrf.mxu2 }
 0x564   : > { %v2512_v1 = vadd.f32 %v2511_v44, %v2436_v22 }
 0x566   : > { %v2531_v33 = vmul.f32 %v2512_v1, %v2512_v1 }
 0x568   : > { %v2541_v53 = vsel %vm2537_vm5, %v2531_v33, 0.0 }
 0x569   : > { %v2542_v47 = vadd.f32 %v2541_v53, %v2540_v51 }
 0x56b   : > { %v2514_v16 = vpop.f32.mrf.mxu2 }
 0x56c   : > { %v2515_v27 = vadd.f32 %v2514_v16, %v2441_v56 }
 0x56e   : > { %v2532_v60 = vmul.f32 %v2515_v27, %v2515_v27 }
 0x570   : > { %v2543_v61 = vsel %vm2537_vm5, %v2532_v60, 0.0 }
 0x571   : > { %v2544_v63 = vadd.f32 %v2543_v61, %v2542_v47 }
 0x573   : > { %v2517_v40 = vpop.f32.mrf.mxu2 }
 0x574   : > { %v2518_v30 = vadd.f32 %v2517_v40, %v2446_v58 }
 0x576   : > { %v2533_v45 = vmul.f32 %v2518_v30, %v2518_v30 }
 0x578   : > { %v2545_v50 = vsel %vm2537_vm5, %v2533_v45, 0.0 }
 0x579   : > { %v2546_v21 = vadd.f32 %v2545_v50, %v2544_v63 }
 0x57b   : > { %v2520_v10 = vpop.f32.mrf.mxu2 }
 0x57c   : > { %v2521_v20 = vadd.f32 %v2520_v10, %v2451_v19 }
 0x57e   : > { %v2534_v31 = vmul.f32 %v2521_v20, %v2521_v20 }
 0x580   : > { %v2547_v17 = vsel %vm2537_vm5, %v2534_v31, 0.0 }
 0x581   : > { %v2548_v35 = vadd.f32 %v2547_v17, %v2546_v21 }
 0x583   : > { %v2523_v0 = vpop.f32.mrf.mxu2 }
 0x584   : > { %v2524_v62 = vadd.f32 %v2523_v0, %v2456_v46 }
 0x586   : > { %v2535_v52 = vmul.f32 %v2524_v62, %v2524_v62 }
 0x588   : > { %v2549_v28 = vsel %vm2537_vm5, %v2535_v52, 0.0 }
 0x589   : > { %v2550_v43 = vadd.f32 %v2549_v28, %v2548_v35 }
 0x58b   : > { %v2526_v15 = vpop.f32.mrf.mxu2 }
 0x58c   : > { %v2527_v54 = vadd.f32 %v2526_v15, %v2461_v5 }
 0x58e   : > { %v2536_v23 = vmul.f32 %v2527_v54, %v2527_v54  ;;  %2571 = vmatpush.msra.mxu3 %v2527_v54 }
 0x590   : > { %v2551_v8 = vsel %vm2537_vm5, %v2536_v23, 0.0  ;;  %2572 = vmatpush.msra.mxu3 %v2524_v62 }
 0x591   : > { %v2552_v55 = vadd.f32 %v2551_v8, %v2550_v43 }
 0x592   : > { %2573 = vmatpush.msra.mxu3 %v2521_v20 }
 0x593   : > { %v2553_v37 = vrot.slane %v2552_v55, 4 }
 0x594   : > { %2574 = vmatpush.msra.mxu3 %v2518_v30 }
 0x595   : > { %v2554_v38 = vadd.f32 %v2553_v37, %v2552_v55 }
 0x596   : > { %2575 = vmatpush.msra.mxu3 %v2515_v27 }
 0x597   : > { %v2555_v3 = vrot.slane %v2554_v38, 2 }
 0x598   : > { %2576 = vmatpush.msra.mxu3 %v2512_v1 }
 0x599   : > { %v2556_v41 = vadd.f32 %v2555_v3, %v2554_v38 }
 0x59a   : > { %2577 = vmatpush.msra.mxu3 %v2509_v14 }
 0x59b   : > { %v2557_v25 = vrot.slane %v2556_v41, 1 }
 0x59c   : > { %2578 = vmatpush.msra.mxu3 %v2506_v12 }
 0x59d   : > { %2789 = vmatmul.msk.f32.vlgmr.msra.gmra.mxu3 %vm2463_vm4, %v2559_v29  ;;  %v2558_v39 = vadd.f32 %v2557_v25, %v2556_v41 }
 0x620   : > { %v2580_v24 = vpop.f32.mrf.mxu3 }
 0x621   : > { %v2583_v57 = vmul.f32 2.0, %v2580_v24 }
 0x623   : > { %v2584_v18 = vsub.f32 %v2558_v39, %v2583_v57 }
 0x625   : > { %v2591_v7 = vadd.f32 %v2589_v49, %v2584_v18 }
 0x627   : > { %v2592_v13 = vmax.f32 %v2591_v7, 0.0 }
 0x629   : > { %v2594_v59 = vmin.f32 %v2593_v26, %v2592_v13 }
 0x62b   : > { %2595 = vst.msk [vmem:[#allocation3] sm:$0xff] %vm2537_vm5, %v2594_v59 }
 0x62c PF: > { %p2790_p3 = scmp.ne.s32.totalorder %s2966_s15, 3 }
 0x62e   : > { %2599 = sbr.rel (%p2790_p3) target bundleno = 1863 (0x747), region = 99 }
 0x633   : > { %v2600_v36 = vld [vmem:[#allocation3] sm:$0xff]  ;;  %vm2601_vm6 = vcmask 15360   ;;  %vm2651_vm7 = vcmask 7168   ;;  %v2624_v1 = vld [vmem:[%s4620_s8] sm:$0xf]  ;;  %vm2625_vm12 = vcmask 64512  }
 0x634   : > { %v2602_v32 = vsel %vm2601_vm6, %v2600_v36, inf  ;;  %vm2649_vm13 = vcmask 3072  }
 0x635   : > { %2603 = vmin.xlane.f32.xlu0 %v2602_v32 }
 0x6a8   : > { %v2604_v5 = vpop.xlane.xlu0 %2603 }
 0x6a9   : > { %v2606_v46 = vadd.f32 0.0001, %v2604_v5  ;;  %2652 = vst.msk [vmem:[%s3504_s20] sm:$0xff] %vm2651_vm7, %v2604_v5  ;;  %v2605_v12 = vadd.f32 1.0, %v2604_v5 }
 0x6ab   : > { %2924 = vrcp.f32 %v2606_v46  ;;  %v2618_v11 = vand.u32 2147483648, %v2606_v46  ;;  %v2616_v2 = vand.u32 2147483647, %v2606_v46  ;;  %vm2612_vm9 = vweird.f32 %v2606_v46 }
 0x6ad   : > { %v2619_v42 = vor.u32 1.1754944e-38, %v2618_v11  ;;  %vm2617_vm11 = vcmp.eq.f32.partialorder %v2616_v2, 8.507059e+37 }
 0x6b1   : > { %v2925_v58 = vpop.eup %2924 }
 0x6b2   : > { %v2608_v56 = vmul.f32 %v2925_v58, %v2606_v46  ;;  %vm2613_vm8 = vweird.f32 %v2925_v58 }
 0x6b3   : > { %vm2614_vm10 = vmor %vm2612_vm9, %vm2613_vm8 }
 0x6b4   : > { %v2609_v19 = vsub.f32 1.0, %v2608_v56 }
 0x6b6   : > { %v2610_v48 = vmul.f32 %v2925_v58, %v2609_v19 }
 0x6b8   : > { %v2611_v14 = vadd.f32 %v2925_v58, %v2610_v48 }
 0x6ba   : > { %v2615_v6 = vsel %vm2614_vm10, %v2925_v58, %v2611_v14 }
 0x6bb   : > { %v2620_v4 = vsel %vm2617_vm11, %v2619_v42, %v2615_v6 }
 0x6bc   : > { %v2621_v22 = vmul.f32 %v2620_v4, %v2605_v12 }
 0x6be   : > { %2926 = vlog2.f32 %v2621_v22 }
 0x6c4   : > { %v2927_v44 = vpop.eup %2926 }
 0x6c5   : > { %v2623_v9 = vmul.f32 0.6931472, %v2927_v44 }
 0x6c7   : > { %2644 = vmatpush.msra.mxu0 %v2623_v9 }
 0x6c8   : > { %2791 = vmatmul.msk.f32.vlgmr.msra.gmra.mxu0 %vm2625_vm12, %v2624_v1 }
 0x745   : > { %v2646_v34 = vpop.f32.mrf.mxu0 }
 0x746   : > { %2650 = vst.msk [vmem:[%s3499_s23] sm:$0xf] %vm2649_vm13, %v2646_v34 }
 0x747 PF: > { %s21_s19 = sadd.s32 1, %s2982_s19   ;;  %s4751_s16 = sld [smem:[#allocation5_spill]] }
 0x748   : > { %p18_p4 = scmp.ge.s32.totalorder %s21_s19, 10   ;;  %s4752_s12 = sld [smem:[#allocation6_spill]] }
 0x749   : > { %s4753_s18 = sld [smem:[#allocation7_spill]]  ;;  %s4754_s13 = smov %s2962_s14 }
 0x74a   : > { %s4755_s14 = smov %s3092_s26  ;;  %s4756_s15 = smov %s2974_s17 }
 0x74b   :  { %20 = sbr.rel (!%p18_p4) target bundleno = 6 (0x6), region = 146 }
 0x74e   : > { %s4757_s17 = smov %s4752_s12 }

</bundles_post_ra>
